<compile_context>
chip_gen: v7x
topology: tpu7x:2x2x1
jax: 0.10.0
libtpu: 0.0.40
codegen_flags: <defaults>
</compile_context>

<pallas_src>
import functools

import jax
import jax.numpy as jnp
from jax import lax
from jax.experimental import pallas as pl
from jax.experimental.pallas import tpu as pltpu


def _round_up(x, m):
    return (x + m - 1) // m * m


def _vmem_limit_bytes():
    # ~3/4 of physical VMEM, capped at 96 MiB (v5e/v6e: 128 MiB -> 96 MiB,
    # v7x: 64 MiB -> 48 MiB).  Conservative fallback if the query fails.
    try:
        cap = pltpu.get_tpu_info().vmem_capacity_bytes
    except Exception:
        cap = 64 * 1024 * 1024
    return int(min((cap * 3) // 4, 96 * 1024 * 1024))


# -----------------------------------------------------------------------------
# Stage 1: stable ascending rank (ties broken by original index) per row.
# -----------------------------------------------------------------------------
def _rank_kernel(x_ref, rank_ref, *, tile, n_chunks):
    """x_ref   : (n_chunks, RB, T) all chunks of this row block (VMEM resident)
       rank_ref: (RB, T) f32 stable ranks of query chunk q = program_id(1)."""
    q = pl.program_id(1)
    rb = rank_ref.shape[0]

    xq = x_ref[q]                        # (RB, T) query values
    a = xq[:, None, :]                   # (RB, 1, TQ): queries on the lane axis

    def count(jj, strict):
        b = x_ref[jj][:, :, None]        # (RB, TJ, 1): compares on the sublane axis
        cmp = (b < a) if strict else (b <= a)
        # Sublane reduce over the compare axis: cheap VALU adds, XLU stays free.
        return jnp.sum(cmp.astype(jnp.float32), axis=1)

    # Off-diagonal chunks need a single compare per element:
    #   chunks entirely before the query tile (jj < q)  -> count (b <= a)
    #   chunks entirely after  the query tile (jj > q)  -> count (b <  a)
    acc = lax.fori_loop(0, q, lambda jj, c: c + count(jj, False),
                        jnp.zeros((rb, tile), jnp.float32))
    acc = lax.fori_loop(q + 1, n_chunks, lambda jj, c: c + count(jj, True), acc)

    # Diagonal chunk: full stable tie-break on the (local) index.
    b = xq[:, :, None]
    j_ids = lax.broadcasted_iota(jnp.int32, (1, tile, tile), 1)   # compare idx (sublane)
    i_ids = lax.broadcasted_iota(jnp.int32, (1, tile, tile), 2)   # query   idx (lane)
    diag = (b < a) | ((b == a) & (j_ids < i_ids))
    rank_ref[...] = acc + jnp.sum(diag.astype(jnp.float32), axis=1)


# -----------------------------------------------------------------------------
# Stage 2: gather sorted style values by content rank (select + sublane reduce).
# -----------------------------------------------------------------------------
def _match_kernel(rc_ref, rs_ref, sv_ref, out_ref, *, tile, n_chunks):
    """rc_ref : (RB, T)             content ranks for query tile i
       rs_ref : (n_chunks, RB, T)   style ranks, all chunks (VMEM resident)
       sv_ref : (n_chunks, RB, T)   style values, all chunks (VMEM resident)
       out_ref: (RB, T)             output tile."""
    rc = rc_ref[...]                     # (RB, T) f32
    a = rc[:, None, :]                   # (RB, 1, TQ)

    def body(jj, acc):
        rs = rs_ref[jj][:, :, None]                       # (RB, TJ, 1)
        sv = sv_ref[jj].astype(jnp.float32)[:, :, None]   # (RB, TJ, 1)
        # Fused select + sublane reduce; no MXU, no materialized match tensor.
        return acc + jnp.sum(jnp.where(rs == a, sv, 0.0), axis=1)

    acc = lax.fori_loop(0, n_chunks, body,
                        jnp.zeros(rc.shape, jnp.float32),
                        unroll=n_chunks <= 4)
    out_ref[...] = acc.astype(out_ref.dtype)


# -----------------------------------------------------------------------------
# Wrapper.
# -----------------------------------------------------------------------------
def efdm(content_feat, style_feat, *, block_rows=8, tile=256, max_pallas_n=4096):
    assert content_feat.shape == style_feat.shape
    B, C, W, H = content_feat.shape
    N = W * H
    BC = B * C
    dtype = content_feat.dtype

    if N > max_pallas_n:
        # TODO(synk): in-kernel bitonic argsort for large feature maps; the
        # O(N^2) rank matching below is asymptotically dominated by XLA's sort.
        return efdm_ref(content_feat, style_feat)

    assert N < (1 << 24), "ranks are carried exactly in f32 only for N < 2^24"

    n_pad = _round_up(N, tile)
    n_chunks = n_pad // tile

    c2 = content_feat.reshape(BC, N)
    s2 = style_feat.reshape(BC, N)

    compiler_params = pltpu.CompilerParams(
        dimension_semantics=("parallel", "parallel"),
        vmem_limit_bytes=_vmem_limit_bytes(),
    )

    # ---------------- stage 1: stable ranks of content rows and style rows ---
    # Pad columns with +inf: padded elements rank after every real element, so
    # no in-kernel padding mask and no rank collisions with real data.
    x = jnp.concatenate([c2, s2], axis=0)            # (2*BC, N)
    if n_pad != N:
        x = jnp.pad(x, ((0, 0), (0, n_pad - N)), constant_values=jnp.inf)
    rows_a = _round_up(2 * BC, block_rows)
    if rows_a != 2 * BC:
        x = jnp.pad(x, ((0, rows_a - 2 * BC), (0, 0)))
    # Chunk-major layout so the kernel indexes chunks on the leading ref axis.
    x3 = x.reshape(rows_a, n_chunks, tile).transpose(1, 0, 2)   # (n_chunks, rows_a, T)

    ranks = pl.pallas_call(
        functools.partial(_rank_kernel, tile=tile, n_chunks=n_chunks),
        out_shape=jax.ShapeDtypeStruct((rows_a, n_pad), jnp.float32),
        grid_spec=pltpu.PrefetchScalarGridSpec(
            num_scalar_prefetch=0,
            grid=(rows_a // block_rows, n_chunks),
            in_specs=[
                # Full row block resident in VMEM; block index ignores q, so it
                # is DMA'd once per row block (no re-fetch across query tiles).
                pl.BlockSpec((n_chunks, block_rows, tile), lambda r, q: (0, r, 0)),
            ],
            out_specs=pl.BlockSpec((block_rows, tile), lambda r, q: (r, q)),
        ),
        compiler_params=compiler_params,
    )(x3)

    rank_c = ranks[:BC]
    rank_s = ranks[BC:2 * BC]

    # ---------------- stage 2: gather sorted style values by content rank ----
    rows_b = _round_up(BC, block_rows)

    def pad_rows(a):
        return a if a.shape[0] == rows_b else jnp.pad(a, ((0, rows_b - a.shape[0]), (0, 0)))

    s2p = s2 if n_pad == N else jnp.pad(s2, ((0, 0), (0, n_pad - N)))  # zero-padded values

    rc_p = pad_rows(rank_c)                                            # (rows_b, n_pad)
    rs3 = pad_rows(rank_s).reshape(rows_b, n_chunks, tile).transpose(1, 0, 2)
    sv3 = pad_rows(s2p).reshape(rows_b, n_chunks, tile).transpose(1, 0, 2)

    out = pl.pallas_call(
        functools.partial(_match_kernel, tile=tile, n_chunks=n_chunks),
        out_shape=jax.ShapeDtypeStruct((rows_b, n_pad), dtype),
        grid_spec=pltpu.PrefetchScalarGridSpec(
            num_scalar_prefetch=0,
            grid=(rows_b // block_rows, n_chunks),
            in_specs=[
                pl.BlockSpec((block_rows, tile), lambda r, i: (r, i)),          # rank_c tile
                pl.BlockSpec((n_chunks, block_rows, tile), lambda r, i: (0, r, 0)),  # rank_s rows
                pl.BlockSpec((n_chunks, block_rows, tile), lambda r, i: (0, r, 0)),  # style rows
            ],
            out_specs=pl.BlockSpec((block_rows, tile), lambda r, i: (r, i)),
        ),
        compiler_params=compiler_params,
    )(rc_p, rs3, sv3)

    return out[:BC, :N].reshape(B, C, W, H)


def efdm_ref(content_feat, style_feat):
    """Pure-JAX reference mirroring the PyTorch forward."""
    B, C, W, H = content_feat.shape
    c = content_feat.reshape(B, C, -1)
    s = style_feat.reshape(B, C, -1)
    index_content = jnp.argsort(c, axis=-1)
    value_style = jnp.sort(s, axis=-1)
    inverse_index = jnp.argsort(index_content, axis=-1)
    new_content = jnp.take_along_axis(value_style, inverse_index, axis=-1)
    return new_content.reshape(B, C, W, H)


if __name__ == "__main__":
    key = jax.random.PRNGKey(0)
    k1, k2, k3, k4 = jax.random.split(key, 4)

    # main test shape (N = 256, lane-aligned)
    content = jax.random.normal(k1, (2, 4, 16, 16), dtype=jnp.float32)
    style = jax.random.normal(k2, (2, 4, 16, 16), dtype=jnp.float32)
    out = efdm(content, style)
    jax.block_until_ready(out)
    ref = efdm_ref(content, style)
    assert out.shape == (2, 4, 16, 16)
    assert jnp.allclose(out, ref, atol=1e-5, rtol=1e-5), "mismatch vs reference"

    # non-aligned spatial size exercises the column/row padding paths
    content2 = jax.random.normal(k3, (2, 3, 14, 14), dtype=jnp.float32)
    style2 = jax.random.normal(k4, (2, 3, 14, 14), dtype=jnp.float32)
    out2 = efdm(content2, style2)
    jax.block_until_ready(out2)
    ref2 = efdm_ref(content2, style2)
    assert jnp.allclose(out2, ref2, atol=1e-5, rtol=1e-5), "mismatch vs reference (padded)"

    print("KERNEL_OK")
</pallas_src>

<mosaic_0001>
module attributes {stable_mosaic.version = 11 : i64} {
  func.func @_rank_kernel(%arg0: i32, %arg1: i32, %arg2: memref<1x8x256xf32, #tpu.memory_space<vmem>>, %arg3: memref<8x256xf32, #tpu.memory_space<vmem>>) attributes {dimension_semantics = [#tpu.dimension_semantics<parallel>, #tpu.dimension_semantics<parallel>], iteration_bounds = array<i64: 2, 1>, scalar_prefetch = 0 : i64, scratch_operands = 0 : i64, tpu.core_type = #tpu.core_type<tc>, window_params = [{transform_indices = @transform_0, window_bounds = array<i64: 1, 8, 256>}, {transform_indices = @transform_1, window_bounds = array<i64: 8, 256>}]} {
    %0 = arith.index_cast %arg1 : i32 to index
    %c0 = arith.constant 0 : index
    %c0_0 = arith.constant 0 : index
    %1 = vector.load %arg2[%0, %c0, %c0_0] : memref<1x8x256xf32, #tpu.memory_space<vmem>>, vector<1x8x256xf32>
    %2 = vector.shape_cast %1 : vector<1x8x256xf32> to vector<8x256xf32>
    %3 = vector.shape_cast %2 : vector<8x256xf32> to vector<8x1x256xf32>
    %cst = arith.constant 0.000000e+00 : f32
    %4 = vector.broadcast %cst : f32 to vector<8x256xf32>
    %c0_i32 = arith.constant 0 : i32
    %5 = arith.subi %arg1, %c0_i32 : i32
    %6 = arith.addi %c0_i32, %5 : i32
    %c1_i32 = arith.constant 1 : i32
    %7 = scf.for %arg4 = %c0_i32 to %6 step %c1_i32 iter_args(%arg5 = %4) -> (vector<8x256xf32>)  : i32 {
      %30 = arith.index_cast %arg4 : i32 to index
      %c0_7 = arith.constant 0 : index
      %c0_8 = arith.constant 0 : index
      %31 = vector.load %arg2[%30, %c0_7, %c0_8] : memref<1x8x256xf32, #tpu.memory_space<vmem>>, vector<1x8x256xf32>
      %32 = vector.shape_cast %31 : vector<1x8x256xf32> to vector<8x256xf32>
      %33 = vector.shape_cast %32 : vector<8x256xf32> to vector<8x256x1xf32>
      %34 = vector.broadcast %33 : vector<8x256x1xf32> to vector<8x256x256xf32>
      %35 = vector.broadcast %3 : vector<8x1x256xf32> to vector<8x256x256xf32>
      %36 = arith.cmpf ole, %34, %35 : vector<8x256x256xf32>
      %37 = arith.extui %36 : vector<8x256x256xi1> to vector<8x256x256xi32>
      %38 = arith.sitofp %37 : vector<8x256x256xi32> to vector<8x256x256xf32>
      %cst_9 = arith.constant dense<0.000000e+00> : vector<8x256xf32>
      %39 = vector.multi_reduction <add>, %38, %cst_9 [1] : vector<8x256x256xf32> to vector<8x256xf32>
      %40 = arith.addf %arg5, %39 : vector<8x256xf32>
      scf.yield %40 : vector<8x256xf32>
    }
    %c1_i32_1 = arith.constant 1 : i32
    %8 = arith.addi %arg1, %c1_i32_1 : i32
    %c1_i32_2 = arith.constant 1 : i32
    %9 = arith.subi %c1_i32_2, %8 : i32
    %10 = arith.addi %8, %9 : i32
    %c1_i32_3 = arith.constant 1 : i32
    %11 = scf.for %arg4 = %8 to %10 step %c1_i32_3 iter_args(%arg5 = %7) -> (vector<8x256xf32>)  : i32 {
      %30 = arith.index_cast %arg4 : i32 to index
      %c0_7 = arith.constant 0 : index
      %c0_8 = arith.constant 0 : index
      %31 = vector.load %arg2[%30, %c0_7, %c0_8] : memref<1x8x256xf32, #tpu.memory_space<vmem>>, vector<1x8x256xf32>
      %32 = vector.shape_cast %31 : vector<1x8x256xf32> to vector<8x256xf32>
      %33 = vector.shape_cast %32 : vector<8x256xf32> to vector<8x256x1xf32>
      %34 = vector.broadcast %33 : vector<8x256x1xf32> to vector<8x256x256xf32>
      %35 = vector.broadcast %3 : vector<8x1x256xf32> to vector<8x256x256xf32>
      %36 = arith.cmpf olt, %34, %35 : vector<8x256x256xf32>
      %37 = arith.extui %36 : vector<8x256x256xi1> to vector<8x256x256xi32>
      %38 = arith.sitofp %37 : vector<8x256x256xi32> to vector<8x256x256xf32>
      %cst_9 = arith.constant dense<0.000000e+00> : vector<8x256xf32>
      %39 = vector.multi_reduction <add>, %38, %cst_9 [1] : vector<8x256x256xf32> to vector<8x256xf32>
      %40 = arith.addf %arg5, %39 : vector<8x256xf32>
      scf.yield %40 : vector<8x256xf32>
    }
    %12 = vector.shape_cast %2 : vector<8x256xf32> to vector<8x256x1xf32>
    %13 = tpu.iota {dimensions = array<i32: 1>} : vector<1x256x256xi32>
    %14 = tpu.iota {dimensions = array<i32: 2>} : vector<1x256x256xi32>
    %15 = vector.broadcast %12 : vector<8x256x1xf32> to vector<8x256x256xf32>
    %16 = vector.broadcast %3 : vector<8x1x256xf32> to vector<8x256x256xf32>
    %17 = arith.cmpf olt, %15, %16 : vector<8x256x256xf32>
    %18 = vector.broadcast %12 : vector<8x256x1xf32> to vector<8x256x256xf32>
    %19 = vector.broadcast %3 : vector<8x1x256xf32> to vector<8x256x256xf32>
    %20 = arith.cmpf oeq, %18, %19 : vector<8x256x256xf32>
    %21 = arith.cmpi slt, %13, %14 : vector<1x256x256xi32>
    %22 = vector.broadcast %21 : vector<1x256x256xi1> to vector<8x256x256xi1>
    %23 = arith.andi %20, %22 : vector<8x256x256xi1>
    %24 = arith.ori %17, %23 : vector<8x256x256xi1>
    %25 = arith.extui %24 : vector<8x256x256xi1> to vector<8x256x256xi32>
    %26 = arith.sitofp %25 : vector<8x256x256xi32> to vector<8x256x256xf32>
    %cst_4 = arith.constant dense<0.000000e+00> : vector<8x256xf32>
    %27 = vector.multi_reduction <add>, %26, %cst_4 [1] : vector<8x256x256xf32> to vector<8x256xf32>
    %28 = arith.addf %11, %27 : vector<8x256xf32>
    %c0_5 = arith.constant 0 : index
    %c0_6 = arith.constant 0 : index
    %29 = vector.load %arg3[%c0_5, %c0_6] : memref<8x256xf32, #tpu.memory_space<vmem>>, vector<8x256xf32>
    tpu.vector_store %arg3[%c0_5, %c0_6], %28 {strides = array<i32>} : memref<8x256xf32, #tpu.memory_space<vmem>>, vector<8x256xf32>,
    return
  }
  func.func @transform_0(%arg0: i32, %arg1: i32) -> (i32, i32, i32) {
    %c0_i32 = arith.constant 0 : i32
    %c0_i32_0 = arith.constant 0 : i32
    %c0_i32_1 = arith.constant 0 : i32
    return %c0_i32, %arg0, %c0_i32_0 : i32, i32, i32
  }
  func.func @transform_1(%arg0: i32, %arg1: i32) -> (i32, i32) {
    %c0_i32 = arith.constant 0 : i32
    return %arg0, %arg1 : i32, i32
  }
}

</mosaic_0001>

<bundles_post_ra>
// kernel: tpu_custom_call.1
= control target key start
LH: loop header
LB: loop body
LE: loop exit
PB: predicated region body
PF: predicated region fallthrough
CT: control target
= control target key end

     0   :  { %6 = vsyncpa [#allocation3], 0  ;;  %s20595_s0 = inlined_call_operand.hbm [shape: f32[1,16,256], index: 0, kind: input, shape index: {}]   ;;  %s20596_s1 = inlined_call_operand.hbm [shape: f32[16,256], index: 1, kind: output, shape index: {}]  }
   0x1   :  { %8 = vsyncpa [#allocation3 + $0x1], 0 }
   0x2   :  { %9 = vsyncpa [#allocation4], 0 }
   0x3   :  { %11 = vsyncpa [#allocation4 + $0x1], 0  ;;  %s13920_s6 = smov 0   ;;  %s13922_s7 = smov 0  }
   0x4   :  { %s13924_s8 = smov 0   ;;  %s13926_s9 = smov 0  }
   0x5   :  { %s13928_s10 = smov 0   ;;  %s13930_s11 = smov 0  }
   0x6 LB: > { %s12163_s12 = sadd.s32 4294967295, %s13904_s11   ;;  %s12164_s13 = sadd.s32 4294967294, %s13904_s11   ;;  %s13904_s11 = sphi %s13930_s11, %s17_s11   ;;  %s13900_s10 = sphi %s13928_s10, %s22077_s10   ;;  %s13896_s9 = sphi %s13926_s9, %s22076_s9   ;;  %s13892_s8 = sphi %s13924_s8, %s22075_s8   ;;  %s13888_s7 = sphi %s13922_s7, %s22074_s7   ;;  %s13884_s6 = sphi %s13920_s6, %s22073_s6  }
   0x7   : > { %s29_s14 = sadd.s32 1, %s13900_s10  ;;  %s36_s15 = sadd.s32 1, %s13892_s8 }
   0x8   : > { %p31_p0 = scmp.ge.s32.totalorder %s29_s14, 2  ;;  %p43_p1 = scmp.ne.s32.totalorder %s13892_s8, %s13888_s7 }
   0x9   : > { %p44_p2 = scmp.eq.s32.totalorder %s13904_s11, 0  ;;  %p49_p3 = scmp.ne.s32.totalorder %s13888_s7, %s13884_s6 }
   0xa   : > { %s22079_s14 = smov (%p31_p0, %s29_s14), 0  ;;  %p50_p5 = scmp.eq.s32.totalorder %s12163_s12, 0 }
   0xb   : > { %p13961_p4 = por %p44_p2, %p43_p1  ;;  %s33_s17 = ssub.s32 %s13900_s10, %s22079_s14 }
   0xc   : > { %p75_p6 = scmp.eq.s32.totalorder %s12163_s12, 1  ;;  %p34_p7 = scmp.eq.s32.totalorder %s33_s17, 0 }
   0xd   : > { %p13967_p8 = por %p50_p5, %p49_p3  ;;  %p81_p10 = scmp.eq.s32.totalorder %s12164_s13, 1 }
   0xe   : > { %p13971_p9 = por %p75_p6, %p43_p1  ;;  %p13734_p13 = scmp.lt.s32.totalorder %s13904_s11, 2 }
   0xf   : > { %s13976_s20 = scalar_select %p34_p7, %s13892_s8, %s36_s15  }
  0x10   : > { %s20849_s19 = scalar_select %p13971_p9, 1, 0 }
  0x11   : > { %p13978_p11 = por %p81_p10, %p49_p3  ;;  %s101_s22 = sand.u32 1, %s13892_s8  }
  0x12   : > { %s12167_s23 = sshll.u32 %s101_s22, 4  ;;  %s13718_s24 = sshll.u32 %s13900_s10, 8 }
  0x13   : > { %s20850_s21 = scalar_select %p13978_p11, 1, 0 }
  0x14   : > { %s13989_s27 = scalar_lea.hbm %s20595_s0, %s13718_s24  ;;  %s105_s28 = scalar_lea.vmem [#allocation2], %s12167_s23 }
  0x15   : > { %s113_s29 = sshll.u32 %s105_s28, 4  ;;  %p13995_p0 = pnand %p13734_p13, %p13961_p4  ;;  %s13991_s29 = int_to_ptr.vmem [resolvable:$true] %s113_s29 }
  0x16   : > { %s102_s2 = scalar_lea.sflag [#allocation3], %s101_s22  ;;  %s13792_s3 = scalar_lea.hbm %s13989_s27, 256 }
  0x17   : > { %p13793_p3 = scmp.ne.s32.totalorder %s13989_s27, %s13792_s3  ;;  %p13794_p5 = pneg %p13995_p0 }
  0x18   : > { %s13797_s12 = scalar_lea.hbm %s20595_s0, 512  ;;  %p13798_p4 = scmp.lt.u32.totalorder %s13989_s27, %s20595_s0 }
  0x19   : > { %p13795_p6 = pnand %p13794_p5, %p13793_p3  ;;  %p13799_p10 = scmp.lt.u32.totalorder %s13797_s12, %s13792_s3 }
  0x1a   : > { %p13801_p12 = scmp.lt.u32.totalorder %s13792_s3, %s13989_s27 }
  0x1b   : > { %p13796_p7 = pneg %p13795_p6  ;;  %p13800_p13 = por %p13799_p10, %p13798_p4 }
  0x1d   : > { %p13802_p1 = por %p13801_p12, %p13800_p13 }
  0x1f   : > { %p13803_p2 = pnand %p13802_p1, %p13796_p7 }
  0x21   : > { %13806 = shalt.err (!%p13803_p2)
}
  0x22   : > { %s13807_s16 = scalar_lea.vmem %s13991_s29, 256  ;;  %s13906_s17 = smov [#allocation2]  }
  0x23   : > { %p13808_p3 = scmp.ne.s32.totalorder %s13991_s29, %s13807_s16  ;;  %s13812_s22 = sshll.u32 %s13906_s17, 4  ;;  %s13813_s22 = int_to_ptr.vmem [resolvable:$false] %s13812_s22 }
  0x24   : > { %s13814_s23 = scalar_lea.vmem %s13813_s22, 512  ;;  %p13815_p9 = scmp.lt.s32.totalorder %s13991_s29, %s13813_s22 }
  0x25   : > { %p13810_p6 = pnand %p13808_p3, %p13794_p5  ;;  %p13816_p4 = scmp.lt.s32.totalorder %s13814_s23, %s13807_s16 }
  0x27   : > { %p13811_p11 = pneg %p13810_p6  ;;  %p13817_p10 = por %p13816_p4, %p13815_p9 }
  0x29   : > { %p13818_p12 = pnand %p13817_p10, %p13811_p11 }
  0x2b   : > { %13821 = shalt.err (!%p13818_p12)
}
  0x2c   : > { %13729 = dma.hbm_to_vmem [thread:$0]  (!%p13995_p0), %s13989_s27, 256, %s13991_s29, %s102_s2  }
  0x2d   : > { %p20852_p1 = scmp.lt.s32.totalorder %s13904_s11, 3  ;;  %p20853_p2 = scmp.ge.s32.totalorder %s13904_s11, 1 }
  0x2f   : > { %p119_p5 = pnand %p20853_p2, %p20852_p1 }
  0x31   : > { %122 = sbr.rel (%p119_p5) target bundleno = 881 (0x371), region = 24 }
  0x38   : > { %s14031_s24 = sand.u32 1, %s13888_s7  }
  0x39   : > { %s12171_s25 = sshll.u32 %s14031_s24, 4  ;;  %s125_s26 = scalar_lea.sflag [#allocation3], %s14031_s24 }
  0x3a   : > { %s14037_s28 = scalar_lea.vmem [#allocation2], %s12171_s25 }
  0x3b   : > { %13875 = dma.done.wait (%p13967_p8), %s125_s26, 256  }
  0x3c   : > { %13877 = vsyncadd (%p13967_p8), %s125_s26, 4294967040  ;;  %v160_v0 = vlaneseq  ;;  %v13907_v1 = vmov 1966171168   ;;  %v14049_v7 = vld [vmem:[%s14037_s28] sm:$0xff]  ;;  %v14052_v8 = vld [vmem:[%s14037_s28 + $0x8] sm:$0xff]  ;;  %v20866_v50 = vmov 0 }
  0x3d   : > { %v158_v2 = vunpack.c.l.s4 %v13907_v1  ;;  %v155_v9 = vcombine.low %v14049_v7, %v14052_v8  ;;  %v156_v10 = vcombine.high %v14049_v7, %v14052_v8  ;;  %v20869_v54 = vmov 0  ;;  %s20454_s18 = scalar_lea.vmem [#allocation5], %s12171_s25  ;;  %s13721_s27 = sshll.u32 %s13896_s9, 8 }
  0x3e   : > { %v14044_v3 = vshrl.u32 %v160_v0, 7  ;;  %v14131_v49 = vand.u32 127, %v160_v0  ;;  %v20876_v59 = vmov 0  ;;  %v20883_v1 = vmov 0  ;;  %s11970_s29 = sshll.u32 %s20454_s18, 4  ;;  %s20544_s3 = scalar_lea.hbm %s20596_s1, %s13721_s27  ;;  %s20546_s29 = int_to_ptr.vmem [resolvable:$true] %s11970_s29 }
  0x3f   : > { %v159_v4 = vunpack.c.0.s8 %v158_v2  ;;  %v20904_v62 = vmov 0  ;;  %s11954_s4 = scalar_lea.sflag [#allocation4], %s14031_s24  ;;  %s13822_s5 = scalar_lea.vmem %s20546_s29, 256 }
  0x40   : > { %v6854_v5 = vsub.s32 0, %v14044_v3  ;;  %v20617_v14 = vsub.s32 6, %v14044_v3  ;;  %v20616_v15 = vsub.s32 7, %v14044_v3  ;;  %v14062_v20 = vsub.s32 1, %v14044_v3  ;;  %p13823_p8 = scmp.ne.s32.totalorder %s20546_s29, %s13822_s5  ;;  %p22070_p9 = scmp.ne.s32.totalorder %s20849_s19, 0 }
  0x41   : > { %v162_v6 = vsub.s32 %v159_v4, %v14044_v3  ;;  %v7927_v48 = vadd.s32 16, %v14044_v3  ;;  %v7928_v53 = vadd.s32 24, %v14044_v3  ;;  %vm14149_vm6 = vcmp.lt.s32.totalorder %v14044_v3, %v14131_v49  ;;  %s13909_s9 = smov [#allocation5]  }
  0x42   : > { %v6855_v11 = vrot.slane %v14049_v7, %v6854_v5  ;;  %v14067_v21 = vrot.slane %v14052_v8, %v20617_v14  ;;  %v14072_v22 = vrot.slane %v14052_v8, %v20616_v15  ;;  %v6922_v45 = vrot.slane %v14052_v8, %v6854_v5  ;;  %p13824_p11 = pnand %p13823_p8, %p22070_p9  ;;  %s13826_s12 = sshll.u32 %s13909_s9, 4  ;;  %s13827_s12 = int_to_ptr.vmem [resolvable:$false] %s13826_s12 }
  0x43   : > { %v163_v12 = vrot.slane %v155_v9, %v162_v6  ;;  %v170_v13 = vrot.slane %v156_v10, %v162_v6  ;;  %v6989_v46 = vrot.slane %v14049_v7, %v14062_v20  ;;  %v14119_v47 = vrot.slane %v14052_v8, %v14062_v20  ;;  %s13828_s13 = scalar_lea.vmem %s13827_s12, 512  ;;  %p13829_p7 = scmp.lt.s32.totalorder %s20546_s29, %s13827_s12 }
  0x44   : > { %6865 = vbcast.lane.b32.xlu1 %v6855_v11, 272  ;;  %6857 = vbcast.lane.b32.xlu0 %v6855_v11, 256  ;;  %20854 = vst [vmem:[#allocation8_spill] sm:$0xff] %v14067_v21  ;;  %20855 = vst [vmem:[#allocation9_spill] sm:$0xff] %v14072_v22  ;;  %vm14136_vm0 = vcmp.lt.s32.totalorder %v7927_v48, %v14131_v49  ;;  %v20870_v54 = vsel %vm14149_vm6, 4294967295, %v20869_v54  ;;  %v7926_v57 = vadd.s32 8, %v14044_v3  ;;  %p13825_p0 = pneg %p13824_p11  ;;  %p13830_p13 = scmp.lt.s32.totalorder %s13828_s13, %s13822_s5 }
  0x45   : > { %v171_v16 = vcombine.high %v163_v12, %v163_v12  ;;  %v172_v17 = vcombine.high %v170_v13, %v170_v13  ;;  %v179_v18 = vrot.slane %v163_v12, %v162_v6  ;;  %v186_v19 = vrot.slane %v170_v13, %v162_v6  ;;  %20871 = vst [vmem:[#allocation21_spill] sm:$0xff] %v20870_v54 }
  0x46   : > { %v20867_v50 = vsel %vm14136_vm0, 4294967295, %v20866_v50  ;;  %vm14171_vm14 = vcmp.lt.s32.totalorder %v7928_v53, %v14131_v49  ;;  %v7122_v61 = vsub.s32 2, %v14044_v3  ;;  %v7930_v0 = vadd.s32 40, %v14044_v3  ;;  %p13831_p3 = por %p13830_p13, %p13829_p7 }
  0x47   : > { %v193_v23 = vrot.slane %v171_v16, %v162_v6  ;;  %v200_v24 = vrot.slane %v172_v17, %v162_v6  ;;  %v201_v25 = vcombine.high %v179_v18, %v179_v18  ;;  %v202_v26 = vcombine.high %v186_v19, %v186_v19  ;;  %20868 = vst [vmem:[#allocation20_spill] sm:$0xff] %v20867_v50 }
  0x48   : > { %6869 = vbcast.lane.b32.xlu1 %v6855_v11, 280  ;;  %v14074_v27 = vrot.slane %v179_v18, %v6854_v5  ;;  %v14077_v28 = vrot.slane %v179_v18, %v14062_v20  ;;  %v14079_v29 = vrot.slane %v186_v19, %v6854_v5  ;;  %v14082_v30 = vrot.slane %v186_v19, %v14062_v20  ;;  %p13832_p6 = pnand %p13831_p3, %p13825_p0 }
  0x49   : > { %6861 = vbcast.lane.b32.xlu0 %v6855_v11, 264  ;;  %v203_v31 = vcombine.high %v193_v23, %v193_v23  ;;  %v204_v32 = vcombine.high %v200_v24, %v200_v24  ;;  %v14084_v33 = vrot.slane %v193_v23, %v6854_v5  ;;  %v14087_v34 = vrot.slane %v193_v23, %v14062_v20 }
  0x4a   : > { %20856 = vst [vmem:[#allocation10_spill] sm:$0xff] %v14079_v29  ;;  %20857 = vst [vmem:[#allocation11_spill] sm:$0xff] %v14082_v30  ;;  %v14089_v35 = vrot.slane %v201_v25, %v6854_v5  ;;  %v14092_v36 = vrot.slane %v201_v25, %v14062_v20  ;;  %v14094_v37 = vrot.slane %v200_v24, %v6854_v5  ;;  %v20877_v59 = vsel %vm14171_vm14, 4294967295, %v20876_v59 }
  0x4b   : > { %v14097_v38 = vrot.slane %v200_v24, %v14062_v20  ;;  %v14099_v39 = vrot.slane %v203_v31, %v6854_v5  ;;  %v14102_v40 = vrot.slane %v203_v31, %v14062_v20  ;;  %v14104_v41 = vrot.slane %v202_v26, %v6854_v5  ;;  %20878 = vst [vmem:[#allocation22_spill] sm:$0xff] %v20877_v59 }
  0x4c   : > { %20858 = vst [vmem:[#allocation12_spill] sm:$0xff] %v14094_v37  ;;  %v14107_v42 = vrot.slane %v202_v26, %v14062_v20  ;;  %6877 = vbcast.lane.b32.xlu1 %v6855_v11, 296  ;;  %v14109_v43 = vrot.slane %v204_v32, %v6854_v5  ;;  %v14112_v44 = vrot.slane %v204_v32, %v14062_v20  ;;  %v7929_v4 = vadd.s32 32, %v14044_v3 }
  0x4d   : > { %20859 = vst [vmem:[#allocation13_spill] sm:$0xff] %v14097_v38  ;;  %20860 = vst [vmem:[#allocation14_spill] sm:$0xff] %v14099_v39  ;;  %6873 = vbcast.lane.b32.xlu0 %v6855_v11, 288  ;;  %v14208_v9 = vrot.slane %v14049_v7, %v7122_v61  ;;  %v7932_v12 = vadd.s32 56, %v14044_v3  ;;  %v20893_v13 = vmov 0  ;;  %v7931_v17 = vadd.s32 48, %v14044_v3 }
  0x4e   : > { %20861 = vst [vmem:[#allocation15_spill] sm:$0xff] %v14102_v40  ;;  %20862 = vst [vmem:[#allocation16_spill] sm:$0xff] %v14104_v41  ;;  %v20700_v18 = vmov 0.0   ;;  %v7933_v5 = vadd.s32 64, %v14044_v3 }
  0x4f   : > { %20863 = vst [vmem:[#allocation17_spill] sm:$0xff] %v14107_v42  ;;  %20864 = vst [vmem:[#allocation18_spill] sm:$0xff] %v14109_v43  ;;  %v7950_v42 = vadd.s32 200, %v14044_v3 }
  0x50   : > { %20865 = vst [vmem:[#allocation19_spill] sm:$0xff] %v14112_v44  ;;  %6885 = vbcast.lane.b32.xlu1 %v6855_v11, 312 }
  0x51   : > { %6881 = vbcast.lane.b32.xlu0 %v6855_v11, 304 }
  0x54   : > { %6893 = vbcast.lane.b32.xlu1 %v6855_v11, 328 }
  0x55   : > { %6889 = vbcast.lane.b32.xlu0 %v6855_v11, 320 }
  0x58   : > { %6901 = vbcast.lane.b32.xlu1 %v6855_v11, 344 }
  0x59   : > { %6897 = vbcast.lane.b32.xlu0 %v6855_v11, 336 }
  0x5c   : > { %6909 = vbcast.lane.b32.xlu1 %v6855_v11, 360 }
  0x5d   : > { %6905 = vbcast.lane.b32.xlu0 %v6855_v11, 352 }
  0x60   : > { %6917 = vbcast.lane.b32.xlu1 %v6855_v11, 376 }
  0x61   : > { %6913 = vbcast.lane.b32.xlu0 %v6855_v11, 368  ;;  %v20890_v11 = vmov 0 }
  0x64   : > { %6928 = vbcast.lane.b32.xlu1 %v6922_v45, 264 }
  0x65   : > { %6924 = vbcast.lane.b32.xlu0 %v6922_v45, 256 }
  0x68   : > { %6936 = vbcast.lane.b32.xlu1 %v6922_v45, 280 }
  0x69   : > { %6932 = vbcast.lane.b32.xlu0 %v6922_v45, 272 }
  0x6c   : > { %6944 = vbcast.lane.b32.xlu1 %v6922_v45, 296 }
  0x6d   : > { %6940 = vbcast.lane.b32.xlu0 %v6922_v45, 288 }
  0x70   : > { %6952 = vbcast.lane.b32.xlu1 %v6922_v45, 312 }
  0x71   : > { %6948 = vbcast.lane.b32.xlu0 %v6922_v45, 304 }
  0x74   : > { %6960 = vbcast.lane.b32.xlu1 %v6922_v45, 328 }
  0x75   : > { %6956 = vbcast.lane.b32.xlu0 %v6922_v45, 320 }
  0x78   : > { %6968 = vbcast.lane.b32.xlu1 %v6922_v45, 344 }
  0x79   : > { %6964 = vbcast.lane.b32.xlu0 %v6922_v45, 336 }
  0x7c   : > { %6976 = vbcast.lane.b32.xlu1 %v6922_v45, 360 }
  0x7d   : > { %6972 = vbcast.lane.b32.xlu0 %v6922_v45, 352 }
  0x80   : > { %6984 = vbcast.lane.b32.xlu1 %v6922_v45, 376 }
  0x81   : > { %6980 = vbcast.lane.b32.xlu0 %v6922_v45, 368  ;;  %v7936_v45 = vadd.s32 88, %v14044_v3 }
  0x84   : > { %6995 = vbcast.lane.b32.xlu1 %v6989_v46, 264 }
  0x85   : > { %6991 = vbcast.lane.b32.xlu0 %v6989_v46, 256 }
  0x88   : > { %7003 = vbcast.lane.b32.xlu1 %v6989_v46, 280 }
  0x89   : > { %6999 = vbcast.lane.b32.xlu0 %v6989_v46, 272 }
  0x8c   : > { %7011 = vbcast.lane.b32.xlu1 %v6989_v46, 296 }
  0x8d   : > { %7007 = vbcast.lane.b32.xlu0 %v6989_v46, 288 }
  0x90   : > { %7019 = vbcast.lane.b32.xlu1 %v6989_v46, 312 }
  0x91   : > { %7015 = vbcast.lane.b32.xlu0 %v6989_v46, 304 }
  0x94   : > { %7027 = vbcast.lane.b32.xlu1 %v6989_v46, 328 }
  0x95   : > { %7023 = vbcast.lane.b32.xlu0 %v6989_v46, 320 }
  0x98   : > { %7035 = vbcast.lane.b32.xlu1 %v6989_v46, 344 }
  0x99   : > { %7031 = vbcast.lane.b32.xlu0 %v6989_v46, 336 }
  0x9c   : > { %7043 = vbcast.lane.b32.xlu1 %v6989_v46, 360 }
  0x9d   : > { %7039 = vbcast.lane.b32.xlu0 %v6989_v46, 352 }
  0xa0   : > { %7051 = vbcast.lane.b32.xlu1 %v6989_v46, 376 }
  0xa1   : > { %7047 = vbcast.lane.b32.xlu0 %v6989_v46, 368  ;;  %v20899_v46 = vmov 0 }
  0xa4   : > { %7062 = vbcast.lane.b32.xlu1 %v14119_v47, 264 }
  0xa5   : > { %7058 = vbcast.lane.b32.xlu0 %v14119_v47, 256 }
  0xa8   : > { %7070 = vbcast.lane.b32.xlu1 %v14119_v47, 280 }
  0xa9   : > { %7066 = vbcast.lane.b32.xlu0 %v14119_v47, 272 }
  0xac   : > { %7078 = vbcast.lane.b32.xlu1 %v14119_v47, 296 }
  0xad   : > { %7074 = vbcast.lane.b32.xlu0 %v14119_v47, 288 }
  0xb0   : > { %7086 = vbcast.lane.b32.xlu1 %v14119_v47, 312 }
  0xb1   : > { %7082 = vbcast.lane.b32.xlu0 %v14119_v47, 304 }
  0xb4   : > { %7094 = vbcast.lane.b32.xlu1 %v14119_v47, 328 }
  0xb5   : > { %7090 = vbcast.lane.b32.xlu0 %v14119_v47, 320 }
  0xb6   : > { %v6866_v51 = vpop.permute.xlu1 %6865  ;;  %v6858_v52 = vpop.permute.xlu0 %6857 }
  0xb7   : > { %vm8044_vm1 = vcmp.lt.f32.partialorder %v6866_v51, %v14074_v27  ;;  %vm8556_vm2 = vcmp.eq.f32.partialorder %v6866_v51, %v14074_v27  ;;  %vm8045_vm3 = vcmp.lt.f32.partialorder %v6866_v51, %v14077_v28  ;;  %vm8557_vm4 = vcmp.eq.f32.partialorder %v6866_v51, %v14077_v28 }
  0xb8   : > { %vm9260_vm5 = vmand %vm8556_vm2, %vm14136_vm0  ;;  %vm8552_vm7 = vcmp.eq.f32.partialorder %v6858_v52, %v14074_v27  ;;  %7102 = vbcast.lane.b32.xlu1 %v14119_v47, 344  ;;  %vm8040_vm9 = vcmp.lt.f32.partialorder %v6858_v52, %v14074_v27  ;;  %vm8041_vm10 = vcmp.lt.f32.partialorder %v6858_v52, %v14077_v28  ;;  %vm8553_vm11 = vcmp.eq.f32.partialorder %v6858_v52, %v14077_v28 }
  0xb9   : > { %vm14155_vm8 = vmor %vm8044_vm1, %vm9260_vm5  ;;  %7098 = vbcast.lane.b32.xlu0 %v14119_v47, 336  ;;  %vm14229_vm0 = vcmp.lt.s32.totalorder %v7929_v4, %v14131_v49 }
  0xba   : > { %v6870_v56 = vpop.permute.xlu1 %6869  ;;  %vm14164_vm12 = vmor %vm8045_vm3, %vm8557_vm4  ;;  %v20894_v13 = vsel %vm14229_vm0, 4294967295, %v20893_v13  ;;  %v13205_v31 = vsel %vm14155_vm8, 1.0, %v20700_v18 }
  0xbb   : > { %vm9256_vm13 = vmand %vm8552_vm7, %vm14149_vm6  ;;  %vm8558_vm15 = vcmp.eq.f32.partialorder %v6870_v56, %v14074_v27  ;;  %v6862_v60 = vpop.permute.xlu0 %6861  ;;  %vm8046_vm2 = vcmp.lt.f32.partialorder %v6870_v56, %v14074_v27  ;;  %vm8047_vm4 = vcmp.lt.f32.partialorder %v6870_v56, %v14077_v28  ;;  %vm8559_vm5 = vcmp.eq.f32.partialorder %v6870_v56, %v14077_v28 }
  0xbc   : > { %vm14177_vm1 = vmor %vm8040_vm9, %vm9256_vm13  ;;  %7110 = vbcast.lane.b32.xlu1 %v14119_v47, 360  ;;  %vm14194_vm9 = vcmp.lt.s32.totalorder %v7926_v57, %v14131_v49  ;;  %vm8042_vm13 = vcmp.lt.f32.partialorder %v6862_v60, %v14074_v27  ;;  %v7934_v56 = vadd.s32 72, %v14044_v3 }
  0xbd   : > { %vm14183_vm3 = vmor %vm8041_vm10, %vm8553_vm11  ;;  %7106 = vbcast.lane.b32.xlu0 %v14119_v47, 352  ;;  %v20884_v1 = vsel %vm14194_vm9, 4294967295, %v20883_v1  ;;  %vm8554_vm10 = vcmp.eq.f32.partialorder %v6862_v60, %v14074_v27  ;;  %v13201_v19 = vsel %vm14177_vm1, 1.0, %v20700_v18 }
  0xbe   : > { %vm9262_vm7 = vmand %vm8558_vm15, %vm14171_vm14  ;;  %20885 = vst [vmem:[#allocation23_spill] sm:$0xff] %v20884_v1  ;;  %v6878_v2 = vpop.permute.xlu1 %6877  ;;  %vm8555_vm14 = vcmp.eq.f32.partialorder %v6862_v60, %v14077_v28  ;;  %v13202_v24 = vsel %vm14183_vm3, 1.0, %v20700_v18 }
  0xbf   : > { %vm14200_vm11 = vmor %vm8046_vm2, %vm9262_vm7  ;;  %v6874_v6 = vpop.permute.xlu0 %6873  ;;  %vm14220_vm7 = vcmp.lt.s32.totalorder %v7930_v0, %v14131_v49  ;;  %vm20896_vm1 = vcmp.eq.f32.partialorder %v6878_v2, %v14074_v27 }
  0xc0   : > { %vm14210_vm15 = vmor %vm8047_vm4, %vm8559_vm5  ;;  %7118 = vbcast.lane.b32.xlu1 %v14119_v47, 376  ;;  %v20891_v11 = vsel %vm14220_vm7, 4294967295, %v20890_v11  ;;  %vm8050_vm5 = vcmp.lt.f32.partialorder %v6878_v2, %v14074_v27  ;;  %v13207_v53 = vsel %vm14200_vm11, 1.0, %v20700_v18 }
  0xc1   : > { %vm9258_vm2 = vmand %vm8554_vm10, %vm14194_vm9  ;;  %20892 = vst [vmem:[#allocation24_spill] sm:$0xff] %v20891_v11  ;;  %7114 = vbcast.lane.b32.xlu0 %v14119_v47, 368  ;;  %vm20895_vm10 = vcmp.lt.f32.partialorder %v6862_v60, %v14077_v28  ;;  %v13206_v47 = vsel %vm14164_vm12, 1.0, %v20700_v18  ;;  %v13208_v58 = vsel %vm14210_vm15, 1.0, %v20700_v18 }
  0xc2   : > { %vm9770_vm4 = vmor %vm8042_vm13, %vm9258_vm2  ;;  %v6886_v16 = vpop.permute.xlu1 %6885  ;;  %vm8051_vm13 = vcmp.lt.f32.partialorder %v6878_v2, %v14077_v28  ;;  %vm8563_vm2 = vcmp.eq.f32.partialorder %v6878_v2, %v14077_v28 }
  0xc3   : > { %vm9771_vm6 = vmor %vm20895_vm10, %vm8555_vm14  ;;  %v13203_v20 = vsel %vm9770_vm4, 1.0, %v20700_v18  ;;  %v14242_v23 = vpop.permute.xlu0 %6881  ;;  %vm8560_vm4 = vcmp.eq.f32.partialorder %v6874_v6, %v14074_v27  ;;  %vm14265_vm10 = vcmp.lt.s32.totalorder %v7932_v12, %v14131_v49  ;;  %vm8054_vm11 = vcmp.lt.f32.partialorder %v6886_v16, %v14074_v27 }
  0xc4   : > { %v13204_v25 = vsel %vm9771_vm6, 1.0, %v20700_v18  ;;  %v11304_v26 = vadd.f32 %v13203_v20, %v13201_v19  ;;  %vm9266_vm14 = vmand %vm20896_vm1, %vm14220_vm7  ;;  %7129 = vbcast.lane.b32.xlu1 %v14208_v9, 264  ;;  %vm8048_vm6 = vcmp.lt.f32.partialorder %v6874_v6, %v14074_v27  ;;  %v20900_v46 = vsel %vm14265_vm10, 4294967295, %v20899_v46 }
  0xc5   : > { %v11341_v32 = vadd.f32 %v13204_v25, %v13202_v24  ;;  %vm14259_vm3 = vmor %vm8050_vm5, %vm9266_vm14  ;;  %20901 = vst [vmem:[#allocation25_spill] sm:$0xff] %v20900_v46  ;;  %7125 = vbcast.lane.b32.xlu0 %v14208_v9, 256  ;;  %vm8049_vm5 = vcmp.lt.f32.partialorder %v6874_v6, %v14077_v28  ;;  %vm8561_vm1 = vcmp.eq.f32.partialorder %v6874_v6, %v14077_v28  ;;  %v7937_v24 = vadd.s32 96, %v14044_v3 }
  0xc6   : > { %v11305_v48 = vadd.f32 %v13205_v31, %v11304_v26  ;;  %vm14277_vm8 = vmor %vm8051_vm13, %vm8563_vm2  ;;  %v14283_v52 = vpop.permute.xlu1 %6893  ;;  %vm8566_vm13 = vcmp.eq.f32.partialorder %v6886_v16, %v14074_v27  ;;  %vm14303_vm14 = vcmp.lt.s32.totalorder %v7931_v17, %v14131_v49  ;;  %vm8055_vm15 = vcmp.lt.f32.partialorder %v6886_v16, %v14077_v28 }
  0xc7   : > { %v11342_v55 = vadd.f32 %v13206_v47, %v11341_v32  ;;  %vm9264_vm12 = vmand %vm8560_vm4, %vm14229_vm0  ;;  %v14294_v57 = vpop.permute.xlu0 %6889  ;;  %v20905_v62 = vsel %vm14303_vm14, 4294967295, %v20904_v62  ;;  %v13211_v10 = vsel %vm14259_vm3, 1.0, %v20700_v18  ;;  %v13212_v20 = vsel %vm14277_vm8, 1.0, %v20700_v18 }
  0xc8   : > { %vm9776_vm2 = vmor %vm8048_vm6, %vm9264_vm12  ;;  %v11306_v60 = vadd.f32 %v13207_v53, %v11305_v48  ;;  %20906 = vst [vmem:[#allocation26_spill] sm:$0xff] %v20905_v62  ;;  %7137 = vbcast.lane.b32.xlu1 %v14208_v9, 280  ;;  %vm8567_vm6 = vcmp.eq.f32.partialorder %v6886_v16, %v14077_v28  ;;  %vm8053_vm3 = vcmp.lt.f32.partialorder %v14242_v23, %v14077_v28  ;;  %v20911_v16 = vmov 0 }
  0xc9   : > { %vm9777_vm4 = vmor %vm8049_vm5, %vm8561_vm1  ;;  %v13209_v63 = vsel %vm9776_vm2, 1.0, %v20700_v18  ;;  %v11343_v0 = vadd.f32 %v13208_v58, %v11342_v55  ;;  %7133 = vbcast.lane.b32.xlu0 %v14208_v9, 272  ;;  %vm8564_vm5 = vcmp.eq.f32.partialorder %v14242_v23, %v14074_v27  ;;  %vm14354_vm8 = vcmp.lt.s32.totalorder %v7934_v56, %v14131_v49 }
  0xca   : > { %v13210_v2 = vsel %vm9777_vm4, 1.0, %v20700_v18  ;;  %v11307_v4 = vadd.f32 %v13209_v63, %v11306_v60  ;;  %vm9270_vm12 = vmand %vm8566_vm13, %vm14265_vm10  ;;  %v14322_v6 = vpop.permute.xlu1 %6901  ;;  %vm8052_vm13 = vcmp.lt.f32.partialorder %v14242_v23, %v14074_v27  ;;  %v20912_v16 = vsel %vm14354_vm8, 4294967295, %v20911_v16 }
  0xcb   : > { %v11344_v12 = vadd.f32 %v13210_v2, %v11343_v0  ;;  %vm14329_vm1 = vmor %vm8054_vm11, %vm9270_vm12  ;;  %v14335_v19 = vpop.permute.xlu0 %6897  ;;  %vm8565_vm11 = vcmp.eq.f32.partialorder %v14242_v23, %v14077_v28  ;;  %20913 = vst [vmem:[#allocation27_spill] sm:$0xff] %v20912_v16  ;;  %vm8058_vm12 = vcmp.lt.f32.partialorder %v14283_v52, %v14074_v27  ;;  %vm14364_vm10 = vcmp.lt.s32.totalorder %v7933_v5, %v14131_v49 }
  0xcc   : > { %vm14342_vm2 = vmor %vm8055_vm15, %vm8567_vm6  ;;  %v11308_v25 = vadd.f32 %v13211_v10, %v11307_v4  ;;  %7145 = vbcast.lane.b32.xlu1 %v14208_v9, 296  ;;  %vm8570_vm15 = vcmp.eq.f32.partialorder %v14283_v52, %v14074_v27  ;;  %v20914_v23 = vmov 0  ;;  %vm8571_vm0 = vcmp.eq.f32.partialorder %v14283_v52, %v14077_v28 }
  0xcd   : > { %vm9268_vm4 = vmand %vm8564_vm5, %vm14303_vm14  ;;  %v11345_v26 = vadd.f32 %v13212_v20, %v11344_v12  ;;  %7141 = vbcast.lane.b32.xlu0 %v14208_v9, 288  ;;  %v20915_v23 = vsel %vm14364_vm10, 4294967295, %v20914_v23  ;;  %vm8059_vm14 = vcmp.lt.f32.partialorder %v14283_v52, %v14077_v28  ;;  %v7935_v53 = vadd.s32 80, %v14044_v3 }
  0xce   : > { %vm9780_vm6 = vmor %vm8052_vm13, %vm9268_vm4  ;;  %20916 = vst [vmem:[#allocation28_spill] sm:$0xff] %v20915_v23  ;;  %v14368_v31 = vpop.permute.xlu1 %6909  ;;  %v13215_v55 = vsel %vm14329_vm1, 1.0, %v20700_v18  ;;  %vm8056_vm4 = vcmp.lt.f32.partialorder %v14294_v57, %v14074_v27  ;;  %v13216_v60 = vsel %vm14342_vm2, 1.0, %v20700_v18  ;;  %v20921_v52 = vmov 0 }
  0xcf   : > { %vm9781_vm5 = vmor %vm8053_vm3, %vm8565_vm11  ;;  %v13213_v32 = vsel %vm9780_vm6, 1.0, %v20700_v18  ;;  %v14376_v47 = vpop.permute.xlu0 %6905  ;;  %vm8568_vm3 = vcmp.eq.f32.partialorder %v14294_v57, %v14074_v27  ;;  %vm8569_vm6 = vcmp.eq.f32.partialorder %v14294_v57, %v14077_v28  ;;  %v7938_v12 = vadd.s32 104, %v14044_v3 }
  0xd0   : > { %v13214_v48 = vsel %vm9781_vm5, 1.0, %v20700_v18  ;;  %v11309_v51 = vadd.f32 %v13213_v32, %v11308_v25  ;;  %vm9274_vm13 = vmand %vm8570_vm15, %vm14354_vm8  ;;  %7153 = vbcast.lane.b32.xlu1 %v14208_v9, 312  ;;  %vm8057_vm15 = vcmp.lt.f32.partialorder %v14294_v57, %v14077_v28  ;;  %vm8062_vm5 = vcmp.lt.f32.partialorder %v14322_v6, %v14074_v27 }
  0xd1   : > { %v11346_v56 = vadd.f32 %v13214_v48, %v11345_v26  ;;  %vm14391_vm11 = vmor %vm8058_vm12, %vm9274_vm13  ;;  %7149 = vbcast.lane.b32.xlu0 %v14208_v9, 304  ;;  %vm14420_vm12 = vcmp.lt.s32.totalorder %v7936_v45, %v14131_v49  ;;  %vm14431_vm13 = vcmp.lt.s32.totalorder %v7935_v53, %v14131_v49  ;;  %v20924_v57 = vmov 0 }
  0xd2   : > { %vm14407_vm1 = vmor %vm8059_vm14, %vm8571_vm0  ;;  %v11310_v0 = vadd.f32 %v13215_v55, %v11309_v51  ;;  %v14415_v2 = vpop.permute.xlu1 %6917  ;;  %v20922_v52 = vsel %vm14420_vm12, 4294967295, %v20921_v52  ;;  %vm8574_vm0 = vcmp.eq.f32.partialorder %v14322_v6, %v14074_v27  ;;  %v20925_v57 = vsel %vm14431_vm13, 4294967295, %v20924_v57 }
  0xd3   : > { %vm9272_vm2 = vmand %vm8568_vm3, %vm14364_vm10  ;;  %v11347_v4 = vadd.f32 %v13216_v60, %v11346_v56  ;;  %20923 = vst [vmem:[#allocation29_spill] sm:$0xff] %v20922_v52  ;;  %v14426_v5 = vpop.permute.xlu0 %6913  ;;  %vm8063_vm10 = vcmp.lt.f32.partialorder %v14322_v6, %v14077_v28  ;;  %vm8575_vm8 = vcmp.eq.f32.partialorder %v14322_v6, %v14077_v28  ;;  %v20618_v26 = vsub.s32 3, %v14044_v3 }
  0xd4   : > { %vm9784_vm14 = vmor %vm8056_vm4, %vm9272_vm2  ;;  %20926 = vst [vmem:[#allocation30_spill] sm:$0xff] %v20925_v57  ;;  %7161 = vbcast.lane.b32.xlu1 %v14208_v9, 328  ;;  %v13219_v32 = vsel %vm14391_vm11, 1.0, %v20700_v18  ;;  %vm8060_vm2 = vcmp.lt.f32.partialorder %v14335_v19, %v14074_v27  ;;  %v13220_v53 = vsel %vm14407_vm1, 1.0, %v20700_v18  ;;  %v14487_v58 = vrot.slane %v14052_v8, %v7122_v61 }
  0xd5   : > { %vm9785_vm3 = vmor %vm8057_vm15, %vm8569_vm6  ;;  %v13217_v10 = vsel %vm9784_vm14, 1.0, %v20700_v18  ;;  %7157 = vbcast.lane.b32.xlu0 %v14208_v9, 320  ;;  %vm8572_vm15 = vcmp.eq.f32.partialorder %v14335_v19, %v14074_v27  ;;  %vm8573_vm14 = vcmp.eq.f32.partialorder %v14335_v19, %v14077_v28  ;;  %v20931_v60 = vmov 0 }
  0xd6   : > { %v13218_v17 = vsel %vm9785_vm3, 1.0, %v20700_v18  ;;  %v11311_v20 = vadd.f32 %v13217_v10, %v11310_v0  ;;  %vm9278_vm4 = vmand %vm8574_vm0, %vm14420_vm12  ;;  %v14449_v25 = vpop.permute.xlu1 %6928  ;;  %vm8061_vm0 = vcmp.lt.f32.partialorder %v14335_v19, %v14077_v28  ;;  %vm8578_vm1 = vcmp.eq.f32.partialorder %v14368_v31, %v14074_v27 }
  0xd7   : > { %v11348_v45 = vadd.f32 %v13218_v17, %v11347_v4  ;;  %vm14458_vm6 = vmor %vm8062_vm5, %vm9278_vm4  ;;  %v14464_v51 = vpop.permute.xlu0 %6924  ;;  %vm8066_vm3 = vcmp.lt.f32.partialorder %v14368_v31, %v14074_v27  ;;  %vm14505_vm4 = vcmp.lt.s32.totalorder %v7937_v24, %v14131_v49  ;;  %v20934_v8 = vmov 0 }
  0xd8   : > { %vm14475_vm11 = vmor %vm8063_vm10, %vm8575_vm8  ;;  %v11312_v56 = vadd.f32 %v13219_v32, %v11311_v20  ;;  %7169 = vbcast.lane.b32.xlu1 %v14208_v9, 344  ;;  %vm14495_vm8 = vcmp.lt.s32.totalorder %v7938_v12, %v14131_v49  ;;  %v20935_v8 = vsel %vm14505_vm4, 4294967295, %v20934_v8  ;;  %v7940_v61 = vadd.s32 120, %v14044_v3 }
  0xd9   : > { %vm9276_vm10 = vmand %vm8572_vm15, %vm14431_vm13  ;;  %v11349_v6 = vadd.f32 %v13220_v53, %v11348_v45  ;;  %v20932_v60 = vsel %vm14495_vm8, 4294967295, %v20931_v60  ;;  %7165 = vbcast.lane.b32.xlu0 %v14208_v9, 336  ;;  %20936 = vst [vmem:[#allocation32_spill] sm:$0xff] %v20935_v8  ;;  %v7939_v63 = vadd.s32 112, %v14044_v3  ;;  %v7942_v10 = vadd.s32 136, %v14044_v3 }
  0xda   : > { %20933 = vst [vmem:[#allocation31_spill] sm:$0xff] %v20932_v60  ;;  %vm9788_vm5 = vmor %vm8060_vm2, %vm9276_vm10  ;;  %v14511_v0 = vpop.permute.xlu1 %6936  ;;  %vm8067_vm2 = vcmp.lt.f32.partialorder %v14368_v31, %v14077_v28  ;;  %vm8579_vm10 = vcmp.eq.f32.partialorder %v14368_v31, %v14077_v28  ;;  %v14536_v19 = vadd.s32 128, %v14131_v49  ;;  %v14542_v24 = vrot.slane %v14049_v7, %v20618_v26 }
  0xdb   : > { %vm9789_vm15 = vmor %vm8061_vm0, %vm8573_vm14  ;;  %v13221_v4 = vsel %vm9788_vm5, 1.0, %v20700_v18  ;;  %v14525_v12 = vpop.permute.xlu0 %6932  ;;  %vm8576_vm14 = vcmp.eq.f32.partialorder %v14376_v47, %v14074_v27  ;;  %v13223_v32 = vsel %vm14458_vm6, 1.0, %v20700_v18  ;;  %vm8064_vm5 = vcmp.lt.f32.partialorder %v14376_v47, %v14074_v27 }
  0xdc   : > { %v13222_v17 = vsel %vm9789_vm15, 1.0, %v20700_v18  ;;  %v11313_v20 = vadd.f32 %v13221_v4, %v11312_v56  ;;  %vm9282_vm0 = vmand %vm8578_vm1, %vm14495_vm8  ;;  %7177 = vbcast.lane.b32.xlu1 %v14208_v9, 360  ;;  %v13224_v7 = vsel %vm14475_vm11, 1.0, %v20700_v18  ;;  %v20941_v55 = vmov 0 }
  0xdd   : > { %v11350_v45 = vadd.f32 %v13222_v17, %v11349_v6  ;;  %vm14550_vm1 = vmor %vm8066_vm3, %vm9282_vm0  ;;  %7173 = vbcast.lane.b32.xlu0 %v14208_v9, 352  ;;  %vm14589_vm0 = vcmp.lt.s32.totalorder %v7939_v63, %v14131_v49  ;;  %v20944_v4 = vmov 0  ;;  %vm14598_vm15 = vcmp.lt.s32.totalorder %v7942_v10, %v14536_v19 }
  0xde   : > { %vm14566_vm6 = vmor %vm8067_vm2, %vm8579_vm10  ;;  %v11314_v56 = vadd.f32 %v13223_v32, %v11313_v20  ;;  %v14574_v6 = vpop.permute.xlu1 %6944  ;;  %vm14582_vm2 = vcmp.lt.s32.totalorder %v7940_v61, %v14131_v49  ;;  %v20945_v4 = vsel %vm14589_vm0, 4294967295, %v20944_v4  ;;  %v20947_v61 = vmov 0 }
  0xdf   : > { %vm9280_vm11 = vmand %vm8576_vm14, %vm14505_vm4  ;;  %v11351_v31 = vadd.f32 %v13224_v7, %v11350_v45  ;;  %v20942_v55 = vsel %vm14582_vm2, 4294967295, %v20941_v55  ;;  %20946 = vst [vmem:[#allocation34_spill] sm:$0xff] %v20945_v4  ;;  %v14593_v17 = vpop.permute.xlu0 %6940  ;;  %v20948_v61 = vsel %vm14598_vm15, 4294967295, %v20947_v61  ;;  %v7941_v20 = vadd.s32 128, %v14044_v3 }
  0xe0   : > { %20943 = vst [vmem:[#allocation33_spill] sm:$0xff] %v20942_v55  ;;  %vm9792_vm3 = vmor %vm8064_vm5, %vm9280_vm11  ;;  %v7944_v32 = vadd.s32 152, %v14044_v3  ;;  %7185 = vbcast.lane.b32.xlu1 %v14208_v9, 376  ;;  %vm20950_vm10 = vcmp.eq.f32.partialorder %v14376_v47, %v14077_v28  ;;  %vm20951_vm5 = vcmp.lt.f32.partialorder %v14376_v47, %v14077_v28  ;;  %vm8583_vm4 = vcmp.eq.f32.partialorder %v14415_v2, %v14077_v28 }
  0xe1   : > { %20949 = vst [vmem:[#allocation35_spill] sm:$0xff] %v20948_v61  ;;  %vm9793_vm11 = vmor %vm20951_vm5, %vm20950_vm10  ;;  %v13225_v49 = vsel %vm9792_vm3, 1.0, %v20700_v18  ;;  %v7943_v63 = vadd.s32 144, %v14044_v3  ;;  %7181 = vbcast.lane.b32.xlu0 %v14208_v9, 368  ;;  %vm20952_vm10 = vcmp.eq.f32.partialorder %v14415_v2, %v14074_v27  ;;  %vm8580_vm3 = vcmp.eq.f32.partialorder %v14426_v5, %v14074_v27 }
  0xe2   : > { %v13226_v10 = vsel %vm9793_vm11, 1.0, %v20700_v18  ;;  %v11315_v45 = vadd.f32 %v13225_v49, %v11314_v56  ;;  %vm9286_vm5 = vmand %vm20952_vm10, %vm14582_vm2  ;;  %v7946_v47 = vadd.s32 168, %v14044_v3  ;;  %v14627_v7 = vpop.permute.xlu1 %6952  ;;  %v13227_v9 = vsel %vm14550_vm1, 1.0, %v20700_v18 }
  0xe3   : > { %v11352_v15 = vadd.f32 %v13226_v10, %v11351_v31  ;;  %vm20953_vm11 = vcmp.lt.f32.partialorder %v14415_v2, %v14074_v27  ;;  %v7945_v49 = vadd.s32 160, %v14044_v3  ;;  %v14642_v14 = vpop.permute.xlu0 %6948  ;;  %v13228_v53 = vsel %vm14566_vm6, 1.0, %v20700_v18  ;;  %vm9284_vm6 = vmand %vm8580_vm3, %vm14589_vm0 }
  0xe4   : > { %vm14635_vm14 = vmor %vm20953_vm11, %vm9286_vm5  ;;  %vm20956_vm1 = vcmp.lt.f32.partialorder %v14415_v2, %v14077_v28  ;;  %v11316_v10 = vadd.f32 %v13227_v9, %v11315_v45  ;;  %7196 = vbcast.lane.b32.xlu1 %v14487_v58, 264  ;;  %v20959_v48 = vmov 0  ;;  %v7948_v26 = vadd.s32 184, %v14044_v3 }
  0xe5   : > { %vm14653_vm5 = vmor %vm20956_vm1, %vm8583_vm4  ;;  %v11353_v2 = vadd.f32 %v13228_v53, %v11352_v15  ;;  %vm14670_vm1 = vcmp.lt.s32.totalorder %v7941_v20, %v14536_v19  ;;  %7192 = vbcast.lane.b32.xlu0 %v14487_v58, 256  ;;  %vm20962_vm11 = vcmp.lt.f32.partialorder %v14426_v5, %v14074_v27  ;;  %vm14682_vm0 = vcmp.lt.s32.totalorder %v7944_v32, %v14536_v19 }
  0xe6   : > { %v20960_v48 = vsel %vm14670_vm1, 4294967295, %v20959_v48  ;;  %vm9796_vm10 = vmor %vm20962_vm11, %vm9284_vm6  ;;  %v20963_v15 = vmov 0  ;;  %vm14687_vm4 = vcmp.lt.s32.totalorder %v7943_v63, %v14536_v19  ;;  %v20966_v20 = vmov 0  ;;  %v14696_v9 = vpop.permute.xlu1 %6960 }
  0xe7   : > { %20961 = vst [vmem:[#allocation36_spill] sm:$0xff] %v20960_v48  ;;  %v20964_v15 = vsel %vm14682_vm0, 4294967295, %v20963_v15  ;;  %v20967_v20 = vsel %vm14687_vm4, 4294967295, %v20966_v20  ;;  %vm14692_vm2 = vcmp.lt.s32.totalorder %v7946_v47, %v14536_v19  ;;  %v20969_v45 = vmov 0  ;;  %v14713_v53 = vpop.permute.xlu0 %6956 }
  0xe8   : > { %20965 = vst [vmem:[#allocation37_spill] sm:$0xff] %v20964_v15  ;;  %20968 = vst [vmem:[#allocation38_spill] sm:$0xff] %v20967_v20  ;;  %v20970_v45 = vsel %vm14692_vm2, 4294967295, %v20969_v45  ;;  %vm20972_vm11 = vcmp.eq.f32.partialorder %v14426_v5, %v14077_v28  ;;  %vm20973_vm6 = vcmp.lt.f32.partialorder %v14426_v5, %v14077_v28  ;;  %v13229_v32 = vsel %vm9796_vm10, 1.0, %v20700_v18  ;;  %7204 = vbcast.lane.b32.xlu1 %v14487_v58, 280 }
  0xe9   : > { %20971 = vst [vmem:[#allocation39_spill] sm:$0xff] %v20970_v45  ;;  %vm9797_vm3 = vmor %vm20973_vm6, %vm20972_vm11  ;;  %vm14708_vm13 = vcmp.lt.s32.totalorder %v7945_v49, %v14536_v19  ;;  %v20974_v63 = vmov 0  ;;  %v7947_v47 = vadd.s32 176, %v14044_v3  ;;  %v11317_v43 = vadd.f32 %v13229_v32, %v11316_v10  ;;  %7200 = vbcast.lane.b32.xlu0 %v14487_v58, 272 }
  0xea   : > { %v20975_v63 = vsel %vm14708_vm13, 4294967295, %v20974_v63  ;;  %v13230_v44 = vsel %vm9797_vm3, 1.0, %v20700_v18  ;;  %vm20977_vm10 = vcmp.eq.f32.partialorder %v14449_v25, %v14077_v28  ;;  %vm8073_vm8 = vcmp.lt.f32.partialorder %v14464_v51, %v14077_v28  ;;  %v14757_v56 = vpop.permute.xlu1 %6968 }
  0xeb   : > { %20976 = vst [vmem:[#allocation40_spill] sm:$0xff] %v20975_v63  ;;  %vm9291_vm11 = vmand %vm20977_vm10, %vm14598_vm15  ;;  %v13231_v5 = vsel %vm14635_vm14, 1.0, %v20700_v18  ;;  %v11354_v49 = vadd.f32 %v13230_v44, %v11353_v2  ;;  %vm20978_vm3 = vcmp.lt.f32.partialorder %v14449_v25, %v14077_v28  ;;  %vm14739_vm6 = vcmp.lt.s32.totalorder %v7948_v26, %v14536_v19  ;;  %v14774_v41 = vpop.permute.xlu0 %6964 }
  0xec   : > { %vm14732_vm12 = vmor %vm20978_vm3, %vm9291_vm11  ;;  %v20981_v32 = vmov 0  ;;  %v13232_v44 = vsel %vm14653_vm5, 1.0, %v20700_v18  ;;  %vm20984_vm11 = vcmp.eq.f32.partialorder %v14464_v51, %v14077_v28  ;;  %v11318_v26 = vadd.f32 %v13231_v5, %v11317_v43  ;;  %7212 = vbcast.lane.b32.xlu1 %v14487_v58, 296 }
  0xed   : > { %v20982_v32 = vsel %vm14739_vm6, 4294967295, %v20981_v32  ;;  %vm9289_vm3 = vmand %vm20984_vm11, %vm14670_vm1  ;;  %vm20985_vm5 = vcmp.lt.f32.partialorder %v14464_v51, %v14074_v27  ;;  %v11355_v2 = vadd.f32 %v13232_v44, %v11354_v49  ;;  %vm14769_vm11 = vcmp.lt.s32.totalorder %v7947_v47, %v14536_v19  ;;  %7208 = vbcast.lane.b32.xlu0 %v14487_v58, 288 }
  0xee   : > { %20983 = vst [vmem:[#allocation41_spill] sm:$0xff] %v20982_v32  ;;  %vm9801_vm15 = vmor %vm8073_vm8, %vm9289_vm3  ;;  %v13233_v31 = vsel %vm20985_vm5, 1.0, %v20700_v18  ;;  %v20986_v43 = vmov 0  ;;  %v7949_v5 = vadd.s32 192, %v14044_v3  ;;  %vm20989_vm8 = vcmp.eq.f32.partialorder %v14511_v0, %v14077_v28 }
  0xef   : > { %v20987_v43 = vsel %vm14769_vm11, 4294967295, %v20986_v43  ;;  %v13234_v22 = vsel %vm9801_vm15, 1.0, %v20700_v18  ;;  %v11319_v21 = vadd.f32 %v13233_v31, %v11318_v26  ;;  %vm9295_vm3 = vmand %vm20989_vm8, %vm14682_vm0  ;;  %vm8077_vm14 = vcmp.lt.f32.partialorder %v14525_v12, %v14077_v28 }
  0xf0   : > { %20988 = vst [vmem:[#allocation42_spill] sm:$0xff] %v20987_v43  ;;  %vm20990_vm10 = vcmp.lt.f32.partialorder %v14449_v25, %v14074_v27  ;;  %v11356_v47 = vadd.f32 %v13234_v22, %v11355_v2  ;;  %vm20991_vm15 = vcmp.lt.f32.partialorder %v14511_v0, %v14077_v28  ;;  %vm14801_vm5 = vcmp.lt.s32.totalorder %v7950_v42, %v14536_v19  ;;  %v14819_v25 = vpop.permute.xlu1 %6976 }
  0xf1   : > { %v13235_v51 = vsel %vm20990_vm10, 1.0, %v20700_v18  ;;  %vm14794_vm1 = vmor %vm20991_vm15, %vm9295_vm3  ;;  %v20994_v44 = vmov 0  ;;  %v7952_v26 = vadd.s32 216, %v14044_v3  ;;  %v13236_v22 = vsel %vm14732_vm12, 1.0, %v20700_v18  ;;  %7220 = vbcast.lane.b32.xlu1 %v14487_v58, 312  ;;  %7216 = vbcast.lane.b32.xlu0 %v14487_v58, 304 }
  0xf2   : > { %v20995_v44 = vsel %vm14801_vm5, 4294967295, %v20994_v44  ;;  %vm20997_vm3 = vcmp.eq.f32.partialorder %v14525_v12, %v14077_v28  ;;  %v11320_v42 = vadd.f32 %v13235_v51, %v11319_v21  ;;  %vm20998_vm12 = vcmp.lt.f32.partialorder %v14525_v12, %v14074_v27  ;;  %v14836_v51 = vpop.permute.xlu0 %6972 }
  0xf3   : > { %20996 = vst [vmem:[#allocation43_spill] sm:$0xff] %v20995_v44  ;;  %vm9293_vm15 = vmand %vm20997_vm3, %vm14687_vm4  ;;  %v13237_v10 = vsel %vm20998_vm12, 1.0, %v20700_v18  ;;  %v11357_v31 = vadd.f32 %v13236_v22, %v11356_v47  ;;  %vm14831_vm3 = vcmp.lt.s32.totalorder %v7949_v5, %v14536_v19  ;;  %v20999_v21 = vmov 0 }
  0xf4   : > { %vm9805_vm0 = vmor %vm8077_vm14, %vm9293_vm15  ;;  %v21000_v21 = vsel %vm14831_vm3, 4294967295, %v20999_v21  ;;  %v7951_v2 = vadd.s32 208, %v14044_v3  ;;  %v11321_v37 = vadd.f32 %v13237_v10, %v11320_v42  ;;  %vm21002_vm14 = vcmp.eq.f32.partialorder %v14574_v6, %v14077_v28 }
  0xf5   : > { %21001 = vst [vmem:[#allocation44_spill] sm:$0xff] %v21000_v21  ;;  %v13238_v38 = vsel %vm9805_vm0, 1.0, %v20700_v18  ;;  %vm9299_vm15 = vmand %vm21002_vm14, %vm14692_vm2  ;;  %vm8081_vm10 = vcmp.lt.f32.partialorder %v14593_v17, %v14077_v28  ;;  %vm21003_vm8 = vcmp.lt.f32.partialorder %v14511_v0, %v14074_v27  ;;  %vm21004_vm0 = vcmp.lt.f32.partialorder %v14574_v6, %v14077_v28  ;;  %7228 = vbcast.lane.b32.xlu1 %v14487_v58, 328 }
  0xf6   : > { %v13239_v12 = vsel %vm21003_vm8, 1.0, %v20700_v18  ;;  %v11358_v5 = vadd.f32 %v13238_v38, %v11357_v31  ;;  %vm14856_vm4 = vmor %vm21004_vm0, %vm9299_vm15  ;;  %vm14863_vm12 = vcmp.lt.s32.totalorder %v7952_v26, %v14536_v19  ;;  %v21007_v22 = vmov 0  ;;  %v14880_v26 = vpop.permute.xlu1 %6984  ;;  %7224 = vbcast.lane.b32.xlu0 %v14487_v58, 320 }
  0xf7   : > { %v21008_v22 = vsel %vm14863_vm12, 4294967295, %v21007_v22  ;;  %v13240_v38 = vsel %vm14794_vm1, 1.0, %v20700_v18  ;;  %vm21010_vm15 = vcmp.eq.f32.partialorder %v14593_v17, %v14077_v28  ;;  %v11322_v0 = vadd.f32 %v13239_v12, %v11321_v37  ;;  %v14893_v37 = vpop.permute.xlu0 %6980 }
  0xf8   : > { %21009 = vst [vmem:[#allocation45_spill] sm:$0xff] %v21008_v22  ;;  %vm9297_vm0 = vmand %vm21010_vm15, %vm14708_vm13  ;;  %vm8087_vm14 = vcmp.lt.f32.partialorder %v14627_v7, %v14077_v28  ;;  %vm21011_vm1 = vcmp.lt.f32.partialorder %v14593_v17, %v14074_v27  ;;  %v11359_v42 = vadd.f32 %v13240_v38, %v11358_v5  ;;  %vm14889_vm7 = vcmp.lt.s32.totalorder %v7951_v2, %v14536_v19 }
  0xf9   : > { %vm9809_vm2 = vmor %vm8081_vm10, %vm9297_vm0  ;;  %v13241_v49 = vsel %vm21011_vm1, 1.0, %v20700_v18  ;;  %v21012_v10 = vmov 0  ;;  %vm21015_vm10 = vcmp.eq.f32.partialorder %v14627_v7, %v14077_v28  ;;  %vm8085_vm1 = vcmp.lt.f32.partialorder %v14642_v14, %v14077_v28  ;;  %7236 = vbcast.lane.b32.xlu1 %v14487_v58, 344 }
  0xfa   : > { %v21013_v10 = vsel %vm14889_vm7, 4294967295, %v21012_v10  ;;  %v13242_v31 = vsel %vm9809_vm2, 1.0, %v20700_v18  ;;  %v11323_v12 = vadd.f32 %v13241_v49, %v11322_v0  ;;  %vm9303_vm15 = vmand %vm21015_vm10, %vm14739_vm6  ;;  %vm21016_vm8 = vcmp.lt.f32.partialorder %v14574_v6, %v14074_v27  ;;  %v14933_v49 = vpop.permute.xlu1 %6995  ;;  %7232 = vbcast.lane.b32.xlu0 %v14487_v58, 336 }
  0xfb   : > { %21014 = vst [vmem:[#allocation46_spill] sm:$0xff] %v21013_v10  ;;  %v13243_v17 = vsel %vm21016_vm8, 1.0, %v20700_v18  ;;  %v11360_v2 = vadd.f32 %v13242_v31, %v11359_v42  ;;  %vm14913_vm2 = vmor %vm8087_vm14, %vm9303_vm15  ;;  %v7954_v38 = vadd.s32 232, %v14044_v3  ;;  %v13244_v6 = vsel %vm14856_vm4, 1.0, %v20700_v18  ;;  %v14942_v30 = vpop.permute.xlu0 %6991 }
  0xfc   : > { %vm21019_vm14 = vcmp.eq.f32.partialorder %v14642_v14, %v14077_v28  ;;  %v11324_v0 = vadd.f32 %v13243_v17, %v11323_v12  ;;  %vm8091_vm10 = vcmp.lt.f32.partialorder %v14696_v9, %v14077_v28  ;;  %vm21020_vm4 = vcmp.lt.f32.partialorder %v14642_v14, %v14074_v27 }
  0xfd   : > { %vm9301_vm15 = vmand %vm21019_vm14, %vm14769_vm11  ;;  %v13245_v47 = vsel %vm21020_vm4, 1.0, %v20700_v18  ;;  %v11361_v42 = vadd.f32 %v13244_v6, %v11360_v2  ;;  %v7953_v31 = vadd.s32 224, %v14044_v3  ;;  %vm8089_vm4 = vcmp.lt.f32.partialorder %v14713_v53, %v14077_v28  ;;  %7244 = vbcast.lane.b32.xlu1 %v14487_v58, 360 }
  0xfe   : > { %vm9813_vm0 = vmor %vm8085_vm1, %vm9301_vm15  ;;  %v11325_v17 = vadd.f32 %v13245_v47, %v11324_v0  ;;  %vm21021_vm1 = vcmp.eq.f32.partialorder %v14696_v9, %v14077_v28  ;;  %vm21022_vm8 = vcmp.lt.f32.partialorder %v14627_v7, %v14074_v27  ;;  %vm14969_vm15 = vcmp.lt.s32.totalorder %v7954_v38, %v14536_v19  ;;  %v14986_v38 = vpop.permute.xlu1 %7003  ;;  %7240 = vbcast.lane.b32.xlu0 %v14487_v58, 352 }
  0xff   : > { %v13246_v12 = vsel %vm9813_vm0, 1.0, %v20700_v18  ;;  %vm9307_vm14 = vmand %vm21021_vm1, %vm14801_vm5  ;;  %v13247_v14 = vsel %vm21022_vm8, 1.0, %v20700_v18  ;;  %v21025_v0 = vmov 0  ;;  %v13248_v7 = vsel %vm14913_vm2, 1.0, %v20700_v18 }
 0x100   : > { %v11362_v2 = vadd.f32 %v13246_v12, %v11361_v42  ;;  %vm14962_vm0 = vmor %vm8091_vm10, %vm9307_vm14  ;;  %v21026_v0 = vsel %vm14969_vm15, 4294967295, %v21025_v0  ;;  %vm21028_vm8 = vcmp.eq.f32.partialorder %v14713_v53, %v14077_v28  ;;  %v11326_v47 = vadd.f32 %v13247_v14, %v11325_v17  ;;  %v14999_v17 = vpop.permute.xlu0 %6999 }
 0x101   : > { %21027 = vst [vmem:[#allocation47_spill] sm:$0xff] %v21026_v0  ;;  %vm9305_vm14 = vmand %vm21028_vm8, %vm14831_vm3  ;;  %vm8095_vm1 = vcmp.lt.f32.partialorder %v14757_v56, %v14077_v28  ;;  %vm21029_vm2 = vcmp.lt.f32.partialorder %v14713_v53, %v14074_v27  ;;  %vm14995_vm11 = vcmp.lt.s32.totalorder %v7953_v31, %v14536_v19  ;;  %v21030_v12 = vmov 0  ;;  %7252 = vbcast.lane.b32.xlu1 %v14487_v58, 376 }
 0x102   : > { %vm9817_vm5 = vmor %vm8089_vm4, %vm9305_vm14  ;;  %v13249_v5 = vsel %vm21029_vm2, 1.0, %v20700_v18  ;;  %v11363_v42 = vadd.f32 %v13248_v7, %v11362_v2  ;;  %v21031_v12 = vsel %vm14995_vm11, 4294967295, %v21030_v12  ;;  %vm21033_vm4 = vcmp.eq.f32.partialorder %v14757_v56, %v14077_v28  ;;  %7248 = vbcast.lane.b32.xlu0 %v14487_v58, 368 }
 0x103   : > { %21032 = vst [vmem:[#allocation48_spill] sm:$0xff] %v21031_v12  ;;  %v13250_v14 = vsel %vm9817_vm5, 1.0, %v20700_v18  ;;  %v11327_v29 = vadd.f32 %v13249_v5, %v11326_v47  ;;  %vm9311_vm8 = vmand %vm21033_vm4, %vm14863_vm12  ;;  %vm8093_vm2 = vcmp.lt.f32.partialorder %v14774_v41, %v14077_v28  ;;  %vm21034_vm10 = vcmp.lt.f32.partialorder %v14696_v9, %v14074_v27  ;;  %v15039_v5 = vpop.permute.xlu1 %7011 }
 0x104   : > { %v13251_v53 = vsel %vm21034_vm10, 1.0, %v20700_v18  ;;  %v11364_v31 = vadd.f32 %v13250_v14, %v11363_v42  ;;  %vm15019_vm5 = vmor %vm8095_vm1, %vm9311_vm8  ;;  %v7956_v7 = vadd.s32 248, %v14044_v3  ;;  %v13252_v9 = vsel %vm14962_vm0, 1.0, %v20700_v18  ;;  %v15048_v40 = vpop.permute.xlu0 %7007 }
 0x105   : > { %vm21037_vm1 = vcmp.eq.f32.partialorder %v14774_v41, %v14077_v28  ;;  %v11328_v47 = vadd.f32 %v13251_v53, %v11327_v29  ;;  %vm8099_vm4 = vcmp.lt.f32.partialorder %v14819_v25, %v14077_v28  ;;  %vm21038_vm0 = vcmp.lt.f32.partialorder %v14774_v41, %v14074_v27  ;;  %7263 = vbcast.lane.b32.xlu1 %v14542_v24, 264 }
 0x106   : > { %vm9309_vm8 = vmand %vm21037_vm1, %vm14889_vm7  ;;  %v13253_v6 = vsel %vm21038_vm0, 1.0, %v20700_v18  ;;  %v11365_v42 = vadd.f32 %v13252_v9, %v11364_v31  ;;  %v7955_v14 = vadd.s32 240, %v14044_v3  ;;  %vm8097_vm0 = vcmp.lt.f32.partialorder %v14836_v51, %v14077_v28  ;;  %7259 = vbcast.lane.b32.xlu0 %v14542_v24, 256 }
 0x107   : > { %vm9821_vm14 = vmor %vm8093_vm2, %vm9309_vm8  ;;  %v11329_v53 = vadd.f32 %v13253_v6, %v11328_v47  ;;  %vm21039_vm2 = vcmp.eq.f32.partialorder %v14819_v25, %v14077_v28  ;;  %vm21040_vm10 = vcmp.lt.f32.partialorder %v14757_v56, %v14074_v27  ;;  %v21043_v47 = vmov 0  ;;  %v15092_v6 = vpop.permute.xlu1 %7019 }
 0x108   : > { %v13254_v29 = vsel %vm9821_vm14, 1.0, %v20700_v18  ;;  %vm9315_vm1 = vmand %vm21039_vm2, %vm14969_vm15  ;;  %v13255_v41 = vsel %vm21040_vm10, 1.0, %v20700_v18  ;;  %vm15073_vm2 = vcmp.lt.s32.totalorder %v7956_v7, %v14536_v19  ;;  %v13256_v56 = vsel %vm15019_vm5, 1.0, %v20700_v18 }
 0x109   : > { %v11366_v31 = vadd.f32 %v13254_v29, %v11365_v42  ;;  %vm15068_vm14 = vmor %vm8099_vm4, %vm9315_vm1  ;;  %v21044_v47 = vsel %vm15073_vm2, 4294967295, %v21043_v47  ;;  %vm21046_vm10 = vcmp.eq.f32.partialorder %v14836_v51, %v14077_v28  ;;  %v11330_v7 = vadd.f32 %v13255_v41, %v11329_v53  ;;  %v15105_v29 = vpop.permute.xlu0 %7015  ;;  %7271 = vbcast.lane.b32.xlu1 %v14542_v24, 280 }
 0x10a   : > { %21045 = vst [vmem:[#allocation49_spill] sm:$0xff] %v21044_v47  ;;  %vm9313_vm1 = vmand %vm21046_vm10, %vm14995_vm11  ;;  %vm21047_vm5 = vcmp.lt.f32.partialorder %v14836_v51, %v14074_v27  ;;  %vm15099_vm4 = vcmp.lt.s32.totalorder %v7955_v14, %v14536_v19  ;;  %v21048_v42 = vmov 0  ;;  %vm8101_vm15 = vcmp.lt.f32.partialorder %v14893_v37, %v14077_v28  ;;  %7267 = vbcast.lane.b32.xlu0 %v14542_v24, 272 }
 0x10b   : > { %vm9825_vm8 = vmor %vm8097_vm0, %vm9313_vm1  ;;  %v13257_v58 = vsel %vm21047_vm5, 1.0, %v20700_v18  ;;  %v11367_v2 = vadd.f32 %v13256_v56, %v11366_v31  ;;  %v21049_v42 = vsel %vm15099_vm4, 4294967295, %v21048_v42  ;;  %vm21051_vm0 = vcmp.eq.f32.partialorder %v14880_v26, %v14077_v28  ;;  %v15144_v56 = vpop.permute.xlu1 %7027 }
 0x10c   : > { %21050 = vst [vmem:[#allocation50_spill] sm:$0xff] %v21049_v42  ;;  %v13258_v53 = vsel %vm9825_vm8, 1.0, %v20700_v18  ;;  %v11331_v41 = vadd.f32 %v13257_v58, %v11330_v7  ;;  %vm9319_vm1 = vmand %vm21051_vm0, %vm15073_vm2  ;;  %vm21052_vm10 = vcmp.lt.f32.partialorder %v14819_v25, %v14074_v27  ;;  %vm21053_vm8 = vcmp.lt.f32.partialorder %v14880_v26, %v14077_v28 }
 0x10d   : > { %v13259_v19 = vsel %vm21052_vm10, 1.0, %v20700_v18  ;;  %v11368_v51 = vadd.f32 %v13258_v53, %v11367_v2  ;;  %vm15125_vm11 = vmor %vm21053_vm8, %vm9319_vm1  ;;  %v13260_v31 = vsel %vm15068_vm14, 1.0, %v20700_v18  ;;  %vm21056_vm1 = vcmp.eq.f32.partialorder %v14893_v37, %v14077_v28  ;;  %v15154_v28 = vpop.permute.xlu0 %7023  ;;  %7279 = vbcast.lane.b32.xlu1 %v14542_v24, 296 }
 0x10e   : > { %vm9317_vm8 = vmand %vm21056_vm1, %vm15099_vm4  ;;  %v11332_v25 = vadd.f32 %v13259_v19, %v11331_v41  ;;  %vm8106_vm5 = vcmp.lt.f32.partialorder %v14933_v49, %v14084_v33  ;;  %vm21057_vm14 = vcmp.lt.f32.partialorder %v14893_v37, %v14074_v27  ;;  %vm8619_vm2 = vcmp.eq.f32.partialorder %v14933_v49, %v14087_v34  ;;  %7275 = vbcast.lane.b32.xlu0 %v14542_v24, 288 }
 0x10f   : > { %vm9829_vm0 = vmor %vm8101_vm15, %vm9317_vm8  ;;  %v13261_v9 = vsel %vm21057_vm14, 1.0, %v20700_v18  ;;  %v11369_v7 = vadd.f32 %v13260_v31, %v11368_v51  ;;  %vm21058_vm15 = vcmp.eq.f32.partialorder %v14933_v49, %v14084_v33  ;;  %vm8616_vm8 = vcmp.eq.f32.partialorder %v14942_v30, %v14084_v33 }
 0x110   : > { %v13262_v58 = vsel %vm9829_vm0, 1.0, %v20700_v18  ;;  %v11333_v2 = vadd.f32 %v13261_v9, %v11332_v25  ;;  %vm9322_vm1 = vmand %vm21058_vm15, %vm14194_vm9  ;;  %vm21059_vm14 = vcmp.lt.f32.partialorder %v14880_v26, %v14074_v27  ;;  %vm8104_vm10 = vcmp.lt.f32.partialorder %v14942_v30, %v14084_v33  ;;  %v15191_v26 = vpop.permute.xlu1 %7035 }
 0x111   : > { %v13263_v37 = vsel %vm21059_vm14, 1.0, %v20700_v18  ;;  %v11370_v53 = vadd.f32 %v13262_v58, %v11369_v7  ;;  %vm9834_vm0 = vmor %vm8106_vm5, %vm9322_vm1  ;;  %v13264_v41 = vsel %vm15125_vm11, 1.0, %v20700_v18  ;;  %vm21060_vm15 = vcmp.lt.f32.partialorder %v14933_v49, %v14087_v34  ;;  %v15203_v49 = vpop.permute.xlu0 %7031  ;;  %7287 = vbcast.lane.b32.xlu1 %v14542_v24, 312 }
 0x112   : > { %v15178_v19 = vadd.f32 %v13263_v37, %v11333_v2  ;;  %vm15183_vm14 = vmor %vm21060_vm15, %vm8619_vm2  ;;  %vm8105_vm5 = vcmp.lt.f32.partialorder %v14942_v30, %v14087_v34  ;;  %vm8617_vm1 = vcmp.eq.f32.partialorder %v14942_v30, %v14087_v34  ;;  %v13267_v14 = vsel %vm9834_vm0, 1.0, %v20700_v18  ;;  %7283 = vbcast.lane.b32.xlu0 %v14542_v24, 304 }
 0x113   : > { %v15193_v51 = vadd.f32 %v13264_v41, %v11370_v53  ;;  %vm21063_vm11 = vnez %v20870_v54  ;;  %vm8622_vm15 = vcmp.eq.f32.partialorder %v14986_v38, %v14084_v33  ;;  %vm8110_vm4 = vcmp.lt.f32.partialorder %v14986_v38, %v14084_v33  ;;  %vm9833_vm7 = vmor %vm8105_vm5, %vm8617_vm1 }
 0x114   : > { %vm9320_vm2 = vmand %vm8616_vm8, %vm21063_vm11  ;;  %vm8111_vm0 = vcmp.lt.f32.partialorder %v14986_v38, %v14087_v34  ;;  %vm8623_vm8 = vcmp.eq.f32.partialorder %v14986_v38, %v14087_v34  ;;  %vm21064_vm11 = vnez %v20877_v59  ;;  %v15218_v25 = vpop.permute.xlu1 %7043  ;;  %v13268_v38 = vsel %vm15183_vm14, 1.0, %v20700_v18 }
 0x115   : > { %vm9832_vm9 = vmor %vm8104_vm10, %vm9320_vm2  ;;  %vm8620_vm2 = vcmp.eq.f32.partialorder %v14999_v17, %v14084_v33  ;;  %v15226_v7 = vpop.permute.xlu0 %7039  ;;  %v13266_v58 = vsel %vm9833_vm7, 1.0, %v20700_v18  ;;  %vm8626_vm14 = vcmp.eq.f32.partialorder %v15039_v5, %v14084_v33  ;;  %vm8115_vm12 = vcmp.lt.f32.partialorder %v15039_v5, %v14087_v34  ;;  %7295 = vbcast.lane.b32.xlu1 %v14542_v24, 328 }
 0x116   : > { %v13265_v31 = vsel %vm9832_vm9, 1.0, %v20700_v18  ;;  %vm9326_vm10 = vmand %vm8622_vm15, %vm21064_vm11  ;;  %vm8108_vm9 = vcmp.lt.f32.partialorder %v14999_v17, %v14084_v33  ;;  %vm8621_vm15 = vcmp.eq.f32.partialorder %v14999_v17, %v14087_v34  ;;  %v11415_v53 = vadd.f32 %v13268_v38, %v13266_v58  ;;  %7291 = vbcast.lane.b32.xlu0 %v14542_v24, 320 }
 0x117   : > { %v11378_v30 = vadd.f32 %v13267_v14, %v13265_v31  ;;  %vm15220_vm5 = vmor %vm8110_vm4, %vm9326_vm10  ;;  %vm8109_vm4 = vcmp.lt.f32.partialorder %v14999_v17, %v14087_v34  ;;  %vm21069_vm10 = vnez %v20867_v50 }
 0x118   : > { %vm15232_vm1 = vmor %vm8111_vm0, %vm8623_vm8  ;;  %vm8114_vm0 = vcmp.lt.f32.partialorder %v15039_v5, %v14084_v33  ;;  %v15248_v37 = vpop.permute.xlu1 %7051  ;;  %v13271_v38 = vsel %vm15220_vm5, 1.0, %v20700_v18  ;;  %vm8113_vm5 = vcmp.lt.f32.partialorder %v15048_v40, %v14087_v34 }
 0x119   : > { %vm9324_vm11 = vmand %vm8620_vm2, %vm21069_vm10  ;;  %vm8627_vm2 = vcmp.eq.f32.partialorder %v15039_v5, %v14087_v34  ;;  %v15255_v41 = vpop.permute.xlu0 %7047  ;;  %v13272_v27 = vsel %vm15232_vm1, 1.0, %v20700_v18  ;;  %7303 = vbcast.lane.b32.xlu1 %v14542_v24, 344  ;;  %vm8119_vm10 = vcmp.lt.f32.partialorder %v15092_v6, %v14087_v34 }
 0x11a   : > { %vm9836_vm7 = vmor %vm8108_vm9, %vm9324_vm11  ;;  %vm21070_vm11 = vnez %v20891_v11  ;;  %7299 = vbcast.lane.b32.xlu0 %v14542_v24, 336 }
 0x11b   : > { %vm9837_vm8 = vmor %vm8109_vm4, %vm8621_vm15  ;;  %v13269_v17 = vsel %vm9836_vm7, 1.0, %v20700_v18  ;;  %vm8624_vm4 = vcmp.eq.f32.partialorder %v15048_v40, %v14084_v33  ;;  %vm8112_vm15 = vcmp.lt.f32.partialorder %v15048_v40, %v14084_v33  ;;  %vm8625_vm7 = vcmp.eq.f32.partialorder %v15048_v40, %v14087_v34 }
 0x11c   : > { %v13270_v14 = vsel %vm9837_vm8, 1.0, %v20700_v18  ;;  %v11379_v31 = vadd.f32 %v13269_v17, %v11378_v30  ;;  %vm9330_vm9 = vmand %vm8626_vm14, %vm21070_vm11  ;;  %v15287_v9 = vpop.permute.xlu1 %7062 }
 0x11d   : > { %v11416_v58 = vadd.f32 %v13270_v14, %v11415_v53  ;;  %vm15272_vm1 = vmor %vm8114_vm0, %vm9330_vm9  ;;  %vm21075_vm0 = vnez %v20894_v13  ;;  %vm8630_vm9 = vcmp.eq.f32.partialorder %v15092_v6, %v14084_v33  ;;  %v15293_v17 = vpop.permute.xlu0 %7058  ;;  %7311 = vbcast.lane.b32.xlu1 %v14542_v24, 360 }
 0x11e   : > { %vm15279_vm14 = vmor %vm8115_vm12, %vm8627_vm2  ;;  %v11380_v5 = vadd.f32 %v13271_v38, %v11379_v31  ;;  %vm8118_vm2 = vcmp.lt.f32.partialorder %v15092_v6, %v14084_v33  ;;  %7307 = vbcast.lane.b32.xlu0 %v14542_v24, 352 }
 0x11f   : > { %vm9328_vm8 = vmand %vm8624_vm4, %vm21075_vm0  ;;  %v11417_v53 = vadd.f32 %v13272_v27, %v11416_v58  ;;  %vm8631_vm4 = vcmp.eq.f32.partialorder %v15092_v6, %v14087_v34  ;;  %v13276_v27 = vsel %vm15279_vm14, 1.0, %v20700_v18  ;;  %v13275_v58 = vsel %vm15272_vm1, 1.0, %v20700_v18 }
 0x120   : > { %vm9840_vm12 = vmor %vm8112_vm15, %vm9328_vm8  ;;  %vm21076_vm15 = vnez %v20900_v46  ;;  %v15312_v38 = vpop.permute.xlu1 %7070  ;;  %vm8117_vm1 = vcmp.lt.f32.partialorder %v15105_v29, %v14087_v34  ;;  %vm8127_vm0 = vcmp.lt.f32.partialorder %v15191_v26, %v14087_v34 }
 0x121   : > { %vm9841_vm11 = vmor %vm8113_vm5, %vm8625_vm7  ;;  %v13273_v40 = vsel %vm9840_vm12, 1.0, %v20700_v18  ;;  %vm8628_vm7 = vcmp.eq.f32.partialorder %v15105_v29, %v14084_v33  ;;  %vm21081_vm12 = vnez %v20905_v62  ;;  %7319 = vbcast.lane.b32.xlu1 %v14542_v24, 376 }
 0x122   : > { %v13274_v14 = vsel %vm9841_vm11, 1.0, %v20700_v18  ;;  %v11381_v31 = vadd.f32 %v13273_v40, %v11380_v5  ;;  %vm9334_vm5 = vmand %vm8630_vm9, %vm21076_vm15  ;;  %vm8116_vm11 = vcmp.lt.f32.partialorder %v15105_v29, %v14084_v33  ;;  %v15326_v5 = vpop.permute.xlu0 %7066  ;;  %vm8629_vm9 = vcmp.eq.f32.partialorder %v15105_v29, %v14087_v34  ;;  %7315 = vbcast.lane.b32.xlu0 %v14542_v24, 368 }
 0x123   : > { %v11418_v39 = vadd.f32 %v13274_v14, %v11417_v53  ;;  %vm15320_vm14 = vmor %vm8118_vm2, %vm9334_vm5  ;;  %v15347_v14 = vld [vmem:[%s14037_s28 + $0x8] sm:$0xff]  ;;  %v21082_v29 = vsub.s32 3, %v14044_v3  ;;  %vm8123_vm5 = vcmp.lt.f32.partialorder %v15144_v56, %v14087_v34 }
 0x124   : > { %vm15328_vm8 = vmor %vm8119_vm10, %vm8631_vm4  ;;  %v11382_v6 = vadd.f32 %v13275_v58, %v11381_v31  ;;  %vm8122_vm4 = vcmp.lt.f32.partialorder %v15144_v56, %v14084_v33  ;;  %v15344_v53 = vpop.permute.xlu1 %7078 }
 0x125   : > { %vm9332_vm2 = vmand %vm8628_vm7, %vm21081_vm12  ;;  %v11419_v2 = vadd.f32 %v13276_v27, %v11418_v39  ;;  %v15352_v31 = vrot.slane %v15347_v14, %v21082_v29  ;;  %v13280_v58 = vsel %vm15328_vm8, 1.0, %v20700_v18  ;;  %v13279_v29 = vsel %vm15320_vm14, 1.0, %v20700_v18 }
 0x126   : > { %vm9844_vm10 = vmor %vm8116_vm11, %vm9332_vm2  ;;  %vm8635_vm11 = vcmp.eq.f32.partialorder %v15144_v56, %v14087_v34  ;;  %v15359_v27 = vpop.permute.xlu0 %7074  ;;  %vm21083_vm2 = vnez %v20912_v16  ;;  %vm8121_vm14 = vcmp.lt.f32.partialorder %v15154_v28, %v14087_v34  ;;  %vm8638_vm12 = vcmp.eq.f32.partialorder %v15191_v26, %v14084_v33 }
 0x127   : > { %vm9845_vm7 = vmor %vm8117_vm1, %vm8629_vm9  ;;  %v13277_v39 = vsel %vm9844_vm10, 1.0, %v20700_v18  ;;  %vm21084_vm1 = vcmp.eq.f32.partialorder %v15144_v56, %v14084_v33  ;;  %vm8632_vm10 = vcmp.eq.f32.partialorder %v15154_v28, %v14084_v33  ;;  %7330 = vbcast.lane.b32.xlu1 %v15352_v31, 264  ;;  %7326 = vbcast.lane.b32.xlu0 %v15352_v31, 256 }
 0x128   : > { %v13278_v62 = vsel %vm9845_vm7, 1.0, %v20700_v18  ;;  %v11383_v46 = vadd.f32 %v13277_v39, %v11382_v6  ;;  %vm9338_vm9 = vmand %vm21084_vm1, %vm21083_vm2  ;;  %vm8120_vm7 = vcmp.lt.f32.partialorder %v15154_v28, %v14084_v33  ;;  %vm8633_vm2 = vcmp.eq.f32.partialorder %v15154_v28, %v14087_v34  ;;  %v15394_v56 = vpop.permute.xlu1 %7086 }
 0x129   : > { %v11420_v40 = vadd.f32 %v13278_v62, %v11419_v2  ;;  %vm15379_vm8 = vmor %vm8122_vm4, %vm9338_vm9  ;;  %vm21089_vm4 = vnez %v20915_v23 }
 0x12a   : > { %vm15386_vm1 = vmor %vm8123_vm5, %vm8635_vm11  ;;  %v11384_v62 = vadd.f32 %v13279_v29, %v11383_v46  ;;  %v15400_v24 = vpop.permute.xlu0 %7082  ;;  %vm8126_vm11 = vcmp.lt.f32.partialorder %v15191_v26, %v14084_v33 }
 0x12b   : > { %vm9336_vm9 = vmand %vm8632_vm10, %vm21089_vm4  ;;  %v11421_v30 = vadd.f32 %v13280_v58, %v11420_v40  ;;  %vm8639_vm10 = vcmp.eq.f32.partialorder %v15191_v26, %v14087_v34  ;;  %v13284_v28 = vsel %vm15386_vm1, 1.0, %v20700_v18  ;;  %v13283_v40 = vsel %vm15379_vm8, 1.0, %v20700_v18  ;;  %7338 = vbcast.lane.b32.xlu1 %v15352_v31, 280  ;;  %7334 = vbcast.lane.b32.xlu0 %v15352_v31, 272 }
 0x12c   : > { %vm9848_vm5 = vmor %vm8120_vm7, %vm9336_vm9  ;;  %vm21090_vm7 = vnez %v20922_v52  ;;  %v15419_v29 = vpop.permute.xlu1 %7094  ;;  %vm8125_vm8 = vcmp.lt.f32.partialorder %v15203_v49, %v14087_v34  ;;  %vm8637_vm9 = vcmp.eq.f32.partialorder %v15203_v49, %v14087_v34  ;;  %vm8131_vm4 = vcmp.lt.f32.partialorder %v15218_v25, %v14087_v34 }
 0x12d   : > { %vm9849_vm15 = vmor %vm8121_vm14, %vm8633_vm2  ;;  %v13281_v46 = vsel %vm9848_vm5, 1.0, %v20700_v18  ;;  %vm8636_vm14 = vcmp.eq.f32.partialorder %v15203_v49, %v14084_v33  ;;  %vm21095_vm5 = vnez %v20925_v57 }
 0x12e   : > { %v13282_v2 = vsel %vm9849_vm15, 1.0, %v20700_v18  ;;  %v11385_v58 = vadd.f32 %v13281_v46, %v11384_v62  ;;  %vm9342_vm2 = vmand %vm8638_vm12, %vm21090_vm7  ;;  %vm8124_vm15 = vcmp.lt.f32.partialorder %v15203_v49, %v14084_v33  ;;  %v15433_v62 = vpop.permute.xlu0 %7090 }
 0x12f   : > { %v11422_v23 = vadd.f32 %v13282_v2, %v11421_v30  ;;  %vm15427_vm1 = vmor %vm8126_vm11, %vm9342_vm2  ;;  %vm8642_vm2 = vcmp.eq.f32.partialorder %v15218_v25, %v14084_v33  ;;  %7346 = vbcast.lane.b32.xlu1 %v15352_v31, 296  ;;  %7342 = vbcast.lane.b32.xlu0 %v15352_v31, 288 }
 0x130   : > { %vm15435_vm12 = vmor %vm8127_vm0, %vm8639_vm10  ;;  %v11386_v26 = vadd.f32 %v13283_v40, %v11385_v58  ;;  %vm8130_vm10 = vcmp.lt.f32.partialorder %v15218_v25, %v14084_v33  ;;  %v15451_v30 = vpop.permute.xlu1 %7102  ;;  %v13287_v40 = vsel %vm15427_vm1, 1.0, %v20700_v18  ;;  %vm8129_vm1 = vcmp.lt.f32.partialorder %v15226_v7, %v14087_v34 }
 0x131   : > { %vm9340_vm11 = vmand %vm8636_vm14, %vm21095_vm5  ;;  %v11423_v6 = vadd.f32 %v13284_v28, %v11422_v23  ;;  %vm8643_vm14 = vcmp.eq.f32.partialorder %v15218_v25, %v14087_v34  ;;  %v13288_v28 = vsel %vm15435_vm12, 1.0, %v20700_v18  ;;  %vm8135_vm5 = vcmp.lt.f32.partialorder %v15248_v37, %v14087_v34 }
 0x132   : > { %vm9852_vm0 = vmor %vm8124_vm15, %vm9340_vm11  ;;  %v15458_v23 = vpop.permute.xlu0 %7098  ;;  %vm21096_vm15 = vnez %v20932_v60 }
 0x133   : > { %vm9853_vm7 = vmor %vm8125_vm8, %vm8637_vm9  ;;  %v13285_v49 = vsel %vm9852_vm0, 1.0, %v20700_v18  ;;  %vm8640_vm9 = vcmp.eq.f32.partialorder %v15226_v7, %v14084_v33  ;;  %vm21101_vm0 = vnez %v20935_v8  ;;  %7354 = vbcast.lane.b32.xlu1 %v15352_v31, 312  ;;  %7350 = vbcast.lane.b32.xlu0 %v15352_v31, 304 }
 0x134   : > { %v13286_v2 = vsel %vm9853_vm7, 1.0, %v20700_v18  ;;  %v11387_v58 = vadd.f32 %v13285_v49, %v11386_v26  ;;  %vm9346_vm8 = vmand %vm8642_vm2, %vm21096_vm15  ;;  %vm8128_vm7 = vcmp.lt.f32.partialorder %v15226_v7, %v14084_v33  ;;  %vm8641_vm2 = vcmp.eq.f32.partialorder %v15226_v7, %v14087_v34  ;;  %v15490_v39 = vpop.permute.xlu1 %7110 }
 0x135   : > { %v11424_v57 = vadd.f32 %v13286_v2, %v11423_v6  ;;  %vm15475_vm12 = vmor %vm8130_vm10, %vm9346_vm8  ;;  %vm8646_vm8 = vcmp.eq.f32.partialorder %v15248_v37, %v14084_v33 }
 0x136   : > { %vm15482_vm11 = vmor %vm8131_vm4, %vm8643_vm14  ;;  %v11388_v25 = vadd.f32 %v13287_v40, %v11387_v58  ;;  %v15496_v49 = vpop.permute.xlu0 %7106  ;;  %vm8134_vm14 = vcmp.lt.f32.partialorder %v15248_v37, %v14084_v33  ;;  %v13291_v40 = vsel %vm15475_vm12, 1.0, %v20700_v18  ;;  %vm8133_vm12 = vcmp.lt.f32.partialorder %v15255_v41, %v14087_v34 }
 0x137   : > { %vm9344_vm10 = vmand %vm8640_vm9, %vm21101_vm0  ;;  %v11425_v6 = vadd.f32 %v13288_v28, %v11424_v57  ;;  %vm8647_vm9 = vcmp.eq.f32.partialorder %v15248_v37, %v14087_v34  ;;  %v13292_v57 = vsel %vm15482_vm11, 1.0, %v20700_v18  ;;  %7362 = vbcast.lane.b32.xlu1 %v15352_v31, 328  ;;  %7358 = vbcast.lane.b32.xlu0 %v15352_v31, 320  ;;  %vm8136_vm0 = vcmp.lt.f32.partialorder %v15293_v17, %v14084_v33 }
 0x138   : > { %vm9856_vm4 = vmor %vm8128_vm7, %vm9344_vm10  ;;  %vm21102_vm7 = vnez %v20942_v55  ;;  %v15515_v58 = vpop.permute.xlu1 %7118 }
 0x139   : > { %vm9857_vm15 = vmor %vm8129_vm1, %vm8641_vm2  ;;  %v13289_v7 = vsel %vm9856_vm4, 1.0, %v20700_v18  ;;  %vm8644_vm2 = vcmp.eq.f32.partialorder %v15255_v41, %v14084_v33  ;;  %vm21107_vm4 = vnez %v20945_v4 }
 0x13a   : > { %v13290_v28 = vsel %vm9857_vm15, 1.0, %v20700_v18  ;;  %v11389_v2 = vadd.f32 %v13289_v7, %v11388_v25  ;;  %vm9350_vm1 = vmand %vm8646_vm8, %vm21102_vm7  ;;  %vm8132_vm15 = vcmp.lt.f32.partialorder %v15255_v41, %v14084_v33  ;;  %v15529_v25 = vpop.permute.xlu0 %7114  ;;  %vm8645_vm8 = vcmp.eq.f32.partialorder %v15255_v41, %v14087_v34 }
 0x13b   : > { %v11426_v8 = vadd.f32 %v13290_v28, %v11425_v6  ;;  %vm15523_vm11 = vmor %vm8134_vm14, %vm9350_vm1  ;;  %vm8651_vm1 = vcmp.eq.f32.partialorder %v15287_v9, %v14087_v34  ;;  %7370 = vbcast.lane.b32.xlu1 %v15352_v31, 344  ;;  %7366 = vbcast.lane.b32.xlu0 %v15352_v31, 336 }
 0x13c   : > { %vm15531_vm10 = vmor %vm8135_vm5, %vm8647_vm9  ;;  %v11390_v37 = vadd.f32 %v13291_v40, %v11389_v2  ;;  %vm8139_vm9 = vcmp.lt.f32.partialorder %v15287_v9, %v14087_v34  ;;  %v15547_v6 = vpop.permute.xlu1 %7129  ;;  %v13295_v40 = vsel %vm15523_vm11, 1.0, %v20700_v18  ;;  %vm8143_vm11 = vcmp.lt.f32.partialorder %v15312_v38, %v14087_v34 }
 0x13d   : > { %vm9348_vm14 = vmand %vm8644_vm2, %vm21107_vm4  ;;  %v11427_v46 = vadd.f32 %v13292_v57, %v11426_v8  ;;  %vm8649_vm2 = vcmp.eq.f32.partialorder %v15293_v17, %v14087_v34  ;;  %v13296_v57 = vsel %vm15531_vm10, 1.0, %v20700_v18 }
 0x13e   : > { %vm9860_vm5 = vmor %vm8132_vm15, %vm9348_vm14  ;;  %v15554_v8 = vpop.permute.xlu0 %7125  ;;  %vm21108_vm15 = vnez %v20948_v61  ;;  %vm8138_vm14 = vcmp.lt.f32.partialorder %v15287_v9, %v14084_v33 }
 0x13f   : > { %vm9861_vm7 = vmor %vm8133_vm12, %vm8645_vm8  ;;  %v13293_v41 = vsel %vm9860_vm5, 1.0, %v20700_v18  ;;  %vm8137_vm8 = vcmp.lt.f32.partialorder %v15293_v17, %v14087_v34  ;;  %7378 = vbcast.lane.b32.xlu1 %v15352_v31, 360  ;;  %7374 = vbcast.lane.b32.xlu0 %v15352_v31, 352 }
 0x140   : > { %v13294_v28 = vsel %vm9861_vm7, 1.0, %v20700_v18  ;;  %v11391_v2 = vadd.f32 %v13293_v41, %v11390_v37  ;;  %vm9355_vm12 = vmand %vm8651_vm1, %vm21108_vm15  ;;  %vm8655_vm7 = vcmp.eq.f32.partialorder %v15312_v38, %v14087_v34  ;;  %vm21111_vm1 = vnez %v20960_v48  ;;  %v15584_v37 = vpop.permute.xlu1 %7137 }
 0x141   : > { %v11428_v4 = vadd.f32 %v13294_v28, %v11427_v46  ;;  %vm15571_vm10 = vmor %vm8139_vm9, %vm9355_vm12  ;;  %v20691_v46 = vsub.s32 4, %v14044_v3  ;;  %v13297_v41 = vsel %vm8136_vm0, 1.0, %v20700_v18  ;;  %vm8653_vm12 = vcmp.eq.f32.partialorder %v15326_v5, %v14087_v34 }
 0x142   : > { %vm9353_vm5 = vmand %vm8649_vm2, %vm21111_vm1  ;;  %v11392_v26 = vadd.f32 %v13295_v40, %v11391_v2  ;;  %v15593_v48 = vpop.permute.xlu0 %7133  ;;  %vm21112_vm2 = vnez %v20964_v15  ;;  %vm8141_vm0 = vcmp.lt.f32.partialorder %v15326_v5, %v14087_v34 }
 0x143   : > { %vm9865_vm9 = vmor %vm8137_vm8, %vm9353_vm5  ;;  %v11429_v28 = vadd.f32 %v13296_v57, %v11428_v4  ;;  %v13299_v4 = vsel %vm8138_vm14, 1.0, %v20700_v18  ;;  %vm21115_vm5 = vnez %v20967_v20  ;;  %vm21117_vm14 = vnez %v20970_v45  ;;  %7386 = vbcast.lane.b32.xlu1 %v15352_v31, 376  ;;  %7382 = vbcast.lane.b32.xlu0 %v15352_v31, 368 }
 0x144   : > { %v13298_v2 = vsel %vm9865_vm9, 1.0, %v20700_v18  ;;  %v11393_v40 = vadd.f32 %v13297_v41, %v11392_v26  ;;  %vm9359_vm8 = vmand %vm8655_vm7, %vm21112_vm2  ;;  %vm8659_vm7 = vcmp.eq.f32.partialorder %v15344_v53, %v14087_v34  ;;  %v13300_v26 = vsel %vm15571_vm10, 1.0, %v20700_v18  ;;  %v15632_v41 = vpop.permute.xlu1 %7145 }
 0x145   : > { %v11430_v17 = vadd.f32 %v13298_v2, %v11429_v28  ;;  %vm15613_vm9 = vmor %vm8143_vm11, %vm9359_vm8  ;;  %v15635_v28 = vld [vmem:[%s14037_s28] sm:$0xff]  ;;  %vm21118_vm8 = vcmp.lt.f32.partialorder %v15312_v38, %v14084_v33 }
 0x146   : > { %vm9357_vm11 = vmand %vm8653_vm12, %vm21115_vm5  ;;  %v11394_v9 = vadd.f32 %v13299_v4, %v11393_v40  ;;  %v15640_v7 = vrot.slane %v15635_v28, %v20691_v46  ;;  %vm21116_vm12 = vcmp.lt.f32.partialorder %v15326_v5, %v14084_v33  ;;  %v15651_v4 = vpop.permute.xlu0 %7141  ;;  %v13303_v5 = vsel %vm21118_vm8, 1.0, %v20700_v18 }
 0x147   : > { %vm9869_vm10 = vmor %vm8141_vm0, %vm9357_vm11  ;;  %v13301_v2 = vsel %vm21116_vm12, 1.0, %v20700_v18  ;;  %v11431_v40 = vadd.f32 %v13300_v26, %v11430_v17  ;;  %vm8145_vm12 = vcmp.lt.f32.partialorder %v15359_v27, %v14087_v34  ;;  %vm8151_vm11 = vcmp.lt.f32.partialorder %v15394_v56, %v14087_v34 }
 0x148   : > { %v13302_v20 = vsel %vm9869_vm10, 1.0, %v20700_v18  ;;  %v11395_v15 = vadd.f32 %v13301_v2, %v11394_v9  ;;  %vm9363_vm0 = vmand %vm8659_vm7, %vm21117_vm14  ;;  %vm21119_vm10 = vcmp.lt.f32.partialorder %v15344_v53, %v14087_v34  ;;  %v13304_v9 = vsel %vm15613_vm9, 1.0, %v20700_v18  ;;  %v15690_v38 = vpop.permute.xlu1 %7153  ;;  %7397 = vbcast.lane.b32.xlu1 %v15640_v7, 264  ;;  %7393 = vbcast.lane.b32.xlu0 %v15640_v7, 256 }
 0x149   : > { %v11432_v17 = vadd.f32 %v13302_v20, %v11431_v40  ;;  %vm15671_vm5 = vmor %vm21119_vm10, %vm9363_vm0  ;;  %vm21122_vm0 = vcmp.eq.f32.partialorder %v15359_v27, %v14087_v34  ;;  %vm21123_vm9 = vcmp.lt.f32.partialorder %v15359_v27, %v14084_v33  ;;  %vm21125_vm8 = vcmp.lt.f32.partialorder %v15344_v53, %v14084_v33 }
 0x14a   : > { %vm9361_vm10 = vmand %vm21122_vm0, %vm14708_vm13  ;;  %v11396_v20 = vadd.f32 %v13303_v5, %v11395_v15  ;;  %v13305_v31 = vsel %vm21123_vm9, 1.0, %v20700_v18  ;;  %v15698_v2 = vpop.permute.xlu0 %7149  ;;  %vm21124_vm0 = vcmp.eq.f32.partialorder %v15394_v56, %v14087_v34  ;;  %vm8149_vm9 = vcmp.lt.f32.partialorder %v15400_v24, %v14087_v34 }
 0x14b   : > { %vm9873_vm7 = vmor %vm8145_vm12, %vm9361_vm10  ;;  %v11433_v57 = vadd.f32 %v13304_v9, %v11432_v17  ;;  %v13307_v27 = vsel %vm21125_vm8, 1.0, %v20700_v18  ;;  %v13308_v9 = vsel %vm15671_vm5, 1.0, %v20700_v18  ;;  %vm21128_vm10 = vnez %v20987_v43 }
 0x14c   : > { %v13306_v40 = vsel %vm9873_vm7, 1.0, %v20700_v18  ;;  %v11397_v15 = vadd.f32 %v13305_v31, %v11396_v20  ;;  %vm9367_vm12 = vmand %vm21124_vm0, %vm14739_vm6  ;;  %v15737_v20 = vpop.permute.xlu1 %7161  ;;  %vm21130_vm5 = vcmp.lt.f32.partialorder %v15400_v24, %v14084_v33  ;;  %vm21132_vm6 = vcmp.eq.f32.partialorder %v15419_v29, %v14087_v34  ;;  %7405 = vbcast.lane.b32.xlu1 %v15640_v7, 280  ;;  %7401 = vbcast.lane.b32.xlu0 %v15640_v7, 272 }
 0x14d   : > { %v11434_v5 = vadd.f32 %v13306_v40, %v11433_v57  ;;  %vm15718_vm7 = vmor %vm8151_vm11, %vm9367_vm12  ;;  %vm21129_vm11 = vcmp.eq.f32.partialorder %v15400_v24, %v14087_v34  ;;  %v13309_v26 = vsel %vm21130_vm5, 1.0, %v20700_v18  ;;  %vm8153_vm5 = vcmp.lt.f32.partialorder %v15433_v62, %v14087_v34 }
 0x14e   : > { %vm9365_vm12 = vmand %vm21129_vm11, %vm21128_vm10  ;;  %v11398_v53 = vadd.f32 %v13307_v27, %v11397_v15  ;;  %v15745_v57 = vpop.permute.xlu0 %7157  ;;  %vm21131_vm11 = vnez %v20995_v44  ;;  %vm21133_vm8 = vcmp.lt.f32.partialorder %v15394_v56, %v14084_v33  ;;  %vm8691_vm13 = vcmp.eq.f32.partialorder %v15632_v41, %v14092_v36 }
 0x14f   : > { %vm9877_vm0 = vmor %vm8149_vm9, %vm9365_vm12  ;;  %v11435_v31 = vadd.f32 %v13308_v9, %v11434_v5  ;;  %v13311_v24 = vsel %vm21133_vm8, 1.0, %v20700_v18  ;;  %v13312_v9 = vsel %vm15718_vm7, 1.0, %v20700_v18  ;;  %vm21138_vm7 = vcmp.lt.f32.partialorder %v15433_v62, %v14084_v33 }
 0x150   : > { %v13310_v40 = vsel %vm9877_vm0, 1.0, %v20700_v18  ;;  %v11399_v15 = vadd.f32 %v13309_v26, %v11398_v53  ;;  %vm9371_vm9 = vmand %vm21132_vm6, %vm21131_vm11  ;;  %vm21134_vm0 = vcmp.lt.f32.partialorder %v15419_v29, %v14087_v34  ;;  %v15784_v53 = vpop.permute.xlu1 %7169  ;;  %v11335_v26 = vrot.slane %v15178_v19, 4  ;;  %7413 = vbcast.lane.b32.xlu1 %v15640_v7, 296  ;;  %7409 = vbcast.lane.b32.xlu0 %v15640_v7, 288 }
 0x151   : > { %v11436_v27 = vadd.f32 %v13310_v40, %v11435_v31  ;;  %vm15765_vm10 = vmor %vm21134_vm0, %vm9371_vm9  ;;  %vm21137_vm9 = vcmp.eq.f32.partialorder %v15433_v62, %v14087_v34  ;;  %v13313_v17 = vsel %vm21138_vm7, 1.0, %v20700_v18  ;;  %vm21140_vm12 = vcmp.eq.f32.partialorder %v15451_v30, %v14087_v34 }
 0x152   : > { %vm9369_vm0 = vmand %vm21137_vm9, %vm14831_vm3  ;;  %v11400_v56 = vadd.f32 %v13311_v24, %v11399_v15  ;;  %v15793_v40 = vpop.permute.xlu0 %7165  ;;  %vm21139_vm9 = vnez %v21008_v22  ;;  %v11372_v62 = vrot.slane %v15193_v51, 4  ;;  %vm21142_vm8 = vcmp.lt.f32.partialorder %v15451_v30, %v14087_v34 }
 0x153   : > { %vm9881_vm6 = vmor %vm8153_vm5, %vm9369_vm0  ;;  %v11437_v31 = vadd.f32 %v13312_v9, %v11436_v27  ;;  %vm21145_vm7 = vnez %v21013_v10  ;;  %vm8170_vm3 = vcmp.lt.f32.partialorder %v15547_v6, %v14089_v35  ;;  %vm21176_vm11 = vcmp.eq.f32.partialorder %v15554_v8, %v14089_v35 }
 0x154   : > { %v13314_v15 = vsel %vm9881_vm6, 1.0, %v20700_v18  ;;  %v11401_v24 = vadd.f32 %v13313_v17, %v11400_v56  ;;  %vm9375_vm5 = vmand %vm21140_vm12, %vm21139_vm9  ;;  %vm21141_vm6 = vcmp.lt.f32.partialorder %v15419_v29, %v14084_v33  ;;  %v13316_v17 = vsel %vm15765_vm10, 1.0, %v20700_v18  ;;  %7421 = vbcast.lane.b32.xlu1 %v15640_v7, 312  ;;  %7417 = vbcast.lane.b32.xlu0 %v15640_v7, 304 }
 0x155   : > { %v13315_v27 = vsel %vm21141_vm6, 1.0, %v20700_v18  ;;  %v11438_v9 = vadd.f32 %v13314_v15, %v11437_v31  ;;  %vm15814_vm12 = vmor %vm21142_vm8, %vm9375_vm5  ;;  %vm21146_vm8 = vcmp.eq.f32.partialorder %v15458_v23, %v14087_v34  ;;  %v15833_v31 = vpop.permute.xlu1 %7177  ;;  %v11336_v15 = vadd.f32 %v11335_v26, %v15178_v19 }
 0x156   : > { %vm9373_vm5 = vmand %vm21146_vm8, %vm21145_vm7  ;;  %v11402_v29 = vadd.f32 %v13315_v27, %v11401_v24  ;;  %vm21147_vm10 = vcmp.lt.f32.partialorder %v15458_v23, %v14087_v34  ;;  %vm21148_vm6 = vcmp.lt.f32.partialorder %v15458_v23, %v14084_v33  ;;  %v15845_v24 = vpop.permute.xlu0 %7173  ;;  %vm21149_vm9 = vnez %v21026_v0 }
 0x157   : > { %vm9885_vm0 = vmor %vm21147_vm10, %vm9373_vm5  ;;  %v13317_v5 = vsel %vm21148_vm6, 1.0, %v20700_v18  ;;  %v11439_v46 = vadd.f32 %v13316_v17, %v11438_v9  ;;  %vm21150_vm7 = vcmp.eq.f32.partialorder %v15490_v39, %v14087_v34  ;;  %v15859_v19 = vadd.f32 %v11372_v62, %v15193_v51 }
 0x158   : > { %v13318_v27 = vsel %vm9885_vm0, 1.0, %v20700_v18  ;;  %v11403_v10 = vadd.f32 %v13317_v5, %v11402_v29  ;;  %vm9379_vm5 = vmand %vm21150_vm7, %vm21149_vm9  ;;  %vm21151_vm0 = vcmp.lt.f32.partialorder %v15451_v30, %v14084_v33  ;;  %vm21152_vm7 = vcmp.lt.f32.partialorder %v15490_v39, %v14087_v34  ;;  %7429 = vbcast.lane.b32.xlu1 %v15640_v7, 328  ;;  %7425 = vbcast.lane.b32.xlu0 %v15640_v7, 320 }
 0x159   : > { %v13319_v23 = vsel %vm21151_vm0, 1.0, %v20700_v18  ;;  %v11440_v26 = vadd.f32 %v13318_v27, %v11439_v46  ;;  %vm15868_vm8 = vmor %vm21152_vm7, %vm9379_vm5  ;;  %v13320_v51 = vsel %vm15814_vm12, 1.0, %v20700_v18  ;;  %vm21155_vm6 = vnez %v21031_v12  ;;  %v15887_v46 = vpop.permute.xlu1 %7185 }
 0x15a   : > { %vm21156_vm5 = vcmp.eq.f32.partialorder %v15496_v49, %v14087_v34  ;;  %v11404_v30 = vadd.f32 %v13319_v23, %v11403_v10  ;;  %v11337_v62 = vrot.slane %v11336_v15, 2  ;;  %vm21157_vm10 = vcmp.lt.f32.partialorder %v15496_v49, %v14087_v34  ;;  %v15898_v10 = vpop.permute.xlu0 %7181 }
 0x15b   : > { %vm9377_vm7 = vmand %vm21156_vm5, %vm21155_vm6  ;;  %vm21158_vm0 = vcmp.lt.f32.partialorder %v15496_v49, %v14084_v33  ;;  %v11441_v17 = vadd.f32 %v13320_v51, %v11440_v26  ;;  %vm21159_vm9 = vnez %v21044_v47  ;;  %vm21160_vm6 = vcmp.eq.f32.partialorder %v15515_v58, %v14087_v34 }
 0x15c   : > { %vm9889_vm12 = vmor %vm21157_vm10, %vm9377_vm7  ;;  %v13321_v56 = vsel %vm21158_vm0, 1.0, %v20700_v18  ;;  %vm8165_vm0 = vcmp.lt.f32.partialorder %v15529_v25, %v14087_v34  ;;  %v11374_v49 = vrot.slane %v15859_v19, 2  ;;  %vm21162_vm5 = vcmp.lt.f32.partialorder %v15515_v58, %v14087_v34  ;;  %7437 = vbcast.lane.b32.xlu1 %v15640_v7, 344  ;;  %7433 = vbcast.lane.b32.xlu0 %v15640_v7, 336 }
 0x15d   : > { %v13322_v29 = vsel %vm9889_vm12, 1.0, %v20700_v18  ;;  %v11405_v5 = vadd.f32 %v13321_v56, %v11404_v30  ;;  %vm9383_vm10 = vmand %vm21160_vm6, %vm21159_vm9  ;;  %vm21161_vm12 = vcmp.lt.f32.partialorder %v15490_v39, %v14084_v33  ;;  %v13324_v51 = vsel %vm15868_vm8, 1.0, %v20700_v18  ;;  %v15938_v30 = vpop.permute.xlu1 %7196 }
 0x15e   : > { %v13323_v27 = vsel %vm21161_vm12, 1.0, %v20700_v18  ;;  %v11442_v23 = vadd.f32 %v13322_v29, %v11441_v17  ;;  %vm15919_vm6 = vmor %vm21162_vm5, %vm9383_vm10  ;;  %vm21165_vm9 = vnez %v21049_v42  ;;  %vm21166_vm5 = vcmp.eq.f32.partialorder %v15529_v25, %v14087_v34  ;;  %v15948_v34 = vpop.permute.xlu0 %7192 }
 0x15f   : > { %vm9381_vm10 = vmand %vm21166_vm5, %vm21165_vm9  ;;  %v11406_v39 = vadd.f32 %v13323_v27, %v11405_v5  ;;  %vm21167_vm8 = vcmp.lt.f32.partialorder %v15529_v25, %v14084_v33  ;;  %v11338_v17 = vadd.f32 %v11337_v62, %v11336_v15  ;;  %vm21169_vm5 = vcmp.eq.f32.partialorder %v15547_v6, %v14089_v35 }
 0x160   : > { %vm9893_vm7 = vmor %vm8165_vm0, %vm9381_vm10  ;;  %v13325_v9 = vsel %vm21167_vm8, 1.0, %v20700_v18  ;;  %v11443_v56 = vadd.f32 %v13324_v51, %v11442_v23  ;;  %vm21168_vm0 = vnez %v20884_v1  ;;  %vm21170_vm12 = vcmp.lt.f32.partialorder %v15515_v58, %v14084_v33  ;;  %7445 = vbcast.lane.b32.xlu1 %v15640_v7, 360  ;;  %7441 = vbcast.lane.b32.xlu0 %v15640_v7, 352 }
 0x161   : > { %v13326_v29 = vsel %vm9893_vm7, 1.0, %v20700_v18  ;;  %v11407_v5 = vadd.f32 %v13325_v9, %v11406_v39  ;;  %vm9386_vm10 = vmand %vm21169_vm5, %vm21168_vm0  ;;  %v13327_v25 = vsel %vm21170_vm12, 1.0, %v20700_v18  ;;  %v13328_v62 = vsel %vm15919_vm6, 1.0, %v20700_v18  ;;  %v15986_v58 = vpop.permute.xlu1 %7204 }
 0x162   : > { %v11444_v15 = vadd.f32 %v13326_v29, %v11443_v56  ;;  %vm9898_vm7 = vmor %vm8170_vm3, %vm9386_vm10  ;;  %vm21171_vm5 = vcmp.eq.f32.partialorder %v15547_v6, %v14092_v36  ;;  %vm21172_vm12 = vcmp.lt.f32.partialorder %v15547_v6, %v14092_v36  ;;  %vm8681_vm10 = vcmp.eq.f32.partialorder %v15554_v8, %v14092_v36  ;;  %v15996_v6 = vpop.permute.xlu0 %7200 }
 0x163   : > { %v11408_v27 = vadd.f32 %v13327_v25, %v11407_v5  ;;  %vm15978_vm8 = vmor %vm21172_vm12, %vm21171_vm5  ;;  %v13331_v26 = vsel %vm9898_vm7, 1.0, %v20700_v18  ;;  %vm21175_vm6 = vnez %v20870_v54  ;;  %v11339_v51 = vrot.slane %v11338_v17, 1 }
 0x164   : > { %v11445_v23 = vadd.f32 %v13328_v62, %v11444_v15  ;;  %vm9384_vm5 = vmand %vm21176_vm11, %vm21175_vm6  ;;  %v15999_v39 = vadd.f32 %v11374_v49, %v15859_v19  ;;  %vm21177_vm3 = vcmp.lt.f32.partialorder %v15554_v8, %v14089_v35  ;;  %vm8174_vm0 = vcmp.lt.f32.partialorder %v15584_v37, %v14089_v35  ;;  %7453 = vbcast.lane.b32.xlu1 %v15640_v7, 376 }
 0x165   : > { %v11409_v9 = vrot.slane %v11408_v27, 4  ;;  %vm9896_vm7 = vmor %vm21177_vm3, %vm9384_vm5  ;;  %vm21178_vm11 = vcmp.lt.f32.partialorder %v15554_v8, %v14092_v36  ;;  %v21181_v49 = vsub.s32 4, %v14044_v3  ;;  %vm21183_vm5 = vcmp.eq.f32.partialorder %v15584_v37, %v14089_v35  ;;  %v16032_v15 = vpop.permute.xlu1 %7212  ;;  %7449 = vbcast.lane.b32.xlu0 %v15640_v7, 368 }
 0x166   : > { %v11446_v56 = vrot.slane %v11445_v23, 4  ;;  %vm16010_vm12 = vmor %vm21178_vm11, %vm8681_vm10  ;;  %v13329_v19 = vsel %vm9896_vm7, 1.0, %v20700_v18  ;;  %vm21182_vm10 = vnez %v20877_v59  ;;  %vm8684_vm11 = vcmp.eq.f32.partialorder %v15593_v48, %v14089_v35 }
 0x167   : > { %v16023_v5 = vrot.slane %v15347_v14, %v21181_v49  ;;  %v11410_v8 = vadd.f32 %v11409_v9, %v11408_v27  ;;  %v11452_v25 = vadd.f32 %v13331_v26, %v13329_v19  ;;  %vm9390_vm7 = vmand %vm21183_vm5, %vm21182_vm10  ;;  %vm8172_vm9 = vcmp.lt.f32.partialorder %v15593_v48, %v14089_v35  ;;  %v16045_v27 = vpop.permute.xlu0 %7208 }
 0x168   : > { %v11447_v62 = vadd.f32 %v11446_v56, %v11445_v23  ;;  %vm16037_vm3 = vmor %vm8174_vm0, %vm9390_vm7  ;;  %v13332_v23 = vsel %vm15978_vm8, 1.0, %v20700_v18  ;;  %v13330_v9 = vsel %vm16010_vm12, 1.0, %v20700_v18  ;;  %vm21186_vm0 = vcmp.eq.f32.partialorder %v15584_v37, %v14092_v36  ;;  %v21212_v56 = vld [vmem:[#allocation26_spill] sm:$0xff] }
 0x169   : > { %v11411_v26 = vrot.slane %v11410_v8, 2  ;;  %vm21187_vm7 = vcmp.lt.f32.partialorder %v15584_v37, %v14092_v36  ;;  %v11340_v33 = vadd.f32 %v11339_v51, %v11338_v17  ;;  %v11376_v19 = vrot.slane %v15999_v39, 1  ;;  %v16084_v17 = vpop.permute.xlu1 %7220  ;;  %7464 = vbcast.lane.b32.xlu1 %v16023_v5, 264  ;;  %7460 = vbcast.lane.b32.xlu0 %v16023_v5, 256 }
 0x16a   : > { %vm16059_vm6 = vmor %vm21187_vm7, %vm21186_vm0  ;;  %v11448_v29 = vrot.slane %v11447_v62, 2  ;;  %vm21190_vm8 = vnez %v20867_v50  ;;  %vm8178_vm5 = vcmp.lt.f32.partialorder %v15632_v41, %v14089_v35  ;;  %v11489_v49 = vadd.f32 %v13332_v23, %v13330_v9 }
 0x16b   : > { %vm9388_vm12 = vmand %vm8684_vm11, %vm21190_vm8  ;;  %v11412_v37 = vadd.f32 %v11411_v26, %v11410_v8  ;;  %vm21191_vm11 = vcmp.eq.f32.partialorder %v15593_v48, %v14092_v36  ;;  %vm21192_vm0 = vcmp.lt.f32.partialorder %v15593_v48, %v14092_v36  ;;  %v16095_v8 = vpop.permute.xlu0 %7216  ;;  %vm21193_vm10 = vnez %v20891_v11 }
 0x16c   : > { %vm9900_vm7 = vmor %vm8172_vm9, %vm9388_vm12  ;;  %v11449_v51 = vadd.f32 %v11448_v29, %v11447_v62  ;;  %vm8688_vm12 = vcmp.eq.f32.partialorder %v15651_v4, %v14089_v35  ;;  %v13336_v62 = vsel %vm16059_vm6, 1.0, %v20700_v18  ;;  %v13335_v29 = vsel %vm16037_vm3, 1.0, %v20700_v18 }
 0x16d   : > { %vm9901_vm9 = vmor %vm21192_vm0, %vm21191_vm11  ;;  %v13333_v7 = vsel %vm9900_vm7, 1.0, %v20700_v18  ;;  %v11413_v26 = vrot.slane %v11412_v37, 1  ;;  %vm21194_vm0 = vcmp.eq.f32.partialorder %v15632_v41, %v14089_v35  ;;  %vm8176_vm7 = vcmp.lt.f32.partialorder %v15651_v4, %v14089_v35  ;;  %7472 = vbcast.lane.b32.xlu1 %v16023_v5, 280  ;;  %7468 = vbcast.lane.b32.xlu0 %v16023_v5, 272 }
 0x16e   : > { %v13334_v23 = vsel %vm9901_vm9, 1.0, %v20700_v18  ;;  %v11453_v9 = vadd.f32 %v13333_v7, %v11452_v25  ;;  %vm9394_vm11 = vmand %vm21194_vm0, %vm21193_vm10  ;;  %v11450_v48 = vrot.slane %v11449_v51, 1  ;;  %vm21197_vm3 = vcmp.lt.f32.partialorder %v15632_v41, %v14092_v36  ;;  %v16134_v7 = vpop.permute.xlu1 %7228 }
 0x16f   : > { %v11490_v50 = vadd.f32 %v13334_v23, %v11489_v49  ;;  %vm16113_vm6 = vmor %vm8178_vm5, %vm9394_vm11  ;;  %v11414_v25 = vadd.f32 %v11413_v26, %v11412_v37  ;;  %vm8689_vm0 = vcmp.eq.f32.partialorder %v15651_v4, %v14092_v36  ;;  %v11377_v37 = vadd.f32 %v11376_v19, %v15999_v39  ;;  %v16144_v23 = vpop.permute.xlu0 %7224 }
 0x170   : > { %vm16126_vm9 = vmor %vm21197_vm3, %vm8691_vm13  ;;  %v11454_v49 = vadd.f32 %v13335_v29, %v11453_v9  ;;  %v11451_v26 = vadd.f32 %v11450_v48, %v11449_v51  ;;  %vm21200_vm11 = vnez %v20894_v13  ;;  %vm21201_vm5 = vcmask 1041409   ;;  %v21205_v9 = vld [vmem:[#allocation25_spill] sm:$0xff] }
 0x171   : > { %vm9392_vm13 = vmand %vm8688_vm12, %vm21200_vm11  ;;  %v11491_v41 = vadd.f32 %v13336_v62, %v11490_v50  ;;  %v16147_v18 = vsel %vm21201_vm5, %v11414_v25, %v11340_v33  ;;  %vm8182_vm8 = vcmp.lt.f32.partialorder %v15690_v38, %v14089_v35  ;;  %vm21203_vm12 = vcmp.lt.f32.partialorder %v15651_v4, %v14092_v36  ;;  %7480 = vbcast.lane.b32.xlu1 %v16023_v5, 296 }
 0x172   : > { %vm9904_vm10 = vmor %vm8176_vm7, %vm9392_vm13  ;;  %v21204_v50 = vmov 0.0   ;;  %vm8695_vm7 = vcmp.eq.f32.partialorder %v15690_v38, %v14092_v36  ;;  %vm8692_vm13 = vcmp.eq.f32.partialorder %v15698_v2, %v14089_v35  ;;  %v16178_v4 = vpop.permute.xlu1 %7236  ;;  %7476 = vbcast.lane.b32.xlu0 %v16023_v5, 288  ;;  %vm8187_vm2 = vcmp.lt.f32.partialorder %v15737_v20, %v14092_v36 }
 0x173   : > { %vm21202_vm14 = vmmov %vm21201_vm5  ;;  %v13337_v19 = vsel %vm9904_vm10, 1.0, %v21204_v50  ;;  %vm8183_vm5 = vcmp.lt.f32.partialorder %v15690_v38, %v14092_v36  ;;  %v13340_v33 = vsel %vm16126_vm9, 1.0, %v21204_v50  ;;  %vm21207_vm10 = vcmp.eq.f32.partialorder %v15690_v38, %v14089_v35  ;;  %v16192_v14 = vpop.permute.xlu0 %7232 }
 0x174   : > { %v16156_v39 = vsel %vm21202_vm14, %v11451_v26, %v11377_v37  ;;  %vm9905_vm3 = vmor %vm21203_vm12, %vm8689_vm0  ;;  %v11455_v62 = vadd.f32 %v13337_v19, %v11454_v49  ;;  %vm21206_vm14 = vnez %v21205_v9  ;;  %v13339_v48 = vsel %vm16113_vm6, 1.0, %v21204_v50 }
 0x175   : > { %v13338_v51 = vsel %vm9905_vm3, 1.0, %v21204_v50  ;;  %vm9398_vm0 = vmand %vm21207_vm10, %vm21206_vm14  ;;  %vm8180_vm3 = vcmp.lt.f32.partialorder %v15698_v2, %v14089_v35  ;;  %vm8181_vm6 = vcmp.lt.f32.partialorder %v15698_v2, %v14092_v36  ;;  %vm8693_vm10 = vcmp.eq.f32.partialorder %v15698_v2, %v14092_v36  ;;  %7488 = vbcast.lane.b32.xlu1 %v16023_v5, 312 }
 0x176   : > { %v11492_v29 = vadd.f32 %v13338_v51, %v11491_v41  ;;  %vm16186_vm9 = vmor %vm8182_vm8, %vm9398_vm0  ;;  %v11456_v38 = vadd.f32 %v13339_v48, %v11455_v62  ;;  %vm21213_vm8 = vnez %v21212_v56  ;;  %vm8698_vm14 = vcmp.eq.f32.partialorder %v15737_v20, %v14089_v35  ;;  %v16210_v26 = vpop.permute.xlu1 %7244  ;;  %7484 = vbcast.lane.b32.xlu0 %v16023_v5, 304 }
 0x177   : > { %vm16194_vm12 = vmor %vm8183_vm5, %vm8695_vm7  ;;  %vm8186_vm7 = vcmp.lt.f32.partialorder %v15737_v20, %v14089_v35  ;;  %v16217_v41 = vpop.permute.xlu0 %7240  ;;  %v13343_v62 = vsel %vm16186_vm9, 1.0, %v21204_v50  ;;  %vm8185_vm9 = vcmp.lt.f32.partialorder %v15745_v57, %v14092_v36 }
 0x178   : > { %vm9396_vm0 = vmand %vm8692_vm13, %vm21213_vm8  ;;  %v11493_v37 = vadd.f32 %v13340_v33, %v11492_v29  ;;  %vm8699_vm13 = vcmp.eq.f32.partialorder %v15737_v20, %v14092_v36  ;;  %v13344_v19 = vsel %vm16194_vm12, 1.0, %v21204_v50  ;;  %vm8191_vm8 = vcmp.lt.f32.partialorder %v15784_v53, %v14092_v36  ;;  %v21226_v29 = vld [vmem:[#allocation30_spill] sm:$0xff] }
 0x179   : > { %vm9908_vm5 = vmor %vm8180_vm3, %vm9396_vm0  ;;  %vm21214_vm3 = vnez %v20912_v16  ;;  %vm8697_vm0 = vcmp.eq.f32.partialorder %v15745_v57, %v14092_v36  ;;  %7496 = vbcast.lane.b32.xlu1 %v16023_v5, 328 }
 0x17a   : > { %vm9909_vm11 = vmor %vm8181_vm6, %vm8693_vm10  ;;  %v13341_v2 = vsel %vm9908_vm5, 1.0, %v21204_v50  ;;  %vm8696_vm10 = vcmp.eq.f32.partialorder %v15745_v57, %v14089_v35  ;;  %v16249_v25 = vpop.permute.xlu1 %7252  ;;  %7492 = vbcast.lane.b32.xlu0 %v16023_v5, 320 }
 0x17b   : > { %v13342_v33 = vsel %vm9909_vm11, 1.0, %v21204_v50  ;;  %v11457_v51 = vadd.f32 %v13341_v2, %v11456_v38  ;;  %vm9402_vm6 = vmand %vm8698_vm14, %vm21214_vm3  ;;  %vm8184_vm11 = vcmp.lt.f32.partialorder %v15745_v57, %v14089_v35  ;;  %v21219_v38 = vld [vmem:[#allocation28_spill] sm:$0xff]  ;;  %v16255_v2 = vpop.permute.xlu0 %7248 }
 0x17c   : > { %v11494_v48 = vadd.f32 %v13342_v33, %v11493_v37  ;;  %vm16234_vm12 = vmor %vm8186_vm7, %vm9402_vm6  ;;  %vm21220_vm5 = vnez %v21219_v38  ;;  %vm8702_vm6 = vcmp.eq.f32.partialorder %v15784_v53, %v14089_v35 }
 0x17d   : > { %vm16241_vm14 = vmor %vm8187_vm2, %vm8699_vm13  ;;  %v11458_v20 = vadd.f32 %v13343_v62, %v11457_v51  ;;  %vm8190_vm13 = vcmp.lt.f32.partialorder %v15784_v53, %v14089_v35  ;;  %7504 = vbcast.lane.b32.xlu1 %v16023_v5, 344 }
 0x17e   : > { %vm9400_vm7 = vmand %vm8696_vm10, %vm21220_vm5  ;;  %v11495_v37 = vadd.f32 %v13344_v19, %v11494_v48  ;;  %vm8703_vm10 = vcmp.eq.f32.partialorder %v15784_v53, %v14092_v36  ;;  %v13348_v19 = vsel %vm16241_vm14, 1.0, %v21204_v50  ;;  %v16274_v62 = vpop.permute.xlu1 %7263  ;;  %v13347_v48 = vsel %vm16234_vm12, 1.0, %v21204_v50  ;;  %7500 = vbcast.lane.b32.xlu0 %v16023_v5, 336 }
 0x17f   : > { %vm9912_vm2 = vmor %vm8184_vm11, %vm9400_vm7  ;;  %vm21221_vm11 = vnez %v20922_v52  ;;  %vm8189_vm12 = vcmp.lt.f32.partialorder %v15793_v40, %v14092_v36 }
 0x180   : > { %vm9913_vm3 = vmor %vm8185_vm9, %vm8697_vm0  ;;  %v13345_v57 = vsel %vm9912_vm2, 1.0, %v21204_v50  ;;  %vm8700_vm0 = vcmp.eq.f32.partialorder %v15793_v40, %v14089_v35  ;;  %vm21227_vm2 = vnez %v21226_v29 }
 0x181   : > { %v13346_v33 = vsel %vm9913_vm3, 1.0, %v21204_v50  ;;  %v11459_v51 = vadd.f32 %v13345_v57, %v11458_v20  ;;  %vm9406_vm9 = vmand %vm8702_vm6, %vm21221_vm11  ;;  %vm8188_vm3 = vcmp.lt.f32.partialorder %v15793_v40, %v14089_v35  ;;  %v16288_v20 = vpop.permute.xlu0 %7259  ;;  %vm8701_vm6 = vcmp.eq.f32.partialorder %v15793_v40, %v14092_v36  ;;  %7512 = vbcast.lane.b32.xlu1 %v16023_v5, 360 }
 0x182   : > { %v11496_v38 = vadd.f32 %v13346_v33, %v11495_v37  ;;  %vm16282_vm14 = vmor %vm8190_vm13, %vm9406_vm9  ;;  %vm8706_vm9 = vcmp.eq.f32.partialorder %v15833_v31, %v14089_v35  ;;  %v16306_v33 = vpop.permute.xlu1 %7271  ;;  %7508 = vbcast.lane.b32.xlu0 %v16023_v5, 352 }
 0x183   : > { %vm16290_vm7 = vmor %vm8191_vm8, %vm8703_vm10  ;;  %v11460_v53 = vadd.f32 %v13347_v48, %v11459_v51  ;;  %vm8194_vm10 = vcmp.lt.f32.partialorder %v15833_v31, %v14089_v35  ;;  %v13351_v40 = vsel %vm16282_vm14, 1.0, %v21204_v50  ;;  %vm8193_vm14 = vcmp.lt.f32.partialorder %v15845_v24, %v14092_v36 }
 0x184   : > { %vm9404_vm13 = vmand %vm8700_vm0, %vm21227_vm2  ;;  %v11497_v37 = vadd.f32 %v13348_v19, %v11496_v38  ;;  %vm8195_vm0 = vcmp.lt.f32.partialorder %v15833_v31, %v14092_v36  ;;  %vm8707_vm2 = vcmp.eq.f32.partialorder %v15833_v31, %v14092_v36  ;;  %v13352_v19 = vsel %vm16290_vm7, 1.0, %v21204_v50 }
 0x185   : > { %vm9916_vm8 = vmor %vm8188_vm3, %vm9404_vm13  ;;  %v16314_v38 = vpop.permute.xlu0 %7267  ;;  %vm21228_vm3 = vnez %v20932_v60  ;;  %v21235_v60 = vsub.s32 5, %v14044_v3  ;;  %7520 = vbcast.lane.b32.xlu1 %v16023_v5, 376 }
 0x186   : > { %vm9917_vm11 = vmor %vm8189_vm12, %vm8701_vm6  ;;  %v13349_v51 = vsel %vm9916_vm8, 1.0, %v21204_v50  ;;  %vm8704_vm6 = vcmp.eq.f32.partialorder %v15845_v24, %v14089_v35  ;;  %v16346_v49 = vpop.permute.xlu1 %7279  ;;  %7516 = vbcast.lane.b32.xlu0 %v16023_v5, 368 }
 0x187   : > { %v13350_v48 = vsel %vm9917_vm11, 1.0, %v21204_v50  ;;  %v11461_v29 = vadd.f32 %v13349_v51, %v11460_v53  ;;  %vm9410_vm12 = vmand %vm8706_vm9, %vm21228_vm3  ;;  %vm8192_vm11 = vcmp.lt.f32.partialorder %v15845_v24, %v14089_v35  ;;  %vm8705_vm9 = vcmp.eq.f32.partialorder %v15845_v24, %v14092_v36 }
 0x188   : > { %v11498_v52 = vadd.f32 %v13350_v48, %v11497_v37  ;;  %vm16331_vm7 = vmor %vm8194_vm10, %vm9410_vm12  ;;  %v21233_v37 = vld [vmem:[#allocation32_spill] sm:$0xff]  ;;  %vm8710_vm12 = vcmp.eq.f32.partialorder %v15887_v46, %v14089_v35  ;;  %v16357_v16 = vrot.slane %v15635_v28, %v21235_v60 }
 0x189   : > { %vm16338_vm13 = vmor %vm8195_vm0, %vm8707_vm2  ;;  %v11462_v31 = vadd.f32 %v13351_v40, %v11461_v29  ;;  %vm21234_vm8 = vnez %v21233_v37  ;;  %v16352_v48 = vpop.permute.xlu0 %7275  ;;  %vm8198_vm0 = vcmp.lt.f32.partialorder %v15887_v46, %v14089_v35  ;;  %v13355_v40 = vsel %vm16331_vm7, 1.0, %v21204_v50 }
 0x18a   : > { %vm9408_vm10 = vmand %vm8704_vm6, %vm21234_vm8  ;;  %v11499_v51 = vadd.f32 %v13352_v19, %v11498_v52  ;;  %vm8199_vm6 = vcmp.lt.f32.partialorder %v15887_v46, %v14092_v36  ;;  %vm8711_vm8 = vcmp.eq.f32.partialorder %v15887_v46, %v14092_v36  ;;  %v13356_v52 = vsel %vm16338_vm13, 1.0, %v21204_v50  ;;  %v16376_v29 = vpop.permute.xlu1 %7287  ;;  %7531 = vbcast.lane.b32.xlu1 %v16357_v16, 264  ;;  %7527 = vbcast.lane.b32.xlu0 %v16357_v16, 256 }
 0x18b   : > { %vm9920_vm2 = vmor %vm8192_vm11, %vm9408_vm10  ;;  %vm21236_vm11 = vnez %v20942_v55  ;;  %vm8197_vm7 = vcmp.lt.f32.partialorder %v15898_v10, %v14092_v36 }
 0x18c   : > { %vm9921_vm3 = vmor %vm8193_vm14, %vm8705_vm9  ;;  %v13353_v24 = vsel %vm9920_vm2, 1.0, %v21204_v50  ;;  %vm8708_vm9 = vcmp.eq.f32.partialorder %v15898_v10, %v14089_v35 }
 0x18d   : > { %v13354_v60 = vsel %vm9921_vm3, 1.0, %v21204_v50  ;;  %v11463_v28 = vadd.f32 %v13353_v24, %v11462_v31  ;;  %vm9414_vm14 = vmand %vm8710_vm12, %vm21236_vm11  ;;  %vm8196_vm3 = vcmp.lt.f32.partialorder %v15898_v10, %v14089_v35  ;;  %v16390_v53 = vpop.permute.xlu0 %7283  ;;  %vm8709_vm12 = vcmp.eq.f32.partialorder %v15898_v10, %v14092_v36 }
 0x18e   : > { %v11500_v5 = vadd.f32 %v13354_v60, %v11499_v51  ;;  %vm16384_vm13 = vmor %vm8198_vm0, %vm9414_vm14  ;;  %vm8715_vm0 = vcmp.eq.f32.partialorder %v15938_v30, %v14092_v36  ;;  %v16408_v24 = vpop.permute.xlu1 %7295  ;;  %vm8200_vm11 = vcmp.lt.f32.partialorder %v15948_v34, %v14089_v35  ;;  %7539 = vbcast.lane.b32.xlu1 %v16357_v16, 280  ;;  %7535 = vbcast.lane.b32.xlu0 %v16357_v16, 272 }
 0x18f   : > { %vm16392_vm10 = vmor %vm8199_vm6, %vm8711_vm8  ;;  %v11464_v46 = vadd.f32 %v13355_v40, %v11463_v28  ;;  %vm8203_vm6 = vcmp.lt.f32.partialorder %v15938_v30, %v14092_v36 }
 0x190   : > { %vm9412_vm2 = vmand %vm8708_vm9, %vm21107_vm4  ;;  %v11501_v51 = vadd.f32 %v13356_v52, %v11500_v5  ;;  %vm8713_vm9 = vcmp.eq.f32.partialorder %v15948_v34, %v14092_v36  ;;  %v13360_v60 = vsel %vm16392_vm10, 1.0, %v21204_v50  ;;  %v13359_v5 = vsel %vm16384_vm13, 1.0, %v21204_v50 }
 0x191   : > { %vm9924_vm8 = vmor %vm8196_vm3, %vm9412_vm2  ;;  %v16415_v52 = vpop.permute.xlu0 %7291  ;;  %vm8202_vm2 = vcmp.lt.f32.partialorder %v15938_v30, %v14089_v35  ;;  %vm8207_vm13 = vcmp.lt.f32.partialorder %v15986_v58, %v14092_v36  ;;  %v21249_v30 = vld [vmem:[#allocation38_spill] sm:$0xff] }
 0x192   : > { %vm9925_vm14 = vmor %vm8197_vm7, %vm8709_vm12  ;;  %v13357_v10 = vsel %vm9924_vm8, 1.0, %v21204_v50  ;;  %vm8201_vm7 = vcmp.lt.f32.partialorder %v15948_v34, %v14092_v36  ;;  %vm8719_vm12 = vcmp.eq.f32.partialorder %v15986_v58, %v14092_v36  ;;  %7547 = vbcast.lane.b32.xlu1 %v16357_v16, 296  ;;  %v13363_v34 = vsel %vm8202_vm2, 1.0, %v21204_v50  ;;  %7543 = vbcast.lane.b32.xlu0 %v16357_v16, 288 }
 0x193   : > { %v13358_v28 = vsel %vm9925_vm14, 1.0, %v21204_v50  ;;  %v11465_v40 = vadd.f32 %v13357_v10, %v11464_v46  ;;  %vm9419_vm3 = vmand %vm8715_vm0, %vm21108_vm15  ;;  %v13361_v10 = vsel %vm8200_vm11, 1.0, %v21204_v50  ;;  %vm8206_vm2 = vcmp.lt.f32.partialorder %v15986_v58, %v14089_v35 }
 0x194   : > { %v11502_v57 = vadd.f32 %v13358_v28, %v11501_v51  ;;  %vm16432_vm10 = vmor %vm8203_vm6, %vm9419_vm3  ;;  %v16445_v51 = vpop.permute.xlu1 %7303  ;;  %vm8717_vm6 = vcmp.eq.f32.partialorder %v15996_v6, %v14092_v36  ;;  %vm8204_vm3 = vcmp.lt.f32.partialorder %v15996_v6, %v14089_v35 }
 0x195   : > { %vm9417_vm0 = vmand %vm8713_vm9, %vm21111_vm1  ;;  %v11466_v19 = vadd.f32 %v13359_v5, %v11465_v40  ;;  %v16453_v61 = vpop.permute.xlu0 %7299  ;;  %v21245_v5 = vld [vmem:[#allocation37_spill] sm:$0xff]  ;;  %v13365_v31 = vsel %vm8204_vm3, 1.0, %v21204_v50  ;;  %vm8209_vm3 = vcmp.lt.f32.partialorder %v16045_v27, %v14092_v36 }
 0x196   : > { %vm9929_vm8 = vmor %vm8201_vm7, %vm9417_vm0  ;;  %v11503_v28 = vadd.f32 %v13360_v60, %v11502_v57  ;;  %vm21246_vm14 = vnez %v21245_v5  ;;  %vm8205_vm7 = vcmp.lt.f32.partialorder %v15996_v6, %v14092_v36  ;;  %vm21250_vm0 = vnez %v21249_v30  ;;  %7555 = vbcast.lane.b32.xlu1 %v16357_v16, 312  ;;  %7551 = vbcast.lane.b32.xlu0 %v16357_v16, 304 }
 0x197   : > { %v13362_v46 = vsel %vm9929_vm8, 1.0, %v21204_v50  ;;  %v11467_v40 = vadd.f32 %v13361_v10, %v11466_v19  ;;  %vm9423_vm9 = vmand %vm8719_vm12, %vm21246_vm14  ;;  %vm8723_vm12 = vcmp.eq.f32.partialorder %v16032_v15, %v14092_v36  ;;  %v13364_v19 = vsel %vm16432_vm10, 1.0, %v21204_v50 }
 0x198   : > { %v11504_v57 = vadd.f32 %v13362_v46, %v11503_v28  ;;  %vm16470_vm11 = vmor %vm8207_vm13, %vm9423_vm9  ;;  %vm8211_vm8 = vcmp.lt.f32.partialorder %v16032_v15, %v14092_v36  ;;  %v16489_v10 = vpop.permute.xlu1 %7311  ;;  %vm8721_vm10 = vcmp.eq.f32.partialorder %v16045_v27, %v14092_v36  ;;  %v13367_v6 = vsel %vm8206_vm2, 1.0, %v21204_v50 }
 0x199   : > { %vm9421_vm13 = vmand %vm8717_vm6, %vm21250_vm0  ;;  %v11468_v46 = vadd.f32 %v13363_v34, %v11467_v40  ;;  %v16497_v30 = vpop.permute.xlu0 %7307  ;;  %vm21251_vm6 = vnez %v20970_v45  ;;  %vm21258_vm2 = vcmp.lt.f32.partialorder %v16032_v15, %v14089_v35 }
 0x19a   : > { %vm9933_vm9 = vmor %vm8205_vm7, %vm9421_vm13  ;;  %v11505_v28 = vadd.f32 %v13364_v19, %v11504_v57  ;;  %v13368_v19 = vsel %vm16470_vm11, 1.0, %v21204_v50  ;;  %vm21254_vm13 = vnez %v20975_v63  ;;  %vm21255_vm11 = vcmp.lt.f32.partialorder %v16045_v27, %v14089_v35  ;;  %7563 = vbcast.lane.b32.xlu1 %v16357_v16, 328  ;;  %7559 = vbcast.lane.b32.xlu0 %v16357_v16, 320 }
 0x19b   : > { %v13366_v5 = vsel %vm9933_vm9, 1.0, %v21204_v50  ;;  %v11469_v40 = vadd.f32 %v13365_v31, %v11468_v46  ;;  %vm9427_vm7 = vmand %vm8723_vm12, %vm21251_vm6  ;;  %v13369_v60 = vsel %vm21255_vm11, 1.0, %v21204_v50  ;;  %vm8213_vm11 = vcmp.lt.f32.partialorder %v16095_v8, %v14092_v36 }
 0x19c   : > { %v11506_v34 = vadd.f32 %v13366_v5, %v11505_v28  ;;  %vm16517_vm9 = vmor %vm8211_vm8, %vm9427_vm7  ;;  %v16536_v5 = vpop.permute.xlu1 %7319  ;;  %vm21257_vm7 = vcmp.eq.f32.partialorder %v16084_v17, %v14092_v36  ;;  %v13371_v27 = vsel %vm21258_vm2, 1.0, %v21204_v50  ;;  %vm21267_vm2 = vcmp.lt.f32.partialorder %v16084_v17, %v14089_v35 }
 0x19d   : > { %vm9425_vm8 = vmand %vm8721_vm10, %vm21254_vm13  ;;  %v11470_v58 = vadd.f32 %v13367_v6, %v11469_v40  ;;  %v16544_v31 = vpop.permute.xlu0 %7315  ;;  %vm21256_vm10 = vnez %v20982_v32 }
 0x19e   : > { %vm9937_vm12 = vmor %vm8209_vm3, %vm9425_vm8  ;;  %v11507_v46 = vadd.f32 %v13368_v19, %v11506_v34  ;;  %v13372_v19 = vsel %vm16517_vm9, 1.0, %v21204_v50  ;;  %vm21262_vm8 = vnez %v20987_v43  ;;  %vm21264_vm9 = vcmp.lt.f32.partialorder %v16095_v8, %v14089_v35  ;;  %7571 = vbcast.lane.b32.xlu1 %v16357_v16, 344  ;;  %7567 = vbcast.lane.b32.xlu0 %v16357_v16, 336 }
 0x19f   : > { %v13370_v28 = vsel %vm9937_vm12, 1.0, %v21204_v50  ;;  %v11471_v40 = vadd.f32 %v13369_v60, %v11470_v58  ;;  %vm9431_vm3 = vmand %vm21257_vm7, %vm21256_vm10  ;;  %vm21259_vm12 = vcmp.lt.f32.partialorder %v16084_v17, %v14092_v36  ;;  %v13373_v57 = vsel %vm21264_vm9, 1.0, %v21204_v50 }
 0x1a0   : > { %v11508_v6 = vadd.f32 %v13370_v28, %v11507_v46  ;;  %vm16564_vm13 = vmor %vm21259_vm12, %vm9431_vm3  ;;  %vm21263_vm3 = vcmp.eq.f32.partialorder %v16095_v8, %v14092_v36  ;;  %v16583_v58 = vpop.permute.xlu1 %7330  ;;  %vm21266_vm10 = vcmp.eq.f32.partialorder %v16134_v7, %v14092_v36  ;;  %vm8217_vm9 = vcmp.lt.f32.partialorder %v16144_v23, %v14092_v36 }
 0x1a1   : > { %vm9429_vm12 = vmand %vm21263_vm3, %vm21262_vm8  ;;  %v11472_v15 = vadd.f32 %v13371_v27, %v11471_v40  ;;  %v16591_v46 = vpop.permute.xlu0 %7326  ;;  %vm21265_vm3 = vnez %v20995_v44  ;;  %v13375_v8 = vsel %vm21267_vm2, 1.0, %v21204_v50  ;;  %vm21277_vm2 = vcmp.lt.f32.partialorder %v16178_v4, %v14092_v36 }
 0x1a2   : > { %vm9941_vm7 = vmor %vm8213_vm11, %vm9429_vm12  ;;  %v11509_v60 = vadd.f32 %v13372_v19, %v11508_v6  ;;  %v13376_v19 = vsel %vm16564_vm13, 1.0, %v21204_v50  ;;  %vm21271_vm12 = vnez %v21000_v21  ;;  %vm21273_vm13 = vcmp.lt.f32.partialorder %v16144_v23, %v14089_v35  ;;  %7579 = vbcast.lane.b32.xlu1 %v16357_v16, 360  ;;  %7575 = vbcast.lane.b32.xlu0 %v16357_v16, 352 }
 0x1a3   : > { %v13374_v28 = vsel %vm9941_vm7, 1.0, %v21204_v50  ;;  %v11473_v40 = vadd.f32 %v13373_v57, %v11472_v15  ;;  %vm9435_vm11 = vmand %vm21266_vm10, %vm21265_vm3  ;;  %vm21268_vm7 = vcmp.lt.f32.partialorder %v16134_v7, %v14092_v36  ;;  %v13377_v34 = vsel %vm21273_vm13, 1.0, %v21204_v50 }
 0x1a4   : > { %v11510_v27 = vadd.f32 %v13374_v28, %v11509_v60  ;;  %vm16611_vm8 = vmor %vm21268_vm7, %vm9435_vm11  ;;  %vm21272_vm11 = vcmp.eq.f32.partialorder %v16144_v23, %v14092_v36  ;;  %v16630_v15 = vpop.permute.xlu1 %7338  ;;  %vm21275_vm3 = vcmp.eq.f32.partialorder %v16178_v4, %v14092_v36  ;;  %vm21287_vm13 = vnez %v21026_v0 }
 0x1a5   : > { %vm9433_vm7 = vmand %vm21272_vm11, %vm21271_vm12  ;;  %v11474_v17 = vadd.f32 %v13375_v8, %v11473_v40  ;;  %v16638_v60 = vpop.permute.xlu0 %7334  ;;  %vm21274_vm11 = vnez %v21008_v22 }
 0x1a6   : > { %vm9945_vm10 = vmor %vm8217_vm9, %vm9433_vm7  ;;  %v11511_v57 = vadd.f32 %v13376_v19, %v11510_v27  ;;  %v13380_v19 = vsel %vm16611_vm8, 1.0, %v21204_v50  ;;  %vm21285_vm8 = vcmp.lt.f32.partialorder %v16192_v14, %v14092_v36  ;;  %7587 = vbcast.lane.b32.xlu1 %v16357_v16, 376  ;;  %7583 = vbcast.lane.b32.xlu0 %v16357_v16, 368 }
 0x1a7   : > { %v13378_v28 = vsel %vm9945_vm10, 1.0, %v21204_v50  ;;  %v11475_v40 = vadd.f32 %v13377_v34, %v11474_v17  ;;  %vm9439_vm9 = vmand %vm21275_vm3, %vm21274_vm11  ;;  %vm21276_vm10 = vcmp.lt.f32.partialorder %v16134_v7, %v14089_v35  ;;  %v21280_v7 = vld [vmem:[#allocation46_spill] sm:$0xff]  ;;  %vm21286_vm3 = vcmp.lt.f32.partialorder %v16192_v14, %v14089_v35 }
 0x1a8   : > { %v13379_v23 = vsel %vm21276_vm10, 1.0, %v21204_v50  ;;  %v11512_v8 = vadd.f32 %v13378_v28, %v11511_v57  ;;  %vm16658_vm12 = vmor %vm21277_vm2, %vm9439_vm9  ;;  %vm21281_vm7 = vnez %v21280_v7  ;;  %vm21282_vm2 = vcmp.eq.f32.partialorder %v16192_v14, %v14092_v36  ;;  %v16677_v34 = vpop.permute.xlu1 %7346  ;;  %v13790_v57 = vld [vmem:[%s14037_s28 + $0x8] sm:$0xff] }
 0x1a9   : > { %vm9437_vm9 = vmand %vm21282_vm2, %vm21281_vm7  ;;  %v11476_v17 = vadd.f32 %v13379_v23, %v11475_v40  ;;  %v21283_v28 = vsub.s32 5, %v14044_v3  ;;  %v13381_v7 = vsel %vm21286_vm3, 1.0, %v21204_v50  ;;  %v16693_v23 = vpop.permute.xlu0 %7342  ;;  %vm21288_vm7 = vcmp.eq.f32.partialorder %v16210_v26, %v14092_v36 }
 0x1aa   : > { %vm9949_vm10 = vmor %vm21285_vm8, %vm9437_vm9  ;;  %v11513_v40 = vadd.f32 %v13380_v19, %v11512_v8  ;;  %vm8225_vm3 = vcmp.lt.f32.partialorder %v16217_v41, %v14092_v36  ;;  %vm21289_vm2 = vcmp.lt.f32.partialorder %v16178_v4, %v14089_v35  ;;  %vm21293_vm8 = vnez %v21031_v12 }
 0x1ab   : > { %v16682_v6 = vrot.slane %v13790_v57, %v21283_v28  ;;  %v13382_v22 = vsel %vm9949_vm10, 1.0, %v21204_v50  ;;  %v11477_v21 = vadd.f32 %v13381_v7, %v11476_v17  ;;  %vm9443_vm9 = vmand %vm21288_vm7, %vm21287_vm13  ;;  %v13383_v14 = vsel %vm21289_vm2, 1.0, %v21204_v50 }
 0x1ac   : > { %v11514_v8 = vadd.f32 %v13382_v22, %v11513_v40  ;;  %vm21290_vm10 = vcmp.lt.f32.partialorder %v16210_v26, %v14092_v36  ;;  %v13384_v7 = vsel %vm16658_vm12, 1.0, %v21204_v50  ;;  %v16732_v4 = vpop.permute.xlu1 %7354  ;;  %vm21295_vm12 = vcmp.lt.f32.partialorder %v16217_v41, %v14089_v35 }
 0x1ad   : > { %21284 = vst [vmem:[#allocation25_spill] sm:$0xff] %v16682_v6  ;;  %vm16713_vm11 = vmor %vm21290_vm10, %vm9443_vm9  ;;  %vm21294_vm9 = vcmp.eq.f32.partialorder %v16217_v41, %v14092_v36  ;;  %v11478_v22 = vadd.f32 %v13383_v14, %v11477_v21  ;;  %v13385_v16 = vsel %vm21295_vm12, 1.0, %v21204_v50  ;;  %v16740_v17 = vpop.permute.xlu0 %7350  ;;  %vm21297_vm13 = vcmp.eq.f32.partialorder %v16249_v25, %v14092_v36  ;;  %7598 = vbcast.lane.b32.xlu1 %v16682_v6, 264  ;;  %v21302_v14 = vld [vmem:[#allocation14_spill] sm:$0xff] }
 0x1ae   : > { %vm9441_vm10 = vmand %vm21294_vm9, %vm21293_vm8  ;;  %v11515_v27 = vadd.f32 %v13384_v7, %v11514_v8  ;;  %vm21296_vm9 = vnez %v21044_v47  ;;  %vm8229_vm12 = vcmp.lt.f32.partialorder %v16255_v2, %v14092_v36  ;;  %vm21298_vm2 = vcmp.lt.f32.partialorder %v16210_v26, %v14089_v35  ;;  %7594 = vbcast.lane.b32.xlu0 %v16682_v6, 256 }
 0x1af   : > { %vm9953_vm7 = vmor %vm8225_vm3, %vm9441_vm10  ;;  %v11479_v21 = vadd.f32 %v13385_v16, %v11478_v22  ;;  %v13387_v41 = vsel %vm21298_vm2, 1.0, %v21204_v50  ;;  %v13388_v8 = vsel %vm16713_vm11, 1.0, %v21204_v50  ;;  %vm21303_vm10 = vnez %v21049_v42  ;;  %v21306_v16 = vld [vmem:[#allocation15_spill] sm:$0xff] }
 0x1b0   : > { %v13386_v57 = vsel %vm9953_vm7, 1.0, %v21204_v50  ;;  %vm9447_vm3 = vmand %vm21297_vm13, %vm21296_vm9  ;;  %vm21299_vm7 = vcmp.lt.f32.partialorder %v16249_v25, %v14092_v36  ;;  %vm8234_vm9 = vcmp.lt.f32.partialorder %v16274_v62, %v21302_v14  ;;  %v16779_v7 = vpop.permute.xlu1 %7362  ;;  %vm21305_vm11 = vcmp.lt.f32.partialorder %v16255_v2, %v14089_v35 }
 0x1b1   : > { %v11516_v28 = vadd.f32 %v13386_v57, %v11515_v27  ;;  %vm16760_vm8 = vmor %vm21299_vm7, %vm9447_vm3  ;;  %vm21304_vm3 = vcmp.eq.f32.partialorder %v16255_v2, %v14092_v36  ;;  %v11480_v26 = vadd.f32 %v13387_v41, %v11479_v21  ;;  %v13389_v19 = vsel %vm21305_vm11, 1.0, %v21204_v50  ;;  %v16789_v36 = vpop.permute.xlu0 %7358  ;;  %7606 = vbcast.lane.b32.xlu1 %v16682_v6, 280 }
 0x1b2   : > { %vm9445_vm7 = vmand %vm21304_vm3, %vm21303_vm10  ;;  %vm8747_vm6 = vcmp.eq.f32.partialorder %v16274_v62, %v21306_v16  ;;  %vm21307_vm3 = vnez %v20884_v1  ;;  %vm21309_vm2 = vcmp.lt.f32.partialorder %v16249_v25, %v14089_v35  ;;  %vm8232_vm10 = vcmp.lt.f32.partialorder %v16288_v20, %v21302_v14  ;;  %7602 = vbcast.lane.b32.xlu0 %v16682_v6, 272  ;;  %v13791_v35 = vld [vmem:[%s14037_s28] sm:$0xff] }
 0x1b3   : > { %vm9957_vm13 = vmor %vm8229_vm12, %vm9445_vm7  ;;  %v11517_v22 = vadd.f32 %v13388_v8, %v11516_v28  ;;  %v11481_v57 = vadd.f32 %v13389_v19, %v11480_v26  ;;  %vm21308_vm12 = vcmp.eq.f32.partialorder %v16274_v62, %v21302_v14  ;;  %v13391_v2 = vsel %vm21309_vm2, 1.0, %v21204_v50 }
 0x1b4   : > { %v13390_v27 = vsel %vm9957_vm13, 1.0, %v21204_v50  ;;  %vm9450_vm7 = vmand %vm21308_vm12, %vm21307_vm3  ;;  %v13392_v41 = vsel %vm16760_vm8, 1.0, %v21204_v50  ;;  %vm21310_vm12 = vcmp.lt.f32.partialorder %v16274_v62, %v21306_v16  ;;  %vm8745_vm2 = vcmp.eq.f32.partialorder %v16288_v20, %v21306_v16  ;;  %v16824_v25 = vpop.permute.xlu1 %7370 }
 0x1b5   : > { %v11518_v21 = vadd.f32 %v13390_v27, %v11517_v22  ;;  %vm9962_vm13 = vmor %vm8234_vm9, %vm9450_vm7  ;;  %v11482_v28 = vadd.f32 %v13391_v2, %v11481_v57  ;;  %vm8233_vm9 = vcmp.lt.f32.partialorder %v16288_v20, %v21306_v16  ;;  %vm21313_vm8 = vnez %v20870_v54  ;;  %v16834_v62 = vpop.permute.xlu0 %7366  ;;  %7614 = vbcast.lane.b32.xlu1 %v16682_v6, 296  ;;  %v21324_v54 = vld [vmem:[#allocation20_spill] sm:$0xff] }
 0x1b6   : > { %vm16816_vm11 = vmor %vm21310_vm12, %vm8747_vm6  ;;  %v13395_v40 = vsel %vm9962_vm13, 1.0, %v21204_v50  ;;  %vm21314_vm7 = vcmp.eq.f32.partialorder %v16288_v20, %v21302_v14  ;;  %vm8750_vm12 = vcmp.eq.f32.partialorder %v16306_v33, %v21302_v14  ;;  %vm8238_vm0 = vcmp.lt.f32.partialorder %v16306_v33, %v21302_v14  ;;  %7610 = vbcast.lane.b32.xlu0 %v16682_v6, 288 }
 0x1b7   : > { %v11519_v8 = vadd.f32 %v13392_v41, %v11518_v21  ;;  %vm9448_vm6 = vmand %vm21314_vm7, %vm21313_vm8  ;;  %v11483_v26 = vrot.slane %v11482_v28, 4  ;;  %vm8751_vm8 = vcmp.eq.f32.partialorder %v16306_v33, %v21306_v16  ;;  %vm8251_vm1 = vcmp.lt.f32.partialorder %v16408_v24, %v21306_v16 }
 0x1b8   : > { %vm9960_vm3 = vmor %vm8232_vm10, %vm9448_vm6  ;;  %vm21317_vm10 = vnez %v20877_v59  ;;  %v16853_v2 = vpop.permute.xlu1 %7378 }
 0x1b9   : > { %v11520_v19 = vrot.slane %v11519_v8, 4  ;;  %vm16839_vm13 = vmor %vm8233_vm9, %vm8745_vm2  ;;  %v13393_v20 = vsel %vm9960_vm3, 1.0, %v21204_v50  ;;  %v11484_v27 = vadd.f32 %v11483_v26, %v11482_v28  ;;  %vm8748_vm9 = vcmp.eq.f32.partialorder %v16314_v38, %v21302_v14  ;;  %v16863_v28 = vpop.permute.xlu0 %7374  ;;  %7622 = vbcast.lane.b32.xlu1 %v16682_v6, 312 }
 0x1ba   : > { %v11526_v57 = vadd.f32 %v13395_v40, %v13393_v20  ;;  %vm9454_vm6 = vmand %vm8750_vm12, %vm21317_vm10  ;;  %vm8236_vm2 = vcmp.lt.f32.partialorder %v16314_v38, %v21302_v14  ;;  %v13396_v26 = vsel %vm16816_vm11, 1.0, %v21204_v50  ;;  %v21323_v20 = vsub.s32 6, %v14044_v3  ;;  %7618 = vbcast.lane.b32.xlu0 %v16682_v6, 304 }
 0x1bb   : > { %v11521_v21 = vadd.f32 %v11520_v19, %v11519_v8  ;;  %vm16855_vm3 = vmor %vm8238_vm0, %vm9454_vm6  ;;  %v11485_v40 = vrot.slane %v11484_v27, 2  ;;  %v13394_v8 = vsel %vm16839_vm13, 1.0, %v21204_v50  ;;  %vm21320_vm0 = vcmp.lt.f32.partialorder %v16306_v33, %v21306_v16 }
 0x1bc   : > { %vm16877_vm12 = vmor %vm21320_vm0, %vm8751_vm8  ;;  %v16887_v22 = vrot.slane %v13791_v35, %v21323_v20  ;;  %vm21325_vm13 = vnez %v21324_v54  ;;  %vm8242_vm11 = vcmp.lt.f32.partialorder %v16346_v49, %v21302_v14  ;;  %vm8755_vm10 = vcmp.eq.f32.partialorder %v16346_v49, %v21306_v16  ;;  %v16906_v20 = vpop.permute.xlu1 %7386 }
 0x1bd   : > { %v11522_v59 = vrot.slane %v11521_v21, 2  ;;  %vm9452_vm8 = vmand %vm8748_vm9, %vm21325_vm13  ;;  %v11486_v33 = vadd.f32 %v11485_v40, %v11484_v27  ;;  %v11563_v1 = vadd.f32 %v13396_v26, %v13394_v8  ;;  %vm21326_vm9 = vcmp.eq.f32.partialorder %v16314_v38, %v21306_v16  ;;  %v16917_v40 = vpop.permute.xlu0 %7382  ;;  %7630 = vbcast.lane.b32.xlu1 %v16682_v6, 328 }
 0x1be   : > { %vm9964_vm7 = vmor %vm8236_vm2, %vm9452_vm8  ;;  %vm21327_vm0 = vcmp.lt.f32.partialorder %v16314_v38, %v21306_v16  ;;  %vm8752_vm8 = vcmp.eq.f32.partialorder %v16352_v48, %v21302_v14  ;;  %vm21328_vm6 = vnez %v20891_v11  ;;  %v13399_v8 = vsel %vm16855_vm3, 1.0, %v21204_v50  ;;  %7626 = vbcast.lane.b32.xlu0 %v16682_v6, 320 }
 0x1bf   : > { %v11523_v54 = vadd.f32 %v11522_v59, %v11521_v21  ;;  %vm9965_vm2 = vmor %vm21327_vm0, %vm21326_vm9  ;;  %v13397_v27 = vsel %vm9964_vm7, 1.0, %v21204_v50  ;;  %v11487_v42 = vrot.slane %v11486_v33, 1  ;;  %v13400_v59 = vsel %vm16877_vm12, 1.0, %v21204_v50 }
 0x1c0   : > { %v13398_v21 = vsel %vm9965_vm2, 1.0, %v21204_v50  ;;  %v11527_v26 = vadd.f32 %v13397_v27, %v11526_v57  ;;  %vm21329_vm0 = vcmp.eq.f32.partialorder %v16346_v49, %v21302_v14  ;;  %vm21332_vm3 = vcmp.lt.f32.partialorder %v16346_v49, %v21306_v16  ;;  %v16956_v27 = vpop.permute.xlu1 %7397 }
 0x1c1   : > { %vm9458_vm9 = vmand %vm21329_vm0, %vm21328_vm6  ;;  %v11524_v38 = vrot.slane %v11523_v54, 1  ;;  %v11564_v47 = vadd.f32 %v13398_v21, %v11563_v1  ;;  %v11488_v57 = vadd.f32 %v11487_v42, %v11486_v33  ;;  %vm8753_vm0 = vcmp.eq.f32.partialorder %v16352_v48, %v21306_v16  ;;  %v16965_v33 = vpop.permute.xlu0 %7393  ;;  %7661 = vbcast.lane.b32.xlu1 %v16887_v22, 256 }
 0x1c2   : > { %vm16935_vm7 = vmor %vm8242_vm11, %vm9458_vm9  ;;  %v11528_v41 = vadd.f32 %v13399_v8, %v11527_v26  ;;  %vm21335_vm9 = vnez %v20894_v13  ;;  %v21336_v21 = vsub.s32 7, %v14044_v3  ;;  %vm21338_vm11 = vcmp.lt.f32.partialorder %v16352_v48, %v21302_v14  ;;  %7634 = vbcast.lane.b32.xlu0 %v16682_v6, 336  ;;  %v21363_v6 = vld [vmem:[#allocation31_spill] sm:$0xff] }
 0x1c3   : > { %vm16948_vm2 = vmor %vm21332_vm3, %vm8755_vm10  ;;  %v11525_v42 = vadd.f32 %v11524_v38, %v11523_v54  ;;  %v11565_v49 = vadd.f32 %v13400_v59, %v11564_v47  ;;  %vm21337_vm3 = vcmask 1042434   ;;  %v21354_v38 = vld [vmem:[#allocation28_spill] sm:$0xff] }
 0x1c4   : > { %vm9456_vm12 = vmand %vm8752_vm8, %vm21335_vm9  ;;  %v16969_v11 = vrot.slane %v13791_v35, %v21336_v21  ;;  %v16973_v26 = vsel %vm21337_vm3, %v11488_v57, %v16147_v18  ;;  %vm8246_vm8 = vcmp.lt.f32.partialorder %v16376_v29, %v21302_v14  ;;  %vm21340_vm9 = vcmp.lt.f32.partialorder %v16352_v48, %v21306_v16  ;;  %v17005_v48 = vpop.permute.xlu1 %7405 }
 0x1c5   : > { %vm9968_vm6 = vmor %vm21338_vm11, %vm9456_vm12  ;;  %vm8759_vm12 = vcmp.eq.f32.partialorder %v16376_v29, %v21306_v16  ;;  %v13404_v18 = vsel %vm16948_vm2, 1.0, %v21204_v50  ;;  %vm21341_vm11 = vnez %v21205_v9  ;;  %v13403_v35 = vsel %vm16935_vm7, 1.0, %v21204_v50  ;;  %v17019_v8 = vpop.permute.xlu0 %7401 }
 0x1c6   : > { %vm21339_vm10 = vmmov %vm21337_vm3  ;;  %v13401_v3 = vsel %vm9968_vm6, 1.0, %v21204_v50  ;;  %vm8247_vm3 = vcmp.lt.f32.partialorder %v16376_v29, %v21306_v16  ;;  %vm21342_vm6 = vcmp.eq.f32.partialorder %v16376_v29, %v21302_v14  ;;  %vm8244_vm2 = vcmp.lt.f32.partialorder %v16390_v53, %v21302_v14  ;;  %7795 = vbcast.lane.b32.xlu1 %v16969_v11, 256  ;;  %7665 = vbcast.lane.b32.xlu0 %v16887_v22, 264 }
 0x1c7   : > { %v16983_v54 = vsel %vm21339_vm10, %v11525_v42, %v16156_v39  ;;  %vm9969_vm13 = vmor %vm21340_vm9, %vm8753_vm0  ;;  %v11529_v39 = vadd.f32 %v13401_v3, %v11528_v41  ;;  %vm8756_vm9 = vcmp.eq.f32.partialorder %v16390_v53, %v21302_v14  ;;  %vm8245_vm7 = vcmp.lt.f32.partialorder %v16390_v53, %v21306_v16  ;;  %v21348_v3 = vld [vmem:[#allocation27_spill] sm:$0xff] }
 0x1c8   : > { %v13402_v47 = vsel %vm9969_vm13, 1.0, %v21204_v50  ;;  %vm9462_vm0 = vmand %vm21342_vm6, %vm21341_vm11  ;;  %vm8757_vm6 = vcmp.eq.f32.partialorder %v16390_v53, %v21306_v16  ;;  %vm8762_vm11 = vcmp.eq.f32.partialorder %v16408_v24, %v21302_v14  ;;  %v17037_v1 = vpop.permute.xlu1 %7413 }
 0x1c9   : > { %v11566_v59 = vadd.f32 %v13402_v47, %v11565_v49  ;;  %vm17013_vm13 = vmor %vm8246_vm8, %vm9462_vm0  ;;  %v11530_v29 = vadd.f32 %v13403_v35, %v11529_v39  ;;  %vm21347_vm8 = vnez %v21212_v56  ;;  %v17044_v41 = vpop.permute.xlu0 %7409  ;;  %v21361_v39 = vld [vmem:[#allocation30_spill] sm:$0xff] }
 0x1ca   : > { %vm17021_vm10 = vmor %vm8247_vm3, %vm8759_vm12  ;;  %vm8250_vm12 = vcmp.lt.f32.partialorder %v16408_v24, %v21302_v14  ;;  %7669 = vbcast.lane.b32.xlu1 %v16887_v22, 272  ;;  %7799 = vbcast.lane.b32.xlu0 %v16969_v11, 264 }
 0x1cb   : > { %vm9460_vm0 = vmand %vm8756_vm9, %vm21347_vm8  ;;  %v11567_v19 = vadd.f32 %v13404_v18, %v11566_v59  ;;  %vm8763_vm9 = vcmp.eq.f32.partialorder %v16408_v24, %v21306_v16  ;;  %v13408_v42 = vsel %vm17021_vm10, 1.0, %v21204_v50  ;;  %v13407_v18 = vsel %vm17013_vm13, 1.0, %v21204_v50 }
 0x1cc   : > { %vm9972_vm3 = vmor %vm8244_vm2, %vm9460_vm0  ;;  %vm21349_vm2 = vnez %v21348_v3  ;;  %vm8249_vm13 = vcmp.lt.f32.partialorder %v16415_v52, %v21306_v16  ;;  %vm8761_vm0 = vcmp.eq.f32.partialorder %v16415_v52, %v21306_v16  ;;  %v17076_v59 = vpop.permute.xlu1 %7421 }
 0x1cd   : > { %vm9973_vm14 = vmor %vm8245_vm7, %vm8757_vm6  ;;  %v13405_v53 = vsel %vm9972_vm3, 1.0, %v21204_v50  ;;  %vm8760_vm6 = vcmp.eq.f32.partialorder %v16415_v52, %v21302_v14 }
 0x1ce   : > { %v13406_v49 = vsel %vm9973_vm14, 1.0, %v21204_v50  ;;  %v11531_v21 = vadd.f32 %v13405_v53, %v11530_v29  ;;  %vm9466_vm7 = vmand %vm8762_vm11, %vm21349_vm2  ;;  %vm8248_vm14 = vcmp.lt.f32.partialorder %v16415_v52, %v21302_v14  ;;  %v17082_v29 = vpop.permute.xlu0 %7417  ;;  %7673 = vbcast.lane.b32.xlu1 %v16887_v22, 280  ;;  %vm8255_vm2 = vcmp.lt.f32.partialorder %v16445_v51, %v21306_v16  ;;  %7803 = vbcast.lane.b32.xlu0 %v16969_v11, 272 }
 0x1cf   : > { %v11568_v47 = vadd.f32 %v13406_v49, %v11567_v19  ;;  %vm17061_vm10 = vmor %vm8250_vm12, %vm9466_vm7  ;;  %vm8766_vm12 = vcmp.eq.f32.partialorder %v16445_v51, %v21302_v14  ;;  %v21355_v49 = vld [vmem:[#allocation29_spill] sm:$0xff] }
 0x1d0   : > { %vm17068_vm11 = vmor %vm8251_vm1, %vm8763_vm9  ;;  %v11532_v24 = vadd.f32 %v13407_v18, %v11531_v21  ;;  %vm8254_vm9 = vcmp.lt.f32.partialorder %v16445_v51, %v21302_v14  ;;  %v17101_v21 = vpop.permute.xlu1 %7429  ;;  %v13411_v18 = vsel %vm17061_vm10, 1.0, %v21204_v50  ;;  %vm8253_vm10 = vcmp.lt.f32.partialorder %v16453_v61, %v21306_v16 }
 0x1d1   : > { %vm9464_vm3 = vmand %vm8760_vm6, %vm21220_vm5  ;;  %v11569_v57 = vadd.f32 %v13408_v42, %v11568_v47  ;;  %vm8767_vm6 = vcmp.eq.f32.partialorder %v16445_v51, %v21306_v16  ;;  %v13412_v19 = vsel %vm17068_vm11, 1.0, %v21204_v50  ;;  %vm8259_vm5 = vcmp.lt.f32.partialorder %v16489_v10, %v21306_v16 }
 0x1d2   : > { %vm9976_vm1 = vmor %vm8248_vm14, %vm9464_vm3  ;;  %vm21356_vm14 = vnez %v21355_v49  ;;  %vm8252_vm3 = vcmp.lt.f32.partialorder %v16453_v61, %v21302_v14  ;;  %7677 = vbcast.lane.b32.xlu1 %v16887_v22, 288  ;;  %7807 = vbcast.lane.b32.xlu0 %v16969_v11, 280 }
 0x1d3   : > { %vm9977_vm7 = vmor %vm8249_vm13, %vm8761_vm0  ;;  %v13409_v52 = vsel %vm9976_vm1, 1.0, %v21204_v50  ;;  %vm8764_vm0 = vcmp.eq.f32.partialorder %v16453_v61, %v21302_v14  ;;  %vm8765_vm1 = vcmp.eq.f32.partialorder %v16453_v61, %v21306_v16 }
 0x1d4   : > { %v13410_v53 = vsel %vm9977_vm7, 1.0, %v21204_v50  ;;  %v11533_v42 = vadd.f32 %v13409_v52, %v11532_v24  ;;  %vm9470_vm13 = vmand %vm8766_vm12, %vm21356_vm14  ;;  %v17115_v24 = vpop.permute.xlu0 %7425 }
 0x1d5   : > { %v11570_v47 = vadd.f32 %v13410_v53, %v11569_v57  ;;  %vm17109_vm11 = vmor %vm8254_vm9, %vm9470_vm13  ;;  %vm21362_vm9 = vnez %v21361_v39  ;;  %vm8770_vm13 = vcmp.eq.f32.partialorder %v16489_v10, %v21302_v14  ;;  %v17133_v53 = vpop.permute.xlu1 %7437 }
 0x1d6   : > { %vm17117_vm12 = vmor %vm8255_vm2, %vm8767_vm6  ;;  %v11534_v51 = vadd.f32 %v13411_v18, %v11533_v42  ;;  %vm8258_vm6 = vcmp.lt.f32.partialorder %v16489_v10, %v21302_v14  ;;  %7681 = vbcast.lane.b32.xlu1 %v16887_v22, 296  ;;  %v13415_v39 = vsel %vm17109_vm11, 1.0, %v21204_v50  ;;  %7811 = vbcast.lane.b32.xlu0 %v16969_v11, 288  ;;  %vm8257_vm11 = vcmp.lt.f32.partialorder %v16497_v30, %v21306_v16 }
 0x1d7   : > { %vm9468_vm7 = vmand %vm8764_vm0, %vm21362_vm9  ;;  %v11571_v57 = vadd.f32 %v13412_v19, %v11570_v47  ;;  %vm8771_vm0 = vcmp.eq.f32.partialorder %v16489_v10, %v21306_v16  ;;  %v13416_v42 = vsel %vm17117_vm12, 1.0, %v21204_v50  ;;  %vm8263_vm9 = vcmp.lt.f32.partialorder %v16536_v5, %v21306_v16 }
 0x1d8   : > { %vm9980_vm2 = vmor %vm8252_vm3, %vm9468_vm7  ;;  %v17140_v19 = vpop.permute.xlu0 %7433  ;;  %vm21364_vm3 = vnez %v21363_v6 }
 0x1d9   : > { %vm9981_vm14 = vmor %vm8253_vm10, %vm8765_vm1  ;;  %v13413_v61 = vsel %vm9980_vm2, 1.0, %v21204_v50  ;;  %vm8768_vm1 = vcmp.eq.f32.partialorder %v16497_v30, %v21302_v14  ;;  %v17172_v35 = vpop.permute.xlu1 %7445  ;;  %vm21369_vm2 = vnez %v21233_v37 }
 0x1da   : > { %v13414_v18 = vsel %vm9981_vm14, 1.0, %v21204_v50  ;;  %v11535_v47 = vadd.f32 %v13413_v61, %v11534_v51  ;;  %vm9474_vm10 = vmand %vm8770_vm13, %vm21364_vm3  ;;  %vm8256_vm14 = vcmp.lt.f32.partialorder %v16497_v30, %v21302_v14  ;;  %vm8769_vm13 = vcmp.eq.f32.partialorder %v16497_v30, %v21306_v16  ;;  %7685 = vbcast.lane.b32.xlu1 %v16887_v22, 304  ;;  %7815 = vbcast.lane.b32.xlu0 %v16969_v11, 296  ;;  %v21380_v51 = vld [vmem:[#allocation36_spill] sm:$0xff] }
 0x1db   : > { %v11572_v49 = vadd.f32 %v13414_v18, %v11571_v57  ;;  %vm17157_vm12 = vmor %vm8258_vm6, %vm9474_vm10  ;;  %vm8774_vm10 = vcmp.eq.f32.partialorder %v16536_v5, %v21302_v14 }
 0x1dc   : > { %vm17164_vm7 = vmor %vm8259_vm5, %vm8771_vm0  ;;  %v11536_v10 = vadd.f32 %v13415_v39, %v11535_v47  ;;  %v17178_v61 = vpop.permute.xlu0 %7441  ;;  %vm8262_vm0 = vcmp.lt.f32.partialorder %v16536_v5, %v21302_v14  ;;  %v13419_v47 = vsel %vm17157_vm12, 1.0, %v21204_v50  ;;  %vm8261_vm12 = vcmp.lt.f32.partialorder %v16544_v31, %v21306_v16 }
 0x1dd   : > { %vm9472_vm6 = vmand %vm8768_vm1, %vm21369_vm2  ;;  %v11573_v57 = vadd.f32 %v13416_v42, %v11572_v49  ;;  %vm8775_vm1 = vcmp.eq.f32.partialorder %v16536_v5, %v21306_v16  ;;  %v13420_v49 = vsel %vm17164_vm7, 1.0, %v21204_v50  ;;  %v17197_v18 = vpop.permute.xlu1 %7453 }
 0x1de   : > { %vm9984_vm5 = vmor %vm8256_vm14, %vm9472_vm6  ;;  %vm21370_vm14 = vnez %v20942_v55  ;;  %7689 = vbcast.lane.b32.xlu1 %v16887_v22, 312  ;;  %7819 = vbcast.lane.b32.xlu0 %v16969_v11, 304 }
 0x1df   : > { %vm9985_vm3 = vmor %vm8257_vm11, %vm8769_vm13  ;;  %v13417_v30 = vsel %vm9984_vm5, 1.0, %v21204_v50  ;;  %vm8772_vm13 = vcmp.eq.f32.partialorder %v16544_v31, %v21302_v14 }
 0x1e0   : > { %v13418_v39 = vsel %vm9985_vm3, 1.0, %v21204_v50  ;;  %v11537_v42 = vadd.f32 %v13417_v30, %v11536_v10  ;;  %vm9478_vm11 = vmand %vm8774_vm10, %vm21370_vm14  ;;  %vm8260_vm3 = vcmp.lt.f32.partialorder %v16544_v31, %v21302_v14  ;;  %v17211_v10 = vpop.permute.xlu0 %7449  ;;  %vm8773_vm10 = vcmp.eq.f32.partialorder %v16544_v31, %v21306_v16 }
 0x1e1   : > { %v11574_v37 = vadd.f32 %v13418_v39, %v11573_v57  ;;  %vm17205_vm7 = vmor %vm8262_vm0, %vm9478_vm11  ;;  %vm8267_vm11 = vcmp.lt.f32.partialorder %v16583_v58, %v21306_v16  ;;  %v17231_v31 = vpop.permute.xlu1 %7464  ;;  %vm8265_vm0 = vcmp.lt.f32.partialorder %v16591_v46, %v21306_v16 }
 0x1e2   : > { %vm17213_vm6 = vmor %vm8263_vm9, %vm8775_vm1  ;;  %v11538_v5 = vadd.f32 %v13419_v47, %v11537_v42  ;;  %vm8266_vm1 = vcmp.lt.f32.partialorder %v16583_v58, %v21302_v14  ;;  %7693 = vbcast.lane.b32.xlu1 %v16887_v22, 320  ;;  %v13423_v55 = vsel %vm17205_vm7, 1.0, %v21204_v50  ;;  %7823 = vbcast.lane.b32.xlu0 %v16969_v11, 312  ;;  %vm21381_vm7 = vnez %v21380_v51 }
 0x1e3   : > { %vm9476_vm5 = vmand %vm8772_vm13, %vm21107_vm4  ;;  %v11575_v57 = vadd.f32 %v13420_v49, %v11574_v37  ;;  %vm8264_vm13 = vcmp.lt.f32.partialorder %v16591_v46, %v21302_v14  ;;  %v13424_v49 = vsel %vm17213_vm6, 1.0, %v21204_v50  ;;  %vm8783_vm6 = vcmp.eq.f32.partialorder %v16630_v15, %v21306_v16 }
 0x1e4   : > { %vm9988_vm9 = vmor %vm8260_vm3, %vm9476_vm5  ;;  %vm8777_vm3 = vcmp.eq.f32.partialorder %v16591_v46, %v21306_v16  ;;  %v17240_v37 = vpop.permute.xlu0 %7460  ;;  %vm8270_vm5 = vcmp.lt.f32.partialorder %v16630_v15, %v21302_v14 }
 0x1e5   : > { %vm9989_vm14 = vmor %vm8261_vm12, %vm8773_vm10  ;;  %v13421_v39 = vsel %vm9988_vm9, 1.0, %v21204_v50  ;;  %vm21377_vm12 = vcmp.eq.f32.partialorder %v16583_v58, %v21306_v16  ;;  %v13425_v58 = vsel %vm8264_vm13, 1.0, %v21204_v50 }
 0x1e6   : > { %v13422_v42 = vsel %vm9989_vm14, 1.0, %v21204_v50  ;;  %v11539_v47 = vadd.f32 %v13421_v39, %v11538_v5  ;;  %vm9483_vm10 = vmand %vm21377_vm12, %vm21108_vm15  ;;  %v13427_v39 = vsel %vm8266_vm1, 1.0, %v21204_v50  ;;  %vm8268_vm12 = vcmp.lt.f32.partialorder %v16638_v60, %v21302_v14  ;;  %7697 = vbcast.lane.b32.xlu1 %v16887_v22, 328  ;;  %7827 = vbcast.lane.b32.xlu0 %v16969_v11, 320 }
 0x1e7   : > { %v11576_v30 = vadd.f32 %v13422_v42, %v11575_v57  ;;  %vm17260_vm14 = vmor %vm8267_vm11, %vm9483_vm10  ;;  %vm8271_vm11 = vcmp.lt.f32.partialorder %v16630_v15, %v21306_v16  ;;  %v17277_v42 = vpop.permute.xlu1 %7472  ;;  %vm8781_vm1 = vcmp.eq.f32.partialorder %v16638_v60, %v21306_v16 }
 0x1e8   : > { %vm9481_vm9 = vmand %vm8777_vm3, %vm21381_vm7  ;;  %v11540_v57 = vadd.f32 %v13423_v55, %v11539_v47  ;;  %21382 = vst [vmem:[#allocation26_spill] sm:$0xff] %v17277_v42  ;;  %v13431_v55 = vsel %vm8270_vm5, 1.0, %v21204_v50  ;;  %v17292_v47 = vpop.permute.xlu0 %7468  ;;  %v21383_v42 = vld [vmem:[#allocation37_spill] sm:$0xff]  ;;  %vm8269_vm3 = vcmp.lt.f32.partialorder %v16638_v60, %v21306_v16  ;;  %vm8274_vm5 = vcmp.lt.f32.partialorder %v16677_v34, %v21302_v14 }
 0x1e9   : > { %vm9993_vm10 = vmor %vm8265_vm0, %vm9481_vm9  ;;  %v11577_v51 = vadd.f32 %v13424_v49, %v11576_v30  ;;  %vm21384_vm0 = vnez %v21383_v42  ;;  %v13429_v30 = vsel %vm8268_vm12, 1.0, %v21204_v50  ;;  %v13428_v15 = vsel %vm17260_vm14, 1.0, %v21204_v50 }
 0x1ea   : > { %v13426_v52 = vsel %vm9993_vm10, 1.0, %v21204_v50  ;;  %v11541_v6 = vadd.f32 %v13425_v58, %v11540_v57  ;;  %vm9487_vm13 = vmand %vm8783_vm6, %vm21384_vm0  ;;  %vm8275_vm12 = vcmp.lt.f32.partialorder %v16677_v34, %v21306_v16  ;;  %v13435_v58 = vsel %vm8274_vm5, 1.0, %v21204_v50  ;;  %7701 = vbcast.lane.b32.xlu1 %v16887_v22, 336  ;;  %7831 = vbcast.lane.b32.xlu0 %v16969_v11, 328 }
 0x1eb   : > { %v11578_v46 = vadd.f32 %v13426_v52, %v11577_v51  ;;  %vm17308_vm9 = vmor %vm8271_vm11, %vm9487_vm13  ;;  %v21387_v52 = vld [vmem:[#allocation38_spill] sm:$0xff]  ;;  %v17333_v57 = vpop.permute.xlu1 %7480  ;;  %vm21389_vm6 = vnez %v20970_v45  ;;  %vm21391_vm5 = vcmp.lt.f32.partialorder %v16693_v23, %v21302_v14  ;;  %vm21399_vm14 = vnez %v20982_v32 }
 0x1ec   : > { %vm21388_vm11 = vnez %v21387_v52  ;;  %v11542_v51 = vadd.f32 %v13427_v39, %v11541_v6  ;;  %v17346_v6 = vpop.permute.xlu0 %7476  ;;  %v13433_v60 = vsel %vm21391_vm5, 1.0, %v21204_v50  ;;  %vm21394_vm5 = vcmp.lt.f32.partialorder %v16732_v4, %v21302_v14 }
 0x1ed   : > { %vm9485_vm13 = vmand %vm8781_vm1, %vm21388_vm11  ;;  %v11579_v5 = vadd.f32 %v13428_v15, %v11578_v46  ;;  %v13439_v15 = vsel %vm21394_vm5, 1.0, %v21204_v50  ;;  %vm21397_vm5 = vcmp.lt.f32.partialorder %v16693_v23, %v21306_v16  ;;  %vm21401_vm1 = vcmp.lt.f32.partialorder %v16732_v4, %v21306_v16 }
 0x1ee   : > { %vm9997_vm10 = vmor %vm8269_vm3, %vm9485_vm13  ;;  %v11543_v52 = vadd.f32 %v13429_v30, %v11542_v51  ;;  %vm21390_vm3 = vcmp.eq.f32.partialorder %v16677_v34, %v21306_v16  ;;  %v13432_v34 = vsel %vm17308_vm9, 1.0, %v21204_v50  ;;  %7705 = vbcast.lane.b32.xlu1 %v16887_v22, 344  ;;  %7835 = vbcast.lane.b32.xlu0 %v16969_v11, 336  ;;  %vm21409_vm9 = vnez %v20995_v44 }
 0x1ef   : > { %v13430_v39 = vsel %vm9997_vm10, 1.0, %v21204_v50  ;;  %vm9491_vm13 = vmand %vm21390_vm3, %vm21389_vm6 }
 0x1f0   : > { %v11580_v46 = vadd.f32 %v13430_v39, %v11579_v5  ;;  %vm17364_vm10 = vmor %vm8275_vm12, %vm9491_vm13  ;;  %vm21395_vm12 = vnez %v20975_v63  ;;  %vm21396_vm13 = vcmp.eq.f32.partialorder %v16693_v23, %v21306_v16  ;;  %v11544_v51 = vadd.f32 %v13431_v55, %v11543_v52  ;;  %v17389_v5 = vpop.permute.xlu1 %7488  ;;  %v17402_v52 = vpop.permute.xlu0 %7484 }
 0x1f1   : > { %vm9489_vm3 = vmand %vm21396_vm13, %vm21395_vm12  ;;  %vm21398_vm13 = vcmp.lt.f32.partialorder %v16740_v17, %v21302_v14 }
 0x1f2   : > { %vm10001_vm6 = vmor %vm21397_vm5, %vm9489_vm3  ;;  %v11581_v49 = vadd.f32 %v13432_v34, %v11580_v46  ;;  %v13437_v55 = vsel %vm21398_vm13, 1.0, %v21204_v50  ;;  %v11545_v63 = vadd.f32 %v13433_v60, %v11544_v51  ;;  %vm21400_vm3 = vcmp.eq.f32.partialorder %v16732_v4, %v21306_v16  ;;  %7709 = vbcast.lane.b32.xlu1 %v16887_v22, 352  ;;  %7839 = vbcast.lane.b32.xlu0 %v16969_v11, 344 }
 0x1f3   : > { %v13434_v39 = vsel %vm10001_vm6, 1.0, %v21204_v50  ;;  %vm9495_vm5 = vmand %vm21400_vm3, %vm21399_vm14  ;;  %vm21404_vm3 = vcmp.lt.f32.partialorder %v16779_v7, %v21302_v14  ;;  %v13436_v4 = vsel %vm17364_vm10, 1.0, %v21204_v50  ;;  %vm21407_vm13 = vcmp.lt.f32.partialorder %v16740_v17, %v21306_v16 }
 0x1f4   : > { %v11582_v23 = vadd.f32 %v13434_v39, %v11581_v49  ;;  %vm17418_vm6 = vmor %vm21401_vm1, %vm9495_vm5  ;;  %v13443_v46 = vsel %vm21404_vm3, 1.0, %v21204_v50  ;;  %vm21405_vm1 = vnez %v20987_v43  ;;  %vm21406_vm5 = vcmp.eq.f32.partialorder %v16740_v17, %v21306_v16  ;;  %v17443_v51 = vpop.permute.xlu1 %7496 }
 0x1f5   : > { %vm9493_vm14 = vmand %vm21406_vm5, %vm21405_vm1  ;;  %v11546_v34 = vadd.f32 %v13435_v58, %v11545_v63  ;;  %vm21408_vm10 = vcmp.lt.f32.partialorder %v16789_v36, %v21302_v14  ;;  %v17456_v63 = vpop.permute.xlu0 %7492 }
 0x1f6   : > { %vm10005_vm12 = vmor %vm21407_vm13, %vm9493_vm14  ;;  %v11583_v30 = vadd.f32 %v13436_v4, %v11582_v23  ;;  %v13441_v49 = vsel %vm21408_vm10, 1.0, %v21204_v50  ;;  %vm21410_vm14 = vcmp.eq.f32.partialorder %v16779_v7, %v21306_v16  ;;  %vm21411_vm10 = vcmp.lt.f32.partialorder %v16824_v25, %v21302_v14  ;;  %7713 = vbcast.lane.b32.xlu1 %v16887_v22, 360  ;;  %7843 = vbcast.lane.b32.xlu0 %v16969_v11, 352 }
 0x1f7   : > { %v13438_v58 = vsel %vm10005_vm12, 1.0, %v21204_v50  ;;  %v11547_v39 = vadd.f32 %v13437_v55, %v11546_v34  ;;  %vm9499_vm13 = vmand %vm21410_vm14, %vm21409_vm9  ;;  %v13447_v17 = vsel %vm21411_vm10, 1.0, %v21204_v50  ;;  %vm21412_vm12 = vcmp.lt.f32.partialorder %v16779_v7, %v21306_v16  ;;  %v21416_v34 = vld [vmem:[#allocation44_spill] sm:$0xff] }
 0x1f8   : > { %v11584_v23 = vadd.f32 %v13438_v58, %v11583_v30  ;;  %vm17474_vm3 = vmor %vm21412_vm12, %vm9499_vm13  ;;  %vm21415_vm10 = vcmp.lt.f32.partialorder %v16834_v62, %v21302_v14  ;;  %v13440_v7 = vsel %vm17418_vm6, 1.0, %v21204_v50  ;;  %vm21417_vm13 = vnez %v21416_v34  ;;  %v17499_v58 = vpop.permute.xlu1 %7504 }
 0x1f9   : > { %v13445_v4 = vsel %vm21415_vm10, 1.0, %v21204_v50  ;;  %vm21418_vm12 = vcmp.eq.f32.partialorder %v16789_v36, %v21306_v16  ;;  %v11548_v30 = vadd.f32 %v13439_v15, %v11547_v39  ;;  %vm21419_vm10 = vcmp.lt.f32.partialorder %v16789_v36, %v21306_v16  ;;  %v17514_v39 = vpop.permute.xlu0 %7500  ;;  %v21421_v36 = vld [vmem:[#allocation45_spill] sm:$0xff] }
 0x1fa   : > { %vm9497_vm14 = vmand %vm21418_vm12, %vm21417_vm13  ;;  %v11585_v60 = vadd.f32 %v13440_v7, %v11584_v23  ;;  %vm21420_vm12 = vcmp.lt.f32.partialorder %v16853_v2, %v21302_v14  ;;  %vm21424_vm9 = vcmp.lt.f32.partialorder %v16824_v25, %v21306_v16  ;;  %7717 = vbcast.lane.b32.xlu1 %v16887_v22, 368  ;;  %7847 = vbcast.lane.b32.xlu0 %v16969_v11, 360 }
 0x1fb   : > { %vm10009_vm1 = vmor %vm21419_vm10, %vm9497_vm14  ;;  %v17510_v15 = vsel %vm21420_vm12, 1.0, %v21204_v50  ;;  %v11549_v44 = vadd.f32 %v13441_v49, %v11548_v30  ;;  %vm21422_vm14 = vnez %v21421_v36  ;;  %vm21423_vm10 = vcmp.eq.f32.partialorder %v16824_v25, %v21306_v16 }
 0x1fc   : > { %v13442_v34 = vsel %vm10009_vm1, 1.0, %v21204_v50  ;;  %vm9503_vm6 = vmand %vm21423_vm10, %vm21422_vm14  ;;  %vm21427_vm10 = vcmp.lt.f32.partialorder %v16863_v28, %v21302_v14  ;;  %v13444_v25 = vsel %vm17474_vm3, 1.0, %v21204_v50  ;;  %v17559_v36 = vpop.permute.xlu1 %7512  ;;  %vm21433_vm3 = vcmp.lt.f32.partialorder %v16834_v62, %v21306_v16 }
 0x1fd   : > { %v11586_v23 = vadd.f32 %v13442_v34, %v11585_v60  ;;  %vm17530_vm1 = vmor %vm21424_vm9, %vm9503_vm6  ;;  %v13449_v7 = vsel %vm21427_vm10, 1.0, %v21204_v50  ;;  %v21428_v34 = vld [vmem:[#allocation46_spill] sm:$0xff]  ;;  %vm21430_vm6 = vcmp.eq.f32.partialorder %v16834_v62, %v21306_v16  ;;  %v11550_v30 = vadd.f32 %v13443_v46, %v11549_v44  ;;  %21432 = vst [vmem:[#allocation14_spill] sm:$0xff] %v17559_v36  ;;  %v17572_v46 = vpop.permute.xlu0 %7508 }
 0x1fe   : > { %vm21429_vm9 = vnez %v21428_v34  ;;  %vm21431_vm10 = vcmp.lt.f32.partialorder %v16906_v20, %v21302_v14  ;;  %vm21434_vm12 = vcmp.lt.f32.partialorder %v16917_v40, %v21302_v14  ;;  %v21437_v62 = vld [vmem:[#allocation10_spill] sm:$0xff]  ;;  %7721 = vbcast.lane.b32.xlu1 %v16887_v22, 376  ;;  %vm21448_vm14 = vcmp.lt.f32.partialorder %v16906_v20, %v21306_v16  ;;  %7851 = vbcast.lane.b32.xlu0 %v16969_v11, 368 }
 0x1ff   : > { %vm9501_vm13 = vmand %vm21430_vm6, %vm21429_vm9  ;;  %v17557_v60 = vsel %vm21431_vm10, 1.0, %v21204_v50  ;;  %v11587_v55 = vadd.f32 %v13444_v25, %v11586_v23  ;;  %v13453_v44 = vsel %vm21434_vm12, 1.0, %v21204_v50  ;;  %v11551_v36 = vadd.f32 %v13445_v4, %v11550_v30  ;;  %v21438_v23 = vld [vmem:[#allocation11_spill] sm:$0xff] }
 0x200   : > { %vm10013_vm5 = vmor %vm21433_vm3, %vm9501_vm13  ;;  %vm21435_vm10 = vnez %v21026_v0  ;;  %vm21436_vm13 = vcmp.eq.f32.partialorder %v16853_v2, %v21306_v16  ;;  %vm21439_vm12 = vcmp.lt.f32.partialorder %v16853_v2, %v21306_v16  ;;  %v13448_v25 = vsel %vm17530_vm1, 1.0, %v21204_v50 }
 0x201   : > { %v13446_v34 = vsel %vm10013_vm5, 1.0, %v21204_v50  ;;  %vm9507_vm3 = vmand %vm21436_vm13, %vm21435_vm10  ;;  %v11552_v2 = vadd.f32 %v13447_v17, %v11551_v36  ;;  %vm21444_vm1 = vcmp.lt.f32.partialorder %v16863_v28, %v21306_v16  ;;  %v17624_v17 = vpop.permute.xlu0 %7516 }
 0x202   : > { %v11588_v14 = vadd.f32 %v13446_v34, %v11587_v55  ;;  %vm17588_vm5 = vmor %vm21439_vm12, %vm9507_vm3  ;;  %vm21442_vm3 = vnez %v21031_v12  ;;  %vm21443_vm12 = vcmp.eq.f32.partialorder %v16863_v28, %v21306_v16  ;;  %v17613_v34 = vpop.permute.xlu1 %7520  ;;  %v21445_v55 = vld [vmem:[#allocation49_spill] sm:$0xff]  ;;  %7855 = vbcast.lane.b32.xlu0 %v16969_v11, 376 }
 0x203   : > { %vm9505_vm9 = vmand %vm21443_vm12, %vm21442_vm3  ;;  %v11553_v30 = vadd.f32 %v13449_v7, %v11552_v2  ;;  %vm21446_vm6 = vnez %v21445_v55  ;;  %v13452_v22 = vsel %vm17588_vm5, 1.0, %v21204_v50  ;;  %v21456_v2 = vld [vmem:[#allocation12_spill] sm:$0xff] }
 0x204   : > { %vm10017_vm10 = vmor %vm21444_vm1, %vm9505_vm9  ;;  %v11589_v49 = vadd.f32 %v13448_v25, %v11588_v14  ;;  %vm21447_vm9 = vcmp.eq.f32.partialorder %v16906_v20, %v21306_v16  ;;  %v21451_v20 = vld [vmem:[#allocation50_spill] sm:$0xff] }
 0x205   : > { %v13450_v36 = vsel %vm10017_vm10, 1.0, %v21204_v50  ;;  %vm9511_vm1 = vmand %vm21447_vm9, %vm21446_vm6  ;;  %v11554_v14 = vadd.f32 %v17510_v15, %v11553_v30  ;;  %vm21455_vm9 = vcmp.lt.f32.partialorder %v16917_v40, %v21306_v16  ;;  %v21457_v15 = vld [vmem:[#allocation13_spill] sm:$0xff] }
 0x206   : > { %v11590_v28 = vadd.f32 %v13450_v36, %v11589_v49  ;;  %vm17640_vm10 = vmor %vm21448_vm14, %vm9511_vm1  ;;  %vm21452_vm14 = vnez %v21451_v20  ;;  %vm21453_vm1 = vcmp.eq.f32.partialorder %v16917_v40, %v21306_v16  ;;  %v17666_v25 = vpop.permute.xlu1 %7531  ;;  %v17679_v49 = vpop.permute.xlu0 %7527  ;;  %v21459_v16 = vld [vmem:[#allocation23_spill] sm:$0xff]  ;;  %v21462_v40 = vld [vmem:[#allocation8_spill] sm:$0xff] }
 0x207   : > { %vm9509_vm13 = vmand %vm21453_vm1, %vm21452_vm14  ;;  %21454 = vst [vmem:[#allocation15_spill] sm:$0xff] %v17666_v25  ;;  %v11555_v30 = vadd.f32 %v13453_v44, %v11554_v14  ;;  %7728 = vbcast.lane.b32.xlu1 %v21462_v40, 256  ;;  %vm21469_vm1 = vcmp.eq.f32.partialorder %v16965_v33, %v21437_v62  ;;  %vm21472_vm14 = vcmp.eq.f32.partialorder %v16965_v33, %v21438_v23  ;;  %v21475_v25 = vld [vmem:[#allocation22_spill] sm:$0xff] }
 0x208   : > { %vm10021_vm5 = vmor %vm21455_vm9, %vm9509_vm13  ;;  %v11591_v4 = vadd.f32 %v13452_v22, %v11590_v28  ;;  %21458 = vst [vmem:[#allocation27_spill] sm:$0xff] %v17679_v49  ;;  %vm21460_vm13 = vnez %v21459_v16  ;;  %vm21461_vm9 = vcmp.eq.f32.partialorder %v16956_v27, %v21437_v62  ;;  %v13456_v28 = vsel %vm17640_vm10, 1.0, %v21204_v50 }
 0x209   : > { %v13454_v36 = vsel %vm10021_vm5, 1.0, %v21204_v50  ;;  %vm9514_vm6 = vmand %vm21461_vm9, %vm21460_vm13  ;;  %vm21463_vm5 = vcmp.lt.f32.partialorder %v16956_v27, %v21437_v62  ;;  %v11556_v22 = vadd.f32 %v17557_v60, %v11555_v30 }
 0x20a   : > { %v11592_v44 = vadd.f32 %v13454_v36, %v11591_v4  ;;  %vm10026_vm11 = vmor %vm21463_vm5, %vm9514_vm6  ;;  %vm21464_vm6 = vcmp.eq.f32.partialorder %v16956_v27, %v21438_v23  ;;  %vm21465_vm5 = vcmp.lt.f32.partialorder %v16956_v27, %v21438_v23  ;;  %v17721_v11 = vpop.permute.xlu1 %7539  ;;  %v21467_v4 = vld [vmem:[#allocation21_spill] sm:$0xff]  ;;  %v17737_v27 = vpop.permute.xlu0 %7535 }
 0x20b   : > { %vm10027_vm9 = vmor %vm21465_vm5, %vm21464_vm6  ;;  %v13459_v14 = vsel %vm10026_vm11, 1.0, %v21204_v50  ;;  %21466 = vst [vmem:[#allocation28_spill] sm:$0xff] %v17721_v11  ;;  %vm21468_vm10 = vnez %v21467_v4  ;;  %v11557_v36 = vrot.slane %v11556_v22, 4  ;;  %7732 = vbcast.lane.b32.xlu1 %v21462_v40, 264  ;;  %vm21481_vm5 = vcmp.eq.f32.partialorder %v17005_v48, %v21438_v23 }
 0x20c   : > { %v11593_v7 = vadd.f32 %v13456_v28, %v11592_v44  ;;  %v13460_v60 = vsel %vm10027_vm9, 1.0, %v21204_v50  ;;  %vm9512_vm12 = vmand %vm21469_vm1, %vm21468_vm10  ;;  %21470 = vst [vmem:[#allocation10_spill] sm:$0xff] %v17737_v27  ;;  %vm21471_vm9 = vcmp.lt.f32.partialorder %v16965_v33, %v21437_v62  ;;  %v21474_v28 = vld [vmem:[#allocation9_spill] sm:$0xff]  ;;  %vm21476_vm1 = vnez %v21475_v25 }
 0x20d   : > { %vm10024_vm3 = vmor %vm21471_vm9, %vm9512_vm12  ;;  %vm21473_vm12 = vcmp.lt.f32.partialorder %v16965_v33, %v21438_v23  ;;  %7862 = vbcast.lane.b32.xlu0 %v21474_v28, 256  ;;  %v11558_v11 = vadd.f32 %v11557_v36, %v11556_v22  ;;  %vm21482_vm6 = vcmp.lt.f32.partialorder %v17005_v48, %v21438_v23 }
 0x20e   : > { %v11594_v30 = vrot.slane %v11593_v7, 4  ;;  %vm10025_vm9 = vmor %vm21473_vm12, %vm21472_vm14  ;;  %v13457_v44 = vsel %vm10024_vm3, 1.0, %v21204_v50  ;;  %vm21477_vm3 = vcmp.eq.f32.partialorder %v17005_v48, %v21437_v62  ;;  %v17777_v33 = vpop.permute.xlu1 %7547  ;;  %vm21493_vm12 = vcmp.eq.f32.partialorder %v17037_v1, %v21438_v23 }
 0x20f   : > { %v13458_v49 = vsel %vm10025_vm9, 1.0, %v21204_v50  ;;  %v11600_v4 = vadd.f32 %v13459_v14, %v13457_v44  ;;  %vm9518_vm14 = vmand %vm21477_vm3, %vm21476_vm1  ;;  %21478 = vst [vmem:[#allocation11_spill] sm:$0xff] %v17777_v33  ;;  %vm21479_vm9 = vcmp.lt.f32.partialorder %v17005_v48, %v21437_v62  ;;  %v17788_v14 = vpop.permute.xlu0 %7543  ;;  %v11559_v36 = vrot.slane %v11558_v11, 2  ;;  %7736 = vbcast.lane.b32.xlu1 %v21462_v40, 272 }
 0x210   : > { %v11595_v22 = vadd.f32 %v11594_v30, %v11593_v7  ;;  %vm10030_vm11 = vmor %vm21479_vm9, %vm9518_vm14  ;;  %21480 = vst [vmem:[#allocation12_spill] sm:$0xff] %v17788_v14  ;;  %v11637_v44 = vadd.f32 %v13460_v60, %v13458_v49  ;;  %v21483_v60 = vld [vmem:[#allocation20_spill] sm:$0xff]  ;;  %vm21485_vm1 = vcmp.eq.f32.partialorder %v17019_v8, %v21437_v62  ;;  %vm21487_vm9 = vcmp.eq.f32.partialorder %v17019_v8, %v21438_v23 }
 0x211   : > { %vm10031_vm14 = vmor %vm21482_vm6, %vm21481_vm5  ;;  %v13463_v49 = vsel %vm10030_vm11, 1.0, %v21204_v50  ;;  %vm21484_vm10 = vnez %v21483_v60  ;;  %7866 = vbcast.lane.b32.xlu0 %v21474_v28, 264  ;;  %v11560_v48 = vadd.f32 %v11559_v36, %v11558_v11  ;;  %vm21486_vm11 = vcmp.lt.f32.partialorder %v17019_v8, %v21437_v62 }
 0x212   : > { %v11596_v7 = vrot.slane %v11595_v22, 2  ;;  %vm9516_vm6 = vmand %vm21485_vm1, %vm21484_vm10  ;;  %v13464_v30 = vsel %vm10031_vm14, 1.0, %v21204_v50  ;;  %v17828_v33 = vpop.permute.xlu1 %7555  ;;  %vm21488_vm14 = vcmp.lt.f32.partialorder %v17019_v8, %v21438_v23  ;;  %v21489_v8 = vld [vmem:[#allocation24_spill] sm:$0xff]  ;;  %vm21494_vm5 = vcmp.lt.f32.partialorder %v17037_v1, %v21438_v23 }
 0x213   : > { %vm10028_vm1 = vmor %vm21486_vm11, %vm9516_vm6  ;;  %v17843_v36 = vpop.permute.xlu0 %7551  ;;  %7740 = vbcast.lane.b32.xlu1 %v21462_v40, 280  ;;  %vm21495_vm6 = vnez %v20894_v13  ;;  %vm21528_vm11 = vcmp.eq.f32.partialorder %v17115_v24, %v21438_v23 }
 0x214   : > { %v11597_v27 = vadd.f32 %v11596_v7, %v11595_v22  ;;  %vm10029_vm10 = vmor %vm21488_vm14, %vm21487_vm9  ;;  %v13461_v11 = vsel %vm10028_vm1, 1.0, %v21204_v50  ;;  %v11561_v22 = vrot.slane %v11560_v48, 1  ;;  %vm21490_vm9 = vnez %v21489_v8 }
 0x215   : > { %v13462_v7 = vsel %vm10029_vm10, 1.0, %v21204_v50  ;;  %v11601_v14 = vadd.f32 %v13461_v11, %v11600_v4  ;;  %vm21491_vm1 = vcmp.eq.f32.partialorder %v17037_v1, %v21437_v62  ;;  %vm21492_vm10 = vcmp.lt.f32.partialorder %v17037_v1, %v21437_v62  ;;  %7870 = vbcast.lane.b32.xlu0 %v21474_v28, 272 }
 0x216   : > { %vm9522_vm14 = vmand %vm21491_vm1, %vm21490_vm9  ;;  %v11598_v60 = vrot.slane %v11597_v27, 1  ;;  %v11638_v25 = vadd.f32 %v13462_v7, %v11637_v44  ;;  %v17868_v4 = vadd.f32 %v11561_v22, %v11560_v48  ;;  %v17881_v7 = vpop.permute.xlu1 %7563  ;;  %vm21496_vm1 = vcmp.eq.f32.partialorder %v17044_v41, %v21437_v62 }
 0x217   : > { %vm10034_vm3 = vmor %vm21492_vm10, %vm9522_vm14  ;;  %v11602_v11 = vadd.f32 %v13463_v49, %v11601_v14  ;;  %v17895_v14 = vpop.permute.xlu0 %7559  ;;  %7744 = vbcast.lane.b32.xlu1 %v21462_v40, 288 }
 0x218   : > { %vm10035_vm14 = vmor %vm21494_vm5, %vm21493_vm12  ;;  %v13467_v44 = vsel %vm10034_vm3, 1.0, %v21204_v50  ;;  %v11599_v48 = vadd.f32 %v11598_v60, %v11597_v27  ;;  %v11639_v1 = vadd.f32 %v13464_v30, %v11638_v25  ;;  %vm21504_vm3 = vcmp.eq.f32.partialorder %v17076_v59, %v21438_v23 }
 0x219   : > { %v13468_v22 = vsel %vm10035_vm14, 1.0, %v21204_v50  ;;  %vm9520_vm12 = vmand %vm21496_vm1, %vm21495_vm6  ;;  %vm21497_vm14 = vcmp.lt.f32.partialorder %v17044_v41, %v21437_v62  ;;  %7874 = vbcast.lane.b32.xlu0 %v21474_v28, 280  ;;  %vm21505_vm1 = vcmp.lt.f32.partialorder %v17076_v59, %v21438_v23 }
 0x21a   : > { %vm10032_vm10 = vmor %vm21497_vm14, %vm9520_vm12  ;;  %vm21498_vm12 = vcmp.eq.f32.partialorder %v17044_v41, %v21438_v23  ;;  %vm21499_vm14 = vcmp.lt.f32.partialorder %v17044_v41, %v21438_v23  ;;  %v17941_v49 = vpop.permute.xlu1 %7571 }
 0x21b   : > { %vm10033_vm9 = vmor %vm21499_vm14, %vm21498_vm12  ;;  %v13465_v25 = vsel %vm10032_vm10, 1.0, %v21204_v50  ;;  %vm21500_vm12 = vnez %v21205_v9  ;;  %vm21501_vm10 = vcmp.eq.f32.partialorder %v17076_v59, %v21437_v62  ;;  %v17952_v30 = vpop.permute.xlu0 %7567  ;;  %7748 = vbcast.lane.b32.xlu1 %v21462_v40, 296 }
 0x21c   : > { %v13466_v27 = vsel %vm10033_vm9, 1.0, %v21204_v50  ;;  %v11603_v41 = vadd.f32 %v13465_v25, %v11602_v11  ;;  %vm9526_vm14 = vmand %vm21501_vm10, %vm21500_vm12  ;;  %vm21502_vm9 = vcmp.lt.f32.partialorder %v17076_v59, %v21437_v62  ;;  %21503 = vst [vmem:[#allocation23_spill] sm:$0xff] %v17952_v30  ;;  %vm21509_vm10 = vcmask 1043459  }
 0x21d   : > { %v11640_v60 = vadd.f32 %v13466_v27, %v11639_v1  ;;  %vm10038_vm6 = vmor %vm21502_vm9, %vm9526_vm14  ;;  %7878 = vbcast.lane.b32.xlu0 %v21474_v28, 288  ;;  %v17997_v25 = vsel %vm21509_vm10, %v17868_v4, %v16973_v26  ;;  %vm21524_vm9 = vnez %v21354_v38 }
 0x21e   : > { %vm10039_vm12 = vmor %vm21505_vm1, %vm21504_vm3  ;;  %v11604_v11 = vadd.f32 %v13467_v44, %v11603_v41  ;;  %v13471_v1 = vsel %vm10038_vm6, 1.0, %v21204_v50  ;;  %vm21506_vm3 = vcmp.eq.f32.partialorder %v17082_v29, %v21437_v62  ;;  %vm21507_vm6 = vcmp.lt.f32.partialorder %v17082_v29, %v21437_v62 }
 0x21f   : > { %vm9524_vm1 = vmand %vm21506_vm3, %vm21347_vm8  ;;  %v11641_v59 = vadd.f32 %v13468_v22, %v11640_v60  ;;  %v13472_v44 = vsel %vm10039_vm12, 1.0, %v21204_v50  ;;  %v17992_v22 = vpop.permute.xlu1 %7579  ;;  %vm21511_vm12 = vcmp.eq.f32.partialorder %v17082_v29, %v21438_v23  ;;  %v18018_v26 = vpop.permute.xlu0 %7575  ;;  %7752 = vbcast.lane.b32.xlu1 %v21462_v40, 304  ;;  %vm21527_vm8 = vcmp.lt.f32.partialorder %v17115_v24, %v21437_v62 }
 0x220   : > { %vm10036_vm3 = vmor %vm21507_vm6, %vm9524_vm1  ;;  %21508 = vst [vmem:[#allocation8_spill] sm:$0xff] %v17992_v22  ;;  %vm21512_vm1 = vcmp.lt.f32.partialorder %v17082_v29, %v21438_v23  ;;  %v21571_v22 = vld [vmem:[#allocation33_spill] sm:$0xff] }
 0x221   : > { %vm21510_vm14 = vmmov %vm21509_vm10  ;;  %v13469_v41 = vsel %vm10036_vm3, 1.0, %v21204_v50  ;;  %21513 = vst [vmem:[#allocation9_spill] sm:$0xff] %v18018_v26  ;;  %vm21515_vm3 = vcmp.eq.f32.partialorder %v17101_v21, %v21437_v62  ;;  %7882 = vbcast.lane.b32.xlu0 %v21474_v28, 296  ;;  %vm21538_vm10 = vcmp.eq.f32.partialorder %v17133_v53, %v21438_v23 }
 0x222   : > { %v18001_v27 = vsel %vm21510_vm14, %v11599_v48, %v16983_v54  ;;  %vm10037_vm6 = vmor %vm21512_vm1, %vm21511_vm12  ;;  %v11605_v29 = vadd.f32 %v13469_v41, %v11604_v11  ;;  %vm21514_vm12 = vnez %v21348_v3  ;;  %vm21519_vm14 = vcmp.eq.f32.partialorder %v17101_v21, %v21438_v23 }
 0x223   : > { %v13470_v54 = vsel %vm10037_vm6, 1.0, %v21204_v50  ;;  %vm9530_vm1 = vmand %vm21515_vm3, %vm21514_vm12  ;;  %vm21516_vm6 = vcmp.lt.f32.partialorder %v17101_v21, %v21437_v62  ;;  %7756 = vbcast.lane.b32.xlu1 %v21462_v40, 312 }
 0x224   : > { %v11642_v4 = vadd.f32 %v13470_v54, %v11641_v59  ;;  %vm18036_vm5 = vmor %vm21516_vm6, %vm9530_vm1  ;;  %vm21520_vm1 = vcmp.lt.f32.partialorder %v17101_v21, %v21438_v23  ;;  %v11606_v11 = vadd.f32 %v13471_v1, %v11605_v29  ;;  %v18063_v59 = vpop.permute.xlu1 %7587  ;;  %v18078_v1 = vpop.permute.xlu0 %7583 }
 0x225   : > { %vm18053_vm6 = vmor %vm21520_vm1, %vm21519_vm14  ;;  %21523 = vst [vmem:[#allocation24_spill] sm:$0xff] %v18063_v59  ;;  %vm21525_vm14 = vcmp.eq.f32.partialorder %v17115_v24, %v21437_v62  ;;  %7886 = vbcast.lane.b32.xlu0 %v21474_v28, 304  ;;  %v21551_v59 = vld [vmem:[#allocation31_spill] sm:$0xff] }
 0x226   : > { %vm9528_vm1 = vmand %vm21525_vm14, %vm21524_vm9  ;;  %v11643_v21 = vadd.f32 %v13472_v44, %v11642_v4  ;;  %21526 = vst [vmem:[#allocation51_spill] sm:$0xff] %v18078_v1  ;;  %v13476_v41 = vsel %vm18053_vm6, 1.0, %v21204_v50  ;;  %v21530_v4 = vld [vmem:[#allocation29_spill] sm:$0xff]  ;;  %vm21548_vm14 = vcmp.eq.f32.partialorder %v17140_v19, %v21438_v23 }
 0x227   : > { %vm10040_vm13 = vmor %vm21527_vm8, %vm9528_vm1  ;;  %vm21529_vm8 = vcmp.lt.f32.partialorder %v17115_v24, %v21438_v23  ;;  %v13475_v24 = vsel %vm18036_vm5, 1.0, %v21204_v50  ;;  %vm21534_vm5 = vcmp.lt.f32.partialorder %v17133_v53, %v21437_v62  ;;  %7760 = vbcast.lane.b32.xlu1 %v21462_v40, 320 }
 0x228   : > { %vm10041_vm1 = vmor %vm21529_vm8, %vm21528_vm11  ;;  %v13473_v44 = vsel %vm10040_vm13, 1.0, %v21204_v50  ;;  %vm21531_vm13 = vnez %v21530_v4  ;;  %vm21532_vm11 = vcmp.eq.f32.partialorder %v17133_v53, %v21437_v62  ;;  %v18124_v48 = vpop.permute.xlu1 %7598 }
 0x229   : > { %v13474_v54 = vsel %vm10041_vm1, 1.0, %v21204_v50  ;;  %v11607_v29 = vadd.f32 %v13473_v44, %v11606_v11  ;;  %vm9534_vm8 = vmand %vm21532_vm11, %vm21531_vm13  ;;  %21533 = vst [vmem:[#allocation29_spill] sm:$0xff] %v18124_v48  ;;  %v18139_v11 = vpop.permute.xlu0 %7594  ;;  %7890 = vbcast.lane.b32.xlu0 %v21474_v28, 312  ;;  %vm21545_vm13 = vcmp.lt.f32.partialorder %v17140_v19, %v21437_v62  ;;  %vm21557_vm1 = vcmp.eq.f32.partialorder %v17172_v35, %v21438_v23 }
 0x22a   : > { %v11644_v1 = vadd.f32 %v13474_v54, %v11643_v21  ;;  %vm18129_vm6 = vmor %vm21534_vm5, %vm9534_vm8  ;;  %21537 = vst [vmem:[#allocation52_spill] sm:$0xff] %v18139_v11  ;;  %vm21539_vm8 = vcmp.lt.f32.partialorder %v17133_v53, %v21438_v23  ;;  %v21542_v54 = vld [vmem:[#allocation30_spill] sm:$0xff] }
 0x22b   : > { %vm18147_vm5 = vmor %vm21539_vm8, %vm21538_vm10  ;;  %v11608_v44 = vadd.f32 %v13475_v24, %v11607_v29  ;;  %vm21543_vm12 = vnez %v21542_v54  ;;  %vm21544_vm10 = vcmp.eq.f32.partialorder %v17140_v19, %v21437_v62  ;;  %7764 = vbcast.lane.b32.xlu1 %v21462_v40, 328  ;;  %v13479_v21 = vsel %vm18129_vm6, 1.0, %v21204_v50 }
 0x22c   : > { %vm9532_vm8 = vmand %vm21544_vm10, %vm21543_vm12  ;;  %v11645_v53 = vadd.f32 %v13476_v41, %v11644_v1  ;;  %v21546_v1 = vld [vmem:[#allocation26_spill] sm:$0xff]  ;;  %v18183_v24 = vpop.permute.xlu1 %7606  ;;  %vm21558_vm6 = vcmp.lt.f32.partialorder %v17172_v35, %v21438_v23 }
 0x22d   : > { %vm10044_vm9 = vmor %vm21545_vm13, %vm9532_vm8  ;;  %21547 = vst [vmem:[#allocation30_spill] sm:$0xff] %v18183_v24  ;;  %vm21549_vm13 = vcmp.lt.f32.partialorder %v17140_v19, %v21438_v23  ;;  %v18200_v29 = vpop.permute.xlu0 %7602  ;;  %v13480_v19 = vsel %vm18147_vm5, 1.0, %v21204_v50  ;;  %vm21554_vm5 = vcmp.lt.f32.partialorder %v17172_v35, %v21437_v62  ;;  %7894 = vbcast.lane.b32.xlu0 %v21474_v28, 320 }
 0x22e   : > { %vm10045_vm8 = vmor %vm21549_vm13, %vm21548_vm14  ;;  %v13477_v41 = vsel %vm10044_vm9, 1.0, %v21204_v50  ;;  %21550 = vst [vmem:[#allocation26_spill] sm:$0xff] %v18200_v29  ;;  %vm21552_vm9 = vnez %v21551_v59  ;;  %vm21553_vm14 = vcmp.eq.f32.partialorder %v17172_v35, %v21437_v62 }
 0x22f   : > { %v13478_v11 = vsel %vm10045_vm8, 1.0, %v21204_v50  ;;  %v11609_v48 = vadd.f32 %v13477_v41, %v11608_v44  ;;  %vm9538_vm13 = vmand %vm21553_vm14, %vm21552_vm9  ;;  %vm21561_vm14 = vcmp.lt.f32.partialorder %v17231_v31, %v21437_v62  ;;  %7768 = vbcast.lane.b32.xlu1 %v21462_v40, 336 }
 0x230   : > { %v11646_v44 = vadd.f32 %v13478_v11, %v11645_v53  ;;  %vm18224_vm8 = vmor %vm21554_vm5, %vm9538_vm13  ;;  %v18251_v53 = vsel %vm21561_vm14, 1.0, %v21204_v50  ;;  %v18259_v29 = vpop.permute.xlu1 %7614  ;;  %vm21566_vm14 = vcmp.lt.f32.partialorder %v21546_v1, %v21437_v62  ;;  %vm21587_vm5 = vcmp.lt.f32.partialorder %v17211_v10, %v21437_v62 }
 0x231   : > { %vm18239_vm11 = vmor %vm21558_vm6, %vm21557_vm1  ;;  %v11610_v11 = vadd.f32 %v13479_v21, %v11609_v48  ;;  %vm21562_vm1 = vcmp.lt.f32.partialorder %v17240_v37, %v21437_v62  ;;  %21563 = vst [vmem:[#allocation53_spill] sm:$0xff] %v18259_v29  ;;  %vm21565_vm6 = vcmp.eq.f32.partialorder %v17178_v61, %v21437_v62  ;;  %v18272_v24 = vsel %vm21566_vm14, 1.0, %v21204_v50  ;;  %v18278_v26 = vpop.permute.xlu0 %7610  ;;  %7898 = vbcast.lane.b32.xlu0 %v21474_v28, 328 }
 0x232   : > { %v18257_v35 = vsel %vm21562_vm1, 1.0, %v21204_v50  ;;  %vm9536_vm3 = vmand %vm21565_vm6, %vm21369_vm2  ;;  %v11647_v21 = vadd.f32 %v13480_v19, %v11646_v44  ;;  %21567 = vst [vmem:[#allocation54_spill] sm:$0xff] %v18278_v26  ;;  %vm21568_vm6 = vcmp.lt.f32.partialorder %v17178_v61, %v21437_v62  ;;  %v13484_v44 = vsel %vm18239_vm11, 1.0, %v21204_v50 }
 0x233   : > { %vm10048_vm10 = vmor %vm21568_vm6, %vm9536_vm3  ;;  %vm21569_vm3 = vcmp.eq.f32.partialorder %v17178_v61, %v21438_v23  ;;  %vm21570_vm6 = vcmp.lt.f32.partialorder %v17178_v61, %v21438_v23  ;;  %v13483_v61 = vsel %vm18224_vm8, 1.0, %v21204_v50  ;;  %vm21575_vm8 = vcmp.lt.f32.partialorder %v17197_v18, %v21437_v62  ;;  %7902 = vbcast.lane.b32.xlu1 %v21474_v28, 336 }
 0x234   : > { %vm10049_vm13 = vmor %vm21570_vm6, %vm21569_vm3  ;;  %v13481_v19 = vsel %vm10048_vm10, 1.0, %v21204_v50  ;;  %vm21572_vm10 = vnez %v21571_v22  ;;  %vm21573_vm3 = vcmp.eq.f32.partialorder %v17197_v18, %v21437_v62  ;;  %v18324_v26 = vpop.permute.xlu1 %7622  ;;  %vm21579_vm2 = vcmp.eq.f32.partialorder %v17197_v18, %v21438_v23 }
 0x235   : > { %v13482_v29 = vsel %vm10049_vm13, 1.0, %v21204_v50  ;;  %v11611_v48 = vadd.f32 %v13481_v19, %v11610_v11  ;;  %vm9542_vm6 = vmand %vm21573_vm3, %vm21572_vm10  ;;  %21574 = vst [vmem:[#allocation55_spill] sm:$0xff] %v18324_v26  ;;  %v18339_v11 = vpop.permute.xlu0 %7618  ;;  %vm21583_vm3 = vcmp.lt.f32.partialorder %v17292_v47, %v21437_v62  ;;  %vm21589_vm13 = vcmp.lt.f32.partialorder %v17346_v6, %v21437_v62 }
 0x236   : > { %v11648_v41 = vadd.f32 %v13482_v29, %v11647_v21  ;;  %vm18329_vm14 = vmor %vm21575_vm8, %vm9542_vm6  ;;  %21578 = vst [vmem:[#allocation56_spill] sm:$0xff] %v18339_v11  ;;  %vm21580_vm6 = vcmp.lt.f32.partialorder %v17197_v18, %v21438_v23  ;;  %v18359_v19 = vsel %vm21583_vm3, 1.0, %v21204_v50  ;;  %vm21601_vm3 = vcmp.lt.f32.partialorder %v17389_v5, %v21437_v62 }
 0x237   : > { %vm18347_vm8 = vmor %vm21580_vm6, %vm21579_vm2  ;;  %v11612_v21 = vadd.f32 %v13483_v61, %v11611_v48  ;;  %vm21585_vm2 = vcmp.eq.f32.partialorder %v17211_v10, %v21437_v62  ;;  %v21586_v61 = vld [vmem:[#allocation25_spill] sm:$0xff]  ;;  %v13487_v29 = vsel %vm18329_vm14, 1.0, %v21204_v50  ;;  %vm21600_vm14 = vcmp.eq.f32.partialorder %v17240_v37, %v21438_v23 }
 0x238   : > { %vm9540_vm6 = vmand %vm21585_vm2, %vm21107_vm4  ;;  %v11649_v48 = vadd.f32 %v13484_v44, %v11648_v41  ;;  %7638 = vbcast.lane.b32.xlu0 %v21586_v61, 344  ;;  %vm21588_vm2 = vcmp.lt.f32.partialorder %v17333_v57, %v21437_v62  ;;  %v18391_v41 = vsel %vm21589_vm13, 1.0, %v21204_v50  ;;  %v18397_v11 = vpop.permute.xlu1 %7630  ;;  %7642 = vbcast.lane.b32.xlu1 %v21586_v61, 352  ;;  %vm21602_vm11 = vcmp.lt.f32.partialorder %v17402_v52, %v21437_v62 }
 0x239   : > { %vm10052_vm1 = vmor %vm21587_vm5, %vm9540_vm6  ;;  %v18385_v44 = vsel %vm21588_vm2, 1.0, %v21204_v50  ;;  %21590 = vst [vmem:[#allocation25_spill] sm:$0xff] %v18397_v11  ;;  %vm21591_vm6 = vcmp.eq.f32.partialorder %v17211_v10, %v21438_v23  ;;  %vm21592_vm2 = vcmp.lt.f32.partialorder %v17211_v10, %v21438_v23  ;;  %v18414_v18 = vpop.permute.xlu0 %7626  ;;  %v13488_v10 = vsel %vm18347_vm8, 1.0, %v21204_v50 }
 0x23a   : > { %vm10053_vm10 = vmor %vm21592_vm2, %vm21591_vm6  ;;  %v13485_v26 = vsel %vm10052_vm1, 1.0, %v21204_v50  ;;  %21593 = vst [vmem:[#allocation57_spill] sm:$0xff] %v18414_v18  ;;  %vm21595_vm1 = vcmp.eq.f32.partialorder %v17231_v31, %v21438_v23  ;;  %vm8346_vm5 = vcmp.lt.f32.partialorder %v17443_v51, %v21437_v62  ;;  %v21606_v18 = vld [vmem:[#allocation17_spill] sm:$0xff] }
 0x23b   : > { %v13486_v22 = vsel %vm10053_vm10, 1.0, %v21204_v50  ;;  %v11613_v59 = vadd.f32 %v13485_v26, %v11612_v21  ;;  %vm9547_vm6 = vmand %vm21595_vm1, %vm21108_vm15  ;;  %vm21596_vm10 = vcmp.lt.f32.partialorder %v17231_v31, %v21438_v23  ;;  %v18464_v21 = vsel %vm21602_vm11, 1.0, %v21204_v50 }
 0x23c   : > { %v11650_v11 = vadd.f32 %v13486_v22, %v11649_v48  ;;  %vm18436_vm8 = vmor %vm21596_vm10, %vm9547_vm6  ;;  %7772 = vbcast.lane.b32.xlu0 %v21462_v40, 344  ;;  %v18458_v22 = vsel %vm21601_vm3, 1.0, %v21204_v50  ;;  %v18468_v48 = vpop.permute.xlu1 %7661  ;;  %7776 = vbcast.lane.b32.xlu1 %v21462_v40, 352  ;;  %vm21615_vm11 = vcmp.lt.f32.partialorder %v17292_v47, %v21438_v23  ;;  %vm21626_vm1 = vcmp.lt.f32.partialorder %v17456_v63, %v21437_v62 }
 0x23d   : > { %vm9545_vm6 = vmand %vm21600_vm14, %vm21381_vm7  ;;  %v11614_v31 = vadd.f32 %v13487_v29, %v11613_v59  ;;  %21603 = vst [vmem:[#allocation58_spill] sm:$0xff] %v18468_v48  ;;  %vm21604_vm14 = vcmp.lt.f32.partialorder %v17240_v37, %v21438_v23  ;;  %v21605_v29 = vld [vmem:[#allocation16_spill] sm:$0xff]  ;;  %v18481_v60 = vpop.permute.xlu0 %7634 }
 0x23e   : > { %vm10057_vm10 = vmor %vm21604_vm14, %vm9545_vm6  ;;  %v11651_v59 = vadd.f32 %v13488_v10, %v11650_v11  ;;  %21607 = vst [vmem:[#allocation16_spill] sm:$0xff] %v18481_v60  ;;  %vm21608_vm6 = vcmp.eq.f32.partialorder %v21546_v1, %v21438_v23 }
 0x23f   : > { %v13490_v30 = vsel %vm10057_vm10, 1.0, %v21204_v50  ;;  %v11615_v37 = vadd.f32 %v18257_v35, %v11614_v31  ;;  %vm9551_vm14 = vmand %vm21608_vm6, %vm21384_vm0  ;;  %vm21609_vm10 = vcmp.lt.f32.partialorder %v21546_v1, %v21438_v23  ;;  %v21612_v1 = vld [vmem:[#allocation38_spill] sm:$0xff]  ;;  %v18526_v31 = vsel %vm8346_vm5, 1.0, %v21204_v50 }
 0x240   : > { %v11652_v11 = vadd.f32 %v13490_v30, %v11651_v59  ;;  %vm18500_vm3 = vmor %vm21609_vm10, %vm9551_vm14  ;;  %7906 = vbcast.lane.b32.xlu0 %v21474_v28, 344  ;;  %v13492_v30 = vsel %vm18436_vm8, 1.0, %v21204_v50  ;;  %vm21613_vm14 = vnez %v21612_v1  ;;  %vm21614_vm10 = vcmp.eq.f32.partialorder %v17292_v47, %v21438_v23  ;;  %v18530_v26 = vpop.permute.xlu1 %7795  ;;  %7910 = vbcast.lane.b32.xlu1 %v21474_v28, 352 }
 0x241   : > { %vm9549_vm2 = vmand %vm21614_vm10, %vm21613_vm14  ;;  %v11616_v10 = vadd.f32 %v18251_v53, %v11615_v37  ;;  %v21616_v53 = vld [vmem:[#allocation18_spill] sm:$0xff]  ;;  %v21617_v37 = vld [vmem:[#allocation19_spill] sm:$0xff]  ;;  %v18541_v60 = vpop.permute.xlu0 %7665  ;;  %vm21618_vm8 = vnez %v20970_v45 }
 0x242   : > { %vm10061_vm10 = vmor %vm21615_vm11, %vm9549_vm2  ;;  %v11653_v59 = vadd.f32 %v13492_v30, %v11652_v11  ;;  %vm21619_vm2 = vcmp.eq.f32.partialorder %v17333_v57, %v21438_v23  ;;  %v13505_v30 = vsel %vm21626_vm1, 1.0, %v21204_v50  ;;  %vm21628_vm1 = vnez %v20982_v32 }
 0x243   : > { %v13494_v48 = vsel %vm10061_vm10, 1.0, %v21204_v50  ;;  %v11617_v1 = vadd.f32 %v18359_v19, %v11616_v10  ;;  %vm9555_vm11 = vmand %vm21619_vm2, %vm21618_vm8  ;;  %vm21620_vm10 = vcmp.lt.f32.partialorder %v17333_v57, %v21438_v23  ;;  %v21623_v57 = vld [vmem:[#allocation40_spill] sm:$0xff] }
 0x244   : > { %v11654_v47 = vadd.f32 %v13494_v48, %v11653_v59  ;;  %vm18560_vm13 = vmor %vm21620_vm10, %vm9555_vm11  ;;  %7646 = vbcast.lane.b32.xlu0 %v21586_v61, 360  ;;  %v13496_v48 = vsel %vm18500_vm3, 1.0, %v21204_v50  ;;  %vm21624_vm11 = vnez %v21623_v57  ;;  %vm21625_vm10 = vcmp.eq.f32.partialorder %v17346_v6, %v21438_v23  ;;  %v18586_v10 = vpop.permute.xlu1 %7669  ;;  %7650 = vbcast.lane.b32.xlu1 %v21586_v61, 368 }
 0x245   : > { %vm9553_vm5 = vmand %vm21625_vm10, %vm21624_vm11  ;;  %v11618_v11 = vadd.f32 %v18272_v24, %v11617_v1  ;;  %vm21627_vm3 = vcmp.lt.f32.partialorder %v17346_v6, %v21438_v23  ;;  %v18597_v24 = vpop.permute.xlu0 %7799 }
 0x246   : > { %vm10065_vm6 = vmor %vm21627_vm3, %vm9553_vm5  ;;  %v11655_v35 = vadd.f32 %v13496_v48, %v11654_v47  ;;  %vm21629_vm5 = vcmp.eq.f32.partialorder %v17389_v5, %v21438_v23  ;;  %v13500_v47 = vsel %vm18560_vm13, 1.0, %v21204_v50  ;;  %vm21635_vm13 = vcmp.lt.f32.partialorder %v17402_v52, %v21438_v23 }
 0x247   : > { %v13498_v1 = vsel %vm10065_vm6, 1.0, %v21204_v50  ;;  %v11619_v59 = vadd.f32 %v18391_v41, %v11618_v11  ;;  %vm9559_vm3 = vmand %vm21629_vm5, %vm21628_vm1  ;;  %vm21630_vm6 = vcmp.lt.f32.partialorder %v17389_v5, %v21438_v23 }
 0x248   : > { %v11656_v6 = vadd.f32 %v13498_v1, %v11655_v35  ;;  %vm18614_vm2 = vmor %vm21630_vm6, %vm9559_vm3  ;;  %7780 = vbcast.lane.b32.xlu0 %v21462_v40, 360  ;;  %vm21633_vm3 = vnez %v20987_v43  ;;  %vm21634_vm6 = vcmp.eq.f32.partialorder %v17402_v52, %v21438_v23  ;;  %v18640_v48 = vpop.permute.xlu1 %7673  ;;  %v21636_v1 = vld [vmem:[#allocation43_spill] sm:$0xff]  ;;  %7784 = vbcast.lane.b32.xlu1 %v21462_v40, 368 }
 0x249   : > { %vm9557_vm11 = vmand %vm21634_vm6, %vm21633_vm3  ;;  %v11620_v5 = vadd.f32 %v18385_v44, %v11619_v59  ;;  %v18651_v44 = vpop.permute.xlu0 %7803  ;;  %vm21637_vm10 = vnez %v21636_v1  ;;  %v13504_v59 = vsel %vm18614_vm2, 1.0, %v21204_v50 }
 0x24a   : > { %vm10069_vm1 = vmor %vm21635_vm13, %vm9557_vm11  ;;  %v11657_v19 = vadd.f32 %v13500_v47, %v11656_v6  ;;  %vm21638_vm11 = vcmp.eq.f32.partialorder %v17443_v51, %v21438_v23 }
 0x24b   : > { %v13502_v11 = vsel %vm10069_vm1, 1.0, %v21204_v50  ;;  %v11621_v35 = vadd.f32 %v18464_v21, %v11620_v5  ;;  %vm9563_vm13 = vmand %vm21638_vm11, %vm21637_vm10  ;;  %vm21639_vm1 = vcmp.lt.f32.partialorder %v17443_v51, %v21438_v23  ;;  %v21642_v51 = vld [vmem:[#allocation44_spill] sm:$0xff]  ;;  %vm21645_vm11 = vcmp.lt.f32.partialorder %v17456_v63, %v21438_v23 }
 0x24c   : > { %v11658_v52 = vadd.f32 %v13502_v11, %v11657_v19  ;;  %vm18668_vm8 = vmor %vm21639_vm1, %vm9563_vm13  ;;  %7914 = vbcast.lane.b32.xlu0 %v21474_v28, 360  ;;  %vm21643_vm13 = vnez %v21642_v51  ;;  %vm21644_vm1 = vcmp.eq.f32.partialorder %v17456_v63, %v21438_v23  ;;  %v18692_v47 = vpop.permute.xlu1 %7677  ;;  %v21646_v11 = vld [vmem:[#allocation45_spill] sm:$0xff]  ;;  %7918 = vbcast.lane.b32.xlu1 %v21474_v28, 368  ;;  %vm21656_vm10 = vcmp.lt.f32.partialorder %v17514_v39, %v21437_v62 }
 0x24d   : > { %vm9561_vm3 = vmand %vm21644_vm1, %vm21643_vm13  ;;  %v11622_v6 = vadd.f32 %v18458_v22, %v11621_v35  ;;  %v18703_v22 = vpop.permute.xlu0 %7807  ;;  %vm21647_vm6 = vnez %v21646_v11  ;;  %vm21649_vm13 = vcmp.lt.f32.partialorder %v17499_v58, %v21438_v23  ;;  %v21652_v35 = vld [vmem:[#allocation14_spill] sm:$0xff] }
 0x24e   : > { %vm10073_vm2 = vmor %vm21645_vm11, %vm9561_vm3  ;;  %v11659_v41 = vadd.f32 %v13504_v59, %v11658_v52  ;;  %vm21648_vm3 = vcmp.eq.f32.partialorder %v17499_v58, %v21438_v23  ;;  %v13508_v52 = vsel %vm18668_vm8, 1.0, %v21204_v50  ;;  %v21653_v59 = vld [vmem:[#allocation46_spill] sm:$0xff]  ;;  %vm21657_vm8 = vcmp.lt.f32.partialorder %v17514_v39, %v21438_v23 }
 0x24f   : > { %v13506_v5 = vsel %vm10073_vm2, 1.0, %v21204_v50  ;;  %v11623_v19 = vadd.f32 %v13505_v30, %v11622_v6  ;;  %vm9567_vm11 = vmand %vm21648_vm3, %vm21647_vm6  ;;  %v13509_v6 = vsel %vm21656_vm10, 1.0, %v21204_v50  ;;  %vm21658_vm3 = vnez %v21026_v0 }
 0x250   : > { %v11660_v63 = vadd.f32 %v13506_v5, %v11659_v41  ;;  %vm18719_vm2 = vmor %vm21649_vm13, %vm9567_vm11  ;;  %7654 = vbcast.lane.b32.xlu0 %v21586_v61, 376  ;;  %vm21654_vm13 = vnez %v21653_v59  ;;  %vm21655_vm11 = vcmp.eq.f32.partialorder %v17514_v39, %v21438_v23  ;;  %v18745_v61 = vpop.permute.xlu1 %7681  ;;  %7922 = vbcast.lane.b32.xlu1 %v21474_v28, 376  ;;  %vm21660_vm10 = vcmp.lt.f32.partialorder %v17499_v58, %v21437_v62 }
 0x251   : > { %vm9565_vm1 = vmand %vm21655_vm11, %vm21654_vm13  ;;  %v11624_v41 = vadd.f32 %v18526_v31, %v11623_v19  ;;  %v18756_v31 = vpop.permute.xlu0 %7811  ;;  %vm8353_vm11 = vcmp.lt.f32.partialorder %v17572_v46, %v21438_v23  ;;  %v13511_v39 = vsel %vm21660_vm10, 1.0, %v21204_v50  ;;  %v13512_v58 = vsel %vm18719_vm2, 1.0, %v21204_v50 }
 0x252   : > { %vm10077_vm5 = vmor %vm21657_vm8, %vm9565_vm1  ;;  %v11661_v21 = vadd.f32 %v13508_v52, %v11660_v63  ;;  %vm21659_vm1 = vcmp.eq.f32.partialorder %v21652_v35, %v21438_v23  ;;  %vm8354_vm10 = vcmp.lt.f32.partialorder %v21652_v35, %v21437_v62  ;;  %vm21666_vm6 = vcmp.lt.f32.partialorder %v17572_v46, %v21437_v62 }
 0x253   : > { %v13510_v5 = vsel %vm10077_vm5, 1.0, %v21204_v50  ;;  %v11625_v19 = vadd.f32 %v13509_v6, %v11624_v41  ;;  %vm9571_vm8 = vmand %vm21659_vm1, %vm21658_vm3  ;;  %vm21661_vm5 = vcmp.lt.f32.partialorder %v21652_v35, %v21438_v23 }
 0x254   : > { %v11662_v63 = vadd.f32 %v13510_v5, %v11661_v21  ;;  %vm18776_vm13 = vmor %vm21661_vm5, %vm9571_vm8  ;;  %7788 = vbcast.lane.b32.xlu0 %v21462_v40, 376  ;;  %vm21664_vm8 = vnez %v21031_v12  ;;  %vm21665_vm5 = vcmp.eq.f32.partialorder %v17572_v46, %v21438_v23  ;;  %v18795_v6 = vpop.permute.xlu1 %7685  ;;  %v13513_v40 = vsel %vm21666_vm6, 1.0, %v21204_v50 }
 0x255   : > { %vm9569_vm3 = vmand %vm21665_vm5, %vm21664_vm8  ;;  %v11626_v28 = vadd.f32 %v13511_v39, %v11625_v19  ;;  %v18803_v35 = vpop.permute.xlu0 %7815  ;;  %vm21667_vm5 = vnez %v21445_v55  ;;  %vm21668_vm8 = vcmp.eq.f32.partialorder %v17613_v34, %v21438_v23  ;;  %v13515_v46 = vsel %vm8354_vm10, 1.0, %v21204_v50  ;;  %v21693_v55 = vld [vmem:[#allocation22_spill] sm:$0xff] }
 0x256   : > { %vm10081_vm1 = vmor %vm8353_vm11, %vm9569_vm3  ;;  %v11663_v30 = vadd.f32 %v13512_v58, %v11662_v63  ;;  %vm21669_vm6 = vcmp.lt.f32.partialorder %v17613_v34, %v21438_v23  ;;  %v13516_v39 = vsel %vm18776_vm13, 1.0, %v21204_v50  ;;  %vm21672_vm10 = vnez %v21451_v20  ;;  %v21695_v20 = vld [vmem:[#allocation28_spill] sm:$0xff] }
 0x257   : > { %v13514_v41 = vsel %vm10081_vm1, 1.0, %v21204_v50  ;;  %v11627_v21 = vadd.f32 %v13513_v40, %v11626_v28  ;;  %vm9575_vm3 = vmand %vm21668_vm8, %vm21667_vm5  ;;  %vm21673_vm8 = vcmp.eq.f32.partialorder %v17624_v17, %v21438_v23  ;;  %vm21675_vm1 = vcmp.lt.f32.partialorder %v17624_v17, %v21437_v62 }
 0x258   : > { %v11664_v5 = vadd.f32 %v13514_v41, %v11663_v30  ;;  %vm18817_vm2 = vmor %vm21669_vm6, %vm9575_vm3  ;;  %v18833_v58 = vpop.permute.xlu1 %7689  ;;  %vm21674_vm3 = vcmp.lt.f32.partialorder %v17624_v17, %v21438_v23  ;;  %v13517_v28 = vsel %vm21675_vm1, 1.0, %v21204_v50  ;;  %vm21680_vm1 = vcmp.lt.f32.partialorder %v17613_v34, %v21437_v62 }
 0x259   : > { %vm9573_vm11 = vmand %vm21673_vm8, %vm21672_vm10  ;;  %v11628_v63 = vadd.f32 %v13515_v46, %v11627_v21  ;;  %v18844_v40 = vpop.permute.xlu0 %7819  ;;  %vm21677_vm8 = vnez %v21459_v16  ;;  %v21678_v21 = vld [vmem:[#allocation15_spill] sm:$0xff]  ;;  %v13519_v23 = vsel %vm21680_vm1, 1.0, %v21204_v50  ;;  %v13520_v46 = vsel %vm18817_vm2, 1.0, %v21204_v50 }
 0x25a   : > { %vm10085_vm6 = vmor %vm21674_vm3, %vm9573_vm11  ;;  %v11665_v52 = vadd.f32 %v13516_v39, %v11664_v5  ;;  %21676 = vst [vmem:[#allocation17_spill] sm:$0xff] %v18844_v40  ;;  %vm21679_vm14 = vcmp.eq.f32.partialorder %v21678_v21, %v21456_v2  ;;  %vm21681_vm13 = vcmp.lt.f32.partialorder %v21678_v21, %v21456_v2  ;;  %vm21683_vm1 = vcmp.lt.f32.partialorder %v21678_v21, %v21457_v15 }
 0x25b   : > { %v13518_v30 = vsel %vm10085_vm6, 1.0, %v21204_v50  ;;  %v11629_v41 = vadd.f32 %v13517_v28, %v11628_v63  ;;  %vm9578_vm11 = vmand %vm21679_vm14, %vm21677_vm8  ;;  %vm21682_vm14 = vcmp.eq.f32.partialorder %v21678_v21, %v21457_v15  ;;  %v21685_v63 = vld [vmem:[#allocation21_spill] sm:$0xff]  ;;  %v21687_v28 = vld [vmem:[#allocation27_spill] sm:$0xff] }
 0x25c   : > { %v11666_v17 = vadd.f32 %v13518_v30, %v11665_v52  ;;  %vm10090_vm6 = vmor %vm21681_vm13, %vm9578_vm11  ;;  %v18874_v62 = vpop.permute.xlu1 %7693  ;;  %vm21686_vm13 = vnez %v21685_v63  ;;  %vm21688_vm11 = vcmp.eq.f32.partialorder %v21687_v28, %v21456_v2  ;;  %vm21691_vm10 = vcmp.eq.f32.partialorder %v21687_v28, %v21457_v15 }
 0x25d   : > { %v11630_v5 = vadd.f32 %v13519_v23, %v11629_v41  ;;  %vm10091_vm3 = vmor %vm21683_vm1, %vm21682_vm14  ;;  %21684 = vst [vmem:[#allocation18_spill] sm:$0xff] %v18874_v62  ;;  %v13523_v39 = vsel %vm10090_vm6, 1.0, %v21204_v50  ;;  %v18884_v19 = vpop.permute.xlu0 %7823  ;;  %vm21690_vm14 = vcmp.lt.f32.partialorder %v21687_v28, %v21456_v2 }
 0x25e   : > { %v11667_v34 = vadd.f32 %v13520_v46, %v11666_v17  ;;  %vm9576_vm5 = vmand %vm21688_vm11, %vm21686_vm13  ;;  %21689 = vst [vmem:[#allocation19_spill] sm:$0xff] %v18884_v19  ;;  %v13524_v30 = vsel %vm10091_vm3, 1.0, %v21204_v50  ;;  %vm21692_vm11 = vcmp.lt.f32.partialorder %v21687_v28, %v21457_v15 }
 0x25f   : > { %v11631_v52 = vrot.slane %v11630_v5, 4  ;;  %vm10088_vm1 = vmor %vm21690_vm14, %vm9576_vm5  ;;  %vm21694_vm5 = vnez %v21693_v55  ;;  %vm21696_vm14 = vcmp.eq.f32.partialorder %v21695_v20, %v21456_v2 }
 0x260   : > { %v11668_v41 = vrot.slane %v11667_v34, 4  ;;  %vm10089_vm2 = vmor %vm21692_vm11, %vm21691_vm10  ;;  %v13521_v21 = vsel %vm10088_vm1, 1.0, %v21204_v50  ;;  %v18909_v28 = vpop.permute.xlu1 %7697  ;;  %vm21698_vm10 = vcmp.lt.f32.partialorder %v21695_v20, %v21456_v2  ;;  %vm21702_vm11 = vcmp.eq.f32.partialorder %v21695_v20, %v21457_v15 }
 0x261   : > { %v11632_v23 = vadd.f32 %v11631_v52, %v11630_v5  ;;  %v13522_v17 = vsel %vm10089_vm2, 1.0, %v21204_v50  ;;  %v11674_v46 = vadd.f32 %v13523_v39, %v13521_v21  ;;  %vm9582_vm6 = vmand %vm21696_vm14, %vm21694_vm5  ;;  %21697 = vst [vmem:[#allocation14_spill] sm:$0xff] %v18909_v28  ;;  %v18920_v39 = vpop.permute.xlu0 %7827  ;;  %vm21703_vm14 = vcmp.lt.f32.partialorder %v21695_v20, %v21457_v15 }
 0x262   : > { %v11669_v0 = vadd.f32 %v11668_v41, %v11667_v34  ;;  %v11711_v12 = vadd.f32 %v13524_v30, %v13522_v17  ;;  %vm18914_vm1 = vmor %vm21698_vm10, %vm9582_vm6  ;;  %21701 = vst [vmem:[#allocation15_spill] sm:$0xff] %v18920_v39  ;;  %v21704_v30 = vld [vmem:[#allocation20_spill] sm:$0xff]  ;;  %v21706_v41 = vld [vmem:[#allocation10_spill] sm:$0xff] }
 0x263   : > { %v11633_v52 = vrot.slane %v11632_v23, 2  ;;  %vm10095_vm3 = vmor %vm21703_vm14, %vm21702_vm11  ;;  %vm21705_vm6 = vnez %v21704_v30  ;;  %vm21707_vm10 = vcmp.eq.f32.partialorder %v21706_v41, %v21456_v2  ;;  %vm21708_vm13 = vcmp.lt.f32.partialorder %v21706_v41, %v21456_v2 }
 0x264   : > { %v11670_v34 = vrot.slane %v11669_v0, 2  ;;  %vm9580_vm2 = vmand %vm21707_vm10, %vm21705_vm6  ;;  %v18942_v20 = vpop.permute.xlu1 %7701  ;;  %vm21710_vm14 = vcmp.eq.f32.partialorder %v21706_v41, %v21457_v15  ;;  %vm21711_vm10 = vcmp.lt.f32.partialorder %v21706_v41, %v21457_v15  ;;  %v13528_v39 = vsel %vm10095_vm3, 1.0, %v21204_v50 }
 0x265   : > { %v11634_v21 = vadd.f32 %v11633_v52, %v11632_v23  ;;  %vm10092_vm0 = vmor %vm21708_vm13, %vm9580_vm2  ;;  %21709 = vst [vmem:[#allocation21_spill] sm:$0xff] %v18942_v20  ;;  %v18953_v23 = vpop.permute.xlu0 %7831  ;;  %vm21712_vm13 = vnez %v21489_v8  ;;  %v13527_v19 = vsel %vm18914_vm1, 1.0, %v21204_v50  ;;  %vm21736_vm6 = vcmp.eq.f32.partialorder %v17843_v36, %v21456_v2 }
 0x266   : > { %v11671_v17 = vadd.f32 %v11670_v34, %v11669_v0  ;;  %vm10093_vm8 = vmor %vm21711_vm10, %vm21710_vm14  ;;  %v13525_v11 = vsel %vm10092_vm0, 1.0, %v21204_v50  ;;  %v21713_v34 = vld [vmem:[#allocation11_spill] sm:$0xff] }
 0x267   : > { %v11635_v52 = vrot.slane %v11634_v21, 1  ;;  %v13526_v28 = vsel %vm10093_vm8, 1.0, %v21204_v50  ;;  %v11675_v0 = vadd.f32 %v13525_v11, %v11674_v46  ;;  %vm21714_vm2 = vcmp.eq.f32.partialorder %v21713_v34, %v21456_v2 }
 0x268   : > { %vm9586_vm11 = vmand %vm21714_vm2, %vm21712_vm13  ;;  %v11672_v41 = vrot.slane %v11671_v17, 1  ;;  %v11712_v62 = vadd.f32 %v13526_v28, %v11711_v12  ;;  %vm21715_vm0 = vcmp.lt.f32.partialorder %v21713_v34, %v21456_v2  ;;  %vm21718_vm3 = vcmp.eq.f32.partialorder %v21713_v34, %v21457_v15  ;;  %v18986_v46 = vpop.permute.xlu1 %7705  ;;  %v21723_v28 = vld [vmem:[#allocation12_spill] sm:$0xff] }
 0x269   : > { %vm18968_vm14 = vmor %vm21715_vm0, %vm9586_vm11  ;;  %vm21719_vm10 = vcmp.lt.f32.partialorder %v21713_v34, %v21457_v15  ;;  %v11676_v12 = vadd.f32 %v13527_v19, %v11675_v0  ;;  %vm21722_vm11 = vnez %v20894_v13  ;;  %vm21724_vm0 = vcmp.eq.f32.partialorder %v21723_v28, %v21456_v2  ;;  %v18993_v20 = vpop.permute.xlu0 %7835 }
 0x26a   : > { %vm18980_vm2 = vmor %vm21719_vm10, %vm21718_vm3  ;;  %v11713_v5 = vadd.f32 %v13528_v39, %v11712_v62  ;;  %v11636_v34 = vadd.f32 %v11635_v52, %v11634_v21  ;;  %vm21725_vm3 = vcmp.lt.f32.partialorder %v21723_v28, %v21456_v2  ;;  %v11673_v19 = vadd.f32 %v11672_v41, %v11671_v17 }
 0x26b   : > { %vm9584_vm5 = vmand %vm21724_vm0, %vm21722_vm11  ;;  %vm21726_vm13 = vcmp.eq.f32.partialorder %v21723_v28, %v21457_v15  ;;  %vm21727_vm0 = vcmp.lt.f32.partialorder %v21723_v28, %v21457_v15  ;;  %v13532_v39 = vsel %vm18980_vm2, 1.0, %v21204_v50  ;;  %v13531_v0 = vsel %vm18968_vm14, 1.0, %v21204_v50 }
 0x26c   : > { %vm10096_vm10 = vmor %vm21725_vm3, %vm9584_vm5  ;;  %vm21728_vm3 = vnez %v21205_v9  ;;  %v19024_v52 = vpop.permute.xlu1 %7709  ;;  %vm21730_vm2 = vcmp.lt.f32.partialorder %v17828_v33, %v21456_v2  ;;  %vm11934_vm5 = vcmask 1044484   ;;  %vm21734_vm14 = vcmp.lt.f32.partialorder %v17828_v33, %v21457_v15 }
 0x26d   : > { %vm10097_vm11 = vmor %vm21727_vm0, %vm21726_vm13  ;;  %v13529_v62 = vsel %vm10096_vm10, 1.0, %v21204_v50  ;;  %vm21729_vm13 = vcmp.eq.f32.partialorder %v17828_v33, %v21456_v2  ;;  %vm21733_vm10 = vcmp.eq.f32.partialorder %v17828_v33, %v21457_v15 }
 0x26e   : > { %v13530_v21 = vsel %vm10097_vm11, 1.0, %v21204_v50  ;;  %v11677_v17 = vadd.f32 %v13529_v62, %v11676_v12  ;;  %vm9590_vm0 = vmand %vm21729_vm13, %vm21728_vm3  ;;  %v19038_v12 = vpop.permute.xlu0 %7839  ;;  %vm21737_vm3 = vcmp.lt.f32.partialorder %v17843_v36, %v21456_v2  ;;  %v19066_v62 = vsel %vm11934_vm5, %v11673_v19, %v18001_v27 }
 0x26f   : > { %v11714_v41 = vadd.f32 %v13530_v21, %v11713_v5  ;;  %vm19032_vm11 = vmor %vm21730_vm2, %vm9590_vm0  ;;  %vm21735_vm2 = vnez %v21212_v56  ;;  %v19063_v5 = vsel %vm11934_vm5, %v11636_v34, %v17997_v25  ;;  %21738 = vst [vmem:[#allocation27_spill] sm:$0xff] %v19066_v62  ;;  %vm21741_vm5 = vnez %v21348_v3 }
 0x270   : > { %vm10103_vm1 = vmor %vm21734_vm14, %vm21733_vm10  ;;  %v11678_v40 = vadd.f32 %v13531_v0, %v11677_v17  ;;  %v19060_v33 = vpop.permute.xlu1 %7713  ;;  %vm21740_vm14 = vcmp.lt.f32.partialorder %v17843_v36, %v21457_v15 }
 0x271   : > { %vm9588_vm13 = vmand %vm21736_vm6, %vm21735_vm2  ;;  %v11715_v28 = vadd.f32 %v13532_v39, %v11714_v41  ;;  %vm21739_vm6 = vcmp.eq.f32.partialorder %v17843_v36, %v21457_v15  ;;  %v13536_v25 = vsel %vm10103_vm1, 1.0, %v21204_v50  ;;  %v13535_v36 = vsel %vm19032_vm11, 1.0, %v21204_v50 }
 0x272   : > { %vm10100_vm7 = vmor %vm21737_vm3, %vm9588_vm13  ;;  %v19077_v21 = vpop.permute.xlu0 %7843  ;;  %vm21742_vm13 = vcmp.eq.f32.partialorder %v17881_v7, %v21456_v2  ;;  %vm21747_vm11 = vcmp.lt.f32.partialorder %v17881_v7, %v21457_v15 }
 0x273   : > { %vm10101_vm8 = vmor %vm21740_vm14, %vm21739_vm6  ;;  %v13533_v39 = vsel %vm10100_vm7, 1.0, %v21204_v50  ;;  %vm21743_vm7 = vcmp.lt.f32.partialorder %v17881_v7, %v21456_v2  ;;  %vm21752_vm14 = vcmp.lt.f32.partialorder %v17895_v14, %v21456_v2 }
 0x274   : > { %v13534_v34 = vsel %vm10101_vm8, 1.0, %v21204_v50  ;;  %v11679_v27 = vadd.f32 %v13533_v39, %v11678_v40  ;;  %vm9594_vm10 = vmand %vm21742_vm13, %vm21741_vm5  ;;  %vm21746_vm13 = vcmp.eq.f32.partialorder %v17881_v7, %v21457_v15  ;;  %v19108_v41 = vpop.permute.xlu1 %7717  ;;  %vm21753_vm5 = vcmp.eq.f32.partialorder %v17895_v14, %v21457_v15 }
 0x275   : > { %v11716_v19 = vadd.f32 %v13534_v34, %v11715_v28  ;;  %vm19094_vm1 = vmor %vm21743_vm7, %vm9594_vm10  ;;  %21748 = vst [vmem:[#allocation22_spill] sm:$0xff] %v19108_v41  ;;  %vm21749_vm10 = vnez %v21354_v38  ;;  %vm21750_vm7 = vcmp.eq.f32.partialorder %v17895_v14, %v21456_v2 }
 0x276   : > { %vm10107_vm3 = vmor %vm21747_vm11, %vm21746_vm13  ;;  %v11680_v0 = vadd.f32 %v13535_v36, %v11679_v27  ;;  %v19117_v40 = vpop.permute.xlu0 %7847 }
 0x277   : > { %vm9592_vm6 = vmand %vm21750_vm7, %vm21749_vm10  ;;  %v11717_v11 = vadd.f32 %v13536_v25, %v11716_v19  ;;  %21751 = vst [vmem:[#allocation28_spill] sm:$0xff] %v19117_v40  ;;  %vm21754_vm7 = vcmp.lt.f32.partialorder %v17895_v14, %v21457_v15  ;;  %v13540_v28 = vsel %vm10107_vm3, 1.0, %v21204_v50  ;;  %v13539_v14 = vsel %vm19094_vm1, 1.0, %v21204_v50 }
 0x278   : > { %vm10104_vm0 = vmor %vm21752_vm14, %vm9592_vm6  ;;  %vm21755_vm6 = vnez %v21530_v4  ;;  %vm21756_vm14 = vcmp.eq.f32.partialorder %v17941_v49, %v21456_v2  ;;  %v19142_v34 = vpop.permute.xlu1 %7721 }
 0x279   : > { %vm10105_vm10 = vmor %vm21754_vm7, %vm21753_vm5  ;;  %v13537_v7 = vsel %vm10104_vm0, 1.0, %v21204_v50  ;;  %21757 = vst [vmem:[#allocation20_spill] sm:$0xff] %v19142_v34  ;;  %vm21758_vm0 = vcmp.lt.f32.partialorder %v17941_v49, %v21456_v2  ;;  %vm21763_vm7 = vcmp.lt.f32.partialorder %v17941_v49, %v21457_v15  ;;  %v21790_v34 = vld [vmem:[#allocation24_spill] sm:$0xff] }
 0x27a   : > { %v13538_v39 = vsel %vm10105_vm10, 1.0, %v21204_v50  ;;  %v11681_v25 = vadd.f32 %v13537_v7, %v11680_v0  ;;  %vm9598_vm11 = vmand %vm21756_vm14, %vm21755_vm6  ;;  %v19156_v19 = vpop.permute.xlu0 %7851  ;;  %vm21762_vm10 = vcmp.eq.f32.partialorder %v17941_v49, %v21457_v15  ;;  %v21764_v0 = vld [vmem:[#allocation23_spill] sm:$0xff] }
 0x27b   : > { %v11718_v27 = vadd.f32 %v13538_v39, %v11717_v11  ;;  %vm19150_vm3 = vmor %vm21758_vm0, %vm9598_vm11  ;;  %21761 = vst [vmem:[#allocation10_spill] sm:$0xff] %v19156_v19  ;;  %vm21765_vm11 = vcmp.eq.f32.partialorder %v21764_v0, %v21456_v2  ;;  %vm21766_vm8 = vcmp.lt.f32.partialorder %v21764_v0, %v21456_v2  ;;  %vm21768_vm14 = vcmp.lt.f32.partialorder %v21764_v0, %v21457_v15 }
 0x27c   : > { %vm10111_vm1 = vmor %vm21763_vm7, %vm21762_vm10  ;;  %v11682_v17 = vadd.f32 %v13539_v14, %v11681_v25  ;;  %vm21767_vm7 = vcmp.eq.f32.partialorder %v21764_v0, %v21457_v15  ;;  %v21769_v25 = vld [vmem:[#allocation31_spill] sm:$0xff]  ;;  %v21770_v14 = vld [vmem:[#allocation8_spill] sm:$0xff]  ;;  %v13543_v0 = vsel %vm19150_vm3, 1.0, %v21204_v50 }
 0x27d   : > { %vm9596_vm0 = vmand %vm21765_vm11, %vm21543_vm12  ;;  %v11719_v11 = vadd.f32 %v13540_v28, %v11718_v27  ;;  %v13544_v7 = vsel %vm10111_vm1, 1.0, %v21204_v50  ;;  %v19192_v27 = vpop.permute.xlu1 %7728  ;;  %vm21778_vm3 = vcmp.lt.f32.partialorder %v21770_v14, %v21457_v15 }
 0x27e   : > { %vm10108_vm13 = vmor %vm21766_vm8, %vm9596_vm0  ;;  %vm21771_vm8 = vcmp.eq.f32.partialorder %v21770_v14, %v21456_v2  ;;  %21772 = vst [vmem:[#allocation11_spill] sm:$0xff] %v19192_v27  ;;  %v19194_v62 = vpop.permute.xlu0 %7855  ;;  %vm21777_vm0 = vcmp.eq.f32.partialorder %v21770_v14, %v21457_v15  ;;  %v21788_v27 = vld [vmem:[#allocation33_spill] sm:$0xff] }
 0x27f   : > { %vm10109_vm6 = vmor %vm21768_vm14, %vm21767_vm7  ;;  %v13541_v49 = vsel %vm10108_vm13, 1.0, %v21204_v50  ;;  %21773 = vst [vmem:[#allocation12_spill] sm:$0xff] %v19194_v62  ;;  %vm21774_vm13 = vcmp.lt.f32.partialorder %v21770_v14, %v21456_v2 }
 0x280   : > { %v13542_v28 = vsel %vm10109_vm6, 1.0, %v21204_v50  ;;  %v11683_v39 = vadd.f32 %v13541_v49, %v11682_v17  ;;  %vm9602_vm11 = vmand %vm21771_vm8, %vm21552_vm9  ;;  %v21781_v49 = vld [vmem:[#allocation9_spill] sm:$0xff]  ;;  %vm8436_vm9 = vcmp.lt.f32.partialorder %v18795_v6, %v21605_v29 }
 0x281   : > { %v11720_v19 = vadd.f32 %v13542_v28, %v11719_v11  ;;  %vm19202_vm6 = vmor %vm21774_vm13, %vm9602_vm11  ;;  %v21779_v11 = vld [vmem:[#allocation32_spill] sm:$0xff]  ;;  %vm21782_vm11 = vcmp.eq.f32.partialorder %v21781_v49, %v21456_v2  ;;  %vm21783_vm14 = vcmp.lt.f32.partialorder %v21781_v49, %v21456_v2  ;;  %v19228_v14 = vpop.permute.xlu1 %7732 }
 0x282   : > { %vm10115_vm7 = vmor %vm21778_vm3, %vm21777_vm0  ;;  %v11684_v36 = vadd.f32 %v13543_v0, %v11683_v39  ;;  %vm21780_vm8 = vnez %v21779_v11  ;;  %21784 = vst [vmem:[#allocation23_spill] sm:$0xff] %v19228_v14  ;;  %vm21785_vm0 = vcmp.eq.f32.partialorder %v21781_v49, %v21457_v15  ;;  %vm21786_vm3 = vcmp.lt.f32.partialorder %v21781_v49, %v21457_v15 }
 0x283   : > { %vm9600_vm13 = vmand %vm21782_vm11, %vm21780_vm8  ;;  %v11721_v28 = vadd.f32 %v13544_v7, %v11720_v19  ;;  %v19241_v7 = vpop.permute.xlu0 %7862  ;;  %v13548_v39 = vsel %vm10115_vm7, 1.0, %v21204_v50  ;;  %v13547_v49 = vsel %vm19202_vm6, 1.0, %v21204_v50  ;;  %vm21796_vm6 = vcmp.lt.f32.partialorder %v21790_v34, %v21457_v15 }
 0x284   : > { %vm10112_vm5 = vmor %vm21783_vm14, %vm9600_vm13  ;;  %21787 = vst [vmem:[#allocation31_spill] sm:$0xff] %v19241_v7  ;;  %vm21789_vm13 = vnez %v21788_v27  ;;  %v21806_v7 = vld [vmem:[#allocation29_spill] sm:$0xff] }
 0x285   : > { %vm10113_vm11 = vmor %vm21786_vm3, %vm21785_vm0  ;;  %v13545_v19 = vsel %vm10112_vm5, 1.0, %v21204_v50  ;;  %vm21791_vm0 = vcmp.eq.f32.partialorder %v21790_v34, %v21456_v2  ;;  %vm21792_vm5 = vcmp.lt.f32.partialorder %v21790_v34, %v21456_v2 }
 0x286   : > { %v13546_v0 = vsel %vm10113_vm11, 1.0, %v21204_v50  ;;  %v11685_v62 = vadd.f32 %v13545_v19, %v11684_v36  ;;  %vm9606_vm3 = vmand %vm21791_vm0, %vm21789_vm13  ;;  %vm21795_vm0 = vcmp.eq.f32.partialorder %v21790_v34, %v21457_v15 }
 0x287   : > { %v11722_v40 = vadd.f32 %v13546_v0, %v11721_v28  ;;  %vm19256_vm1 = vmor %vm21792_vm5, %vm9606_vm3  ;;  %v21798_v28 = vld [vmem:[#allocation51_spill] sm:$0xff]  ;;  %v19275_v0 = vpop.permute.xlu1 %7736  ;;  %v19277_v27 = vpop.permute.xlu0 %7866 }
 0x288   : > { %vm10119_vm14 = vmor %vm21796_vm6, %vm21795_vm0  ;;  %v11686_v17 = vadd.f32 %v13547_v49, %v11685_v62  ;;  %vm21799_vm3 = vcmp.eq.f32.partialorder %v21798_v28, %v21456_v2  ;;  %21800 = vst [vmem:[#allocation8_spill] sm:$0xff] %v19275_v0  ;;  %vm21802_vm7 = vcmp.lt.f32.partialorder %v21798_v28, %v21456_v2  ;;  %vm21803_vm6 = vcmp.eq.f32.partialorder %v21798_v28, %v21457_v15  ;;  %v21814_v49 = vld [vmem:[#allocation52_spill] sm:$0xff] }
 0x289   : > { %vm9604_vm5 = vmand %vm21799_vm3, %vm21107_vm4  ;;  %v11723_v19 = vadd.f32 %v13548_v39, %v11722_v40  ;;  %21801 = vst [vmem:[#allocation32_spill] sm:$0xff] %v19277_v27  ;;  %vm21804_vm3 = vcmp.lt.f32.partialorder %v21798_v28, %v21457_v15  ;;  %v13552_v40 = vsel %vm10119_vm14, 1.0, %v21204_v50  ;;  %v13551_v28 = vsel %vm19256_vm1, 1.0, %v21204_v50 }
 0x28a   : > { %vm10116_vm11 = vmor %vm21802_vm7, %vm9604_vm5  ;;  %vm21807_vm5 = vcmp.eq.f32.partialorder %v21806_v7, %v21457_v15 }
 0x28b   : > { %vm10117_vm13 = vmor %vm21804_vm3, %vm21803_vm6  ;;  %v13549_v62 = vsel %vm10116_vm11, 1.0, %v21204_v50  ;;  %vm21808_vm11 = vcmp.lt.f32.partialorder %v21806_v7, %v21457_v15  ;;  %v19314_v36 = vpop.permute.xlu1 %7740 }
 0x28c   : > { %v13550_v34 = vsel %vm10117_vm13, 1.0, %v21204_v50  ;;  %v11687_v39 = vadd.f32 %v13549_v62, %v11686_v17  ;;  %vm9611_vm10 = vmand %vm21807_vm5, %vm21108_vm15  ;;  %v19316_v17 = vpop.permute.xlu0 %7870  ;;  %v21812_v62 = vld [vmem:[#allocation36_spill] sm:$0xff]  ;;  %vm21815_vm13 = vcmp.eq.f32.partialorder %v21814_v49, %v21457_v15 }
 0x28d   : > { %v11724_v0 = vadd.f32 %v13550_v34, %v11723_v19  ;;  %vm19310_vm6 = vmor %vm21808_vm11, %vm9611_vm10  ;;  %21811 = vst [vmem:[#allocation9_spill] sm:$0xff] %v19316_v17  ;;  %vm21813_vm14 = vnez %v21812_v62  ;;  %vm21816_vm10 = vcmp.lt.f32.partialorder %v21814_v49, %v21457_v15  ;;  %vm21817_vm11 = vcmp.lt.f32.partialorder %v21814_v49, %v21456_v2 }
 0x28e   : > { %vm9609_vm3 = vmand %vm21815_vm13, %vm21813_vm14  ;;  %v11688_v14 = vadd.f32 %v13551_v28, %v11687_v39  ;;  %v13553_v19 = vsel %vm21817_vm11, 1.0, %v21204_v50  ;;  %vm21818_vm13 = vnez %v21383_v42  ;;  %v21819_v39 = vld [vmem:[#allocation30_spill] sm:$0xff]  ;;  %vm21821_vm11 = vcmp.lt.f32.partialorder %v21806_v7, %v21456_v2 }
 0x28f   : > { %vm10121_vm5 = vmor %vm21816_vm10, %vm9609_vm3  ;;  %v11725_v34 = vadd.f32 %v13552_v40, %v11724_v0  ;;  %vm21820_vm1 = vcmp.eq.f32.partialorder %v21819_v39, %v21457_v15  ;;  %v13555_v0 = vsel %vm21821_vm11, 1.0, %v21204_v50  ;;  %v19355_v28 = vpop.permute.xlu1 %7744  ;;  %v21825_v42 = vld [vmem:[#allocation38_spill] sm:$0xff] }
 0x290   : > { %v13554_v62 = vsel %vm10121_vm5, 1.0, %v21204_v50  ;;  %v11689_v41 = vadd.f32 %v13553_v19, %v11688_v14  ;;  %vm9615_vm7 = vmand %vm21820_vm1, %vm21818_vm13  ;;  %vm21822_vm5 = vcmp.lt.f32.partialorder %v21819_v39, %v21457_v15  ;;  %v19357_v14 = vpop.permute.xlu0 %7874  ;;  %v13556_v19 = vsel %vm19310_vm6, 1.0, %v21204_v50  ;;  %v21827_v7 = vld [vmem:[#allocation26_spill] sm:$0xff] }
 0x291   : > { %v11726_v40 = vadd.f32 %v13554_v62, %v11725_v34  ;;  %vm19351_vm4 = vmor %vm21822_vm5, %vm9615_vm7  ;;  %vm21826_vm1 = vnez %v21825_v42  ;;  %vm21828_vm11 = vcmp.eq.f32.partialorder %v21827_v7, %v21457_v15  ;;  %vm21829_vm5 = vcmp.lt.f32.partialorder %v21827_v7, %v21457_v15 }
 0x292   : > { %vm9613_vm3 = vmand %vm21828_vm11, %vm21826_vm1  ;;  %v11690_v62 = vadd.f32 %v13555_v0, %v11689_v41  ;;  %vm21830_vm0 = vcmp.lt.f32.partialorder %v21827_v7, %v21456_v2  ;;  %vm21831_vm11 = vnez %v20970_v45  ;;  %v21832_v41 = vld [vmem:[#allocation53_spill] sm:$0xff] }
 0x293   : > { %vm10125_vm10 = vmor %vm21829_vm5, %vm9613_vm3  ;;  %v13557_v27 = vsel %vm21830_vm0, 1.0, %v21204_v50  ;;  %v11727_v34 = vadd.f32 %v13556_v19, %v11726_v40  ;;  %vm21833_vm7 = vcmp.eq.f32.partialorder %v21832_v41, %v21457_v15  ;;  %vm21834_vm0 = vcmp.lt.f32.partialorder %v21819_v39, %v21456_v2  ;;  %v19399_v7 = vpop.permute.xlu1 %7748  ;;  %v21839_v39 = vld [vmem:[#allocation54_spill] sm:$0xff] }
 0x294   : > { %v13558_v42 = vsel %vm10125_vm10, 1.0, %v21204_v50  ;;  %v11691_v17 = vadd.f32 %v13557_v27, %v11690_v62  ;;  %vm9619_vm13 = vmand %vm21833_vm7, %vm21831_vm11  ;;  %v13559_v0 = vsel %vm21834_vm0, 1.0, %v21204_v50  ;;  %vm21835_vm10 = vcmp.lt.f32.partialorder %v21832_v41, %v21457_v15  ;;  %v19401_v62 = vpop.permute.xlu0 %7878 }
 0x295   : > { %v11728_v40 = vadd.f32 %v13558_v42, %v11727_v34  ;;  %vm19395_vm6 = vmor %vm21835_vm10, %vm9619_vm13  ;;  %v13560_v27 = vsel %vm19351_vm4, 1.0, %v21204_v50  ;;  %vm21838_vm7 = vnez %v21623_v57  ;;  %vm21840_vm0 = vcmp.eq.f32.partialorder %v21839_v39, %v21457_v15 }
 0x296   : > { %vm9617_vm3 = vmand %vm21840_vm0, %vm21838_vm7  ;;  %v11692_v42 = vadd.f32 %v13559_v0, %v11691_v17  ;;  %vm21841_vm10 = vcmp.lt.f32.partialorder %v21839_v39, %v21457_v15  ;;  %vm21842_vm11 = vcmp.lt.f32.partialorder %v21839_v39, %v21456_v2  ;;  %vm21843_vm0 = vnez %v20982_v32  ;;  %v21844_v17 = vld [vmem:[#allocation55_spill] sm:$0xff] }
 0x297   : > { %vm10129_vm5 = vmor %vm21841_vm10, %vm9617_vm3  ;;  %v13561_v49 = vsel %vm21842_vm11, 1.0, %v21204_v50  ;;  %v11729_v34 = vadd.f32 %v13560_v27, %v11728_v40  ;;  %vm21845_vm13 = vcmp.eq.f32.partialorder %v21844_v17, %v21457_v15  ;;  %vm21846_vm11 = vcmp.lt.f32.partialorder %v21832_v41, %v21456_v2  ;;  %v19443_v39 = vpop.permute.xlu1 %7752  ;;  %v21851_v41 = vld [vmem:[#allocation56_spill] sm:$0xff] }
 0x298   : > { %v13562_v45 = vsel %vm10129_vm5, 1.0, %v21204_v50  ;;  %v11693_v57 = vadd.f32 %v13561_v49, %v11692_v42  ;;  %vm9623_vm7 = vmand %vm21845_vm13, %vm21843_vm0  ;;  %v13563_v0 = vsel %vm21846_vm11, 1.0, %v21204_v50  ;;  %vm21847_vm5 = vcmp.lt.f32.partialorder %v21844_v17, %v21457_v15  ;;  %v19445_v42 = vpop.permute.xlu0 %7882 }
 0x299   : > { %v11730_v40 = vadd.f32 %v13562_v45, %v11729_v34  ;;  %vm19439_vm4 = vmor %vm21847_vm5, %vm9623_vm7  ;;  %v13564_v49 = vsel %vm19395_vm6, 1.0, %v21204_v50  ;;  %vm21850_vm13 = vnez %v20987_v43  ;;  %vm21852_vm11 = vcmp.eq.f32.partialorder %v21851_v41, %v21457_v15 }
 0x29a   : > { %vm9621_vm3 = vmand %vm21852_vm11, %vm21850_vm13  ;;  %v11694_v45 = vadd.f32 %v13563_v0, %v11693_v57  ;;  %vm21853_vm5 = vcmp.lt.f32.partialorder %v21851_v41, %v21457_v15  ;;  %vm21854_vm0 = vcmp.lt.f32.partialorder %v21851_v41, %v21456_v2  ;;  %vm21855_vm11 = vnez %v21636_v1  ;;  %v21856_v57 = vld [vmem:[#allocation25_spill] sm:$0xff] }
 0x29b   : > { %vm10133_vm10 = vmor %vm21853_vm5, %vm9621_vm3  ;;  %v13565_v19 = vsel %vm21854_vm0, 1.0, %v21204_v50  ;;  %v11731_v34 = vadd.f32 %v13564_v49, %v11730_v40  ;;  %vm21857_vm7 = vcmp.eq.f32.partialorder %v21856_v57, %v21457_v15  ;;  %vm21858_vm0 = vcmp.lt.f32.partialorder %v21844_v17, %v21456_v2  ;;  %v19487_v41 = vpop.permute.xlu1 %7756  ;;  %v21863_v17 = vld [vmem:[#allocation57_spill] sm:$0xff] }
 0x29c   : > { %v13566_v32 = vsel %vm10133_vm10, 1.0, %v21204_v50  ;;  %v11695_v43 = vadd.f32 %v13565_v19, %v11694_v45  ;;  %vm9627_vm13 = vmand %vm21857_vm7, %vm21855_vm11  ;;  %v13567_v0 = vsel %vm21858_vm0, 1.0, %v21204_v50  ;;  %vm21859_vm10 = vcmp.lt.f32.partialorder %v21856_v57, %v21457_v15  ;;  %v19489_v45 = vpop.permute.xlu0 %7886 }
 0x29d   : > { %v11732_v40 = vadd.f32 %v13566_v32, %v11731_v34  ;;  %vm19483_vm6 = vmor %vm21859_vm10, %vm9627_vm13  ;;  %v13568_v19 = vsel %vm19439_vm4, 1.0, %v21204_v50  ;;  %vm21862_vm7 = vnez %v21642_v51  ;;  %vm21864_vm0 = vcmp.eq.f32.partialorder %v21863_v17, %v21457_v15 }
 0x29e   : > { %vm9625_vm3 = vmand %vm21864_vm0, %vm21862_vm7  ;;  %v11696_v32 = vadd.f32 %v13567_v0, %v11695_v43  ;;  %vm21865_vm10 = vcmp.lt.f32.partialorder %v21863_v17, %v21457_v15  ;;  %vm21866_vm11 = vcmp.lt.f32.partialorder %v21863_v17, %v21456_v2  ;;  %vm21867_vm0 = vnez %v21685_v63  ;;  %v21868_v43 = vld [vmem:[#allocation58_spill] sm:$0xff] }
 0x29f   : > { %vm10137_vm5 = vmor %vm21865_vm10, %vm9625_vm3  ;;  %v13569_v27 = vsel %vm21866_vm11, 1.0, %v21204_v50  ;;  %v11733_v34 = vadd.f32 %v13568_v19, %v11732_v40  ;;  %vm21869_vm13 = vcmp.eq.f32.partialorder %v21868_v43, %v21605_v29  ;;  %vm21870_vm11 = vcmp.lt.f32.partialorder %v21856_v57, %v21456_v2  ;;  %v19531_v17 = vpop.permute.xlu1 %7760 }
 0x2a0   : > { %v13570_v1 = vsel %vm10137_vm5, 1.0, %v21204_v50  ;;  %v11697_v51 = vadd.f32 %v13569_v27, %v11696_v32  ;;  %vm9640_vm7 = vmand %vm21869_vm13, %vm21867_vm0  ;;  %v13571_v0 = vsel %vm21870_vm11, 1.0, %v21204_v50  ;;  %vm21871_vm5 = vcmp.lt.f32.partialorder %v21868_v43, %v21605_v29  ;;  %v19533_v32 = vpop.permute.xlu0 %7890 }
 0x2a1   : > { %v11734_v40 = vadd.f32 %v13570_v1, %v11733_v34  ;;  %vm19527_vm4 = vmor %vm21871_vm5, %vm9640_vm7  ;;  %v13572_v27 = vsel %vm19483_vm6, 1.0, %v21204_v50  ;;  %vm21874_vm13 = vcmp.eq.f32.partialorder %v21868_v43, %v21606_v18  ;;  %vm21875_vm11 = vcmp.lt.f32.partialorder %v21868_v43, %v21606_v18  ;;  %v21879_v34 = vld [vmem:[#allocation16_spill] sm:$0xff] }
 0x2a2   : > { %vm19544_vm3 = vmor %vm21875_vm11, %vm21874_vm13  ;;  %v11698_v57 = vadd.f32 %v13571_v0, %v11697_v51  ;;  %vm21878_vm5 = vnez %v21653_v59  ;;  %vm21880_vm10 = vcmp.eq.f32.partialorder %v21879_v34, %v21457_v15  ;;  %vm21881_vm1 = vcmp.lt.f32.partialorder %v21879_v34, %v21456_v2 }
 0x2a3   : > { %vm9629_vm6 = vmand %vm21880_vm10, %vm21878_vm5  ;;  %v13573_v49 = vsel %vm21881_vm1, 1.0, %v21204_v50  ;;  %v11735_v43 = vadd.f32 %v13572_v27, %v11734_v40  ;;  %vm21882_vm11 = vcmp.lt.f32.partialorder %v21879_v34, %v21457_v15  ;;  %vm21883_vm1 = vcmp.eq.f32.partialorder %v18530_v26, %v21616_v53  ;;  %v19574_v40 = vpop.permute.xlu1 %7764 }
 0x2a4   : > { %vm10141_vm15 = vmor %vm21882_vm11, %vm9629_vm6  ;;  %v11699_v51 = vadd.f32 %v13573_v49, %v11698_v57  ;;  %v19576_v27 = vpop.permute.xlu0 %7894  ;;  %vm21885_vm6 = vcmp.lt.f32.partialorder %v18530_v26, %v21616_v53  ;;  %vm21888_vm7 = vcmp.eq.f32.partialorder %v18530_v26, %v21617_v37 }
 0x2a5   : > { %v13574_v0 = vsel %vm10141_vm15, 1.0, %v21204_v50  ;;  %vm9704_vm5 = vmand %vm21883_vm1, %vm21867_vm0  ;;  %vm21889_vm0 = vcmp.lt.f32.partialorder %v18530_v26, %v21617_v37  ;;  %vm21894_vm15 = vcmp.lt.f32.partialorder %v18541_v60, %v21605_v29 }
 0x2a6   : > { %v19578_v34 = vadd.f32 %v13574_v0, %v11735_v43  ;;  %vm19583_vm11 = vmor %vm21885_vm6, %vm9704_vm5  ;;  %vm21892_vm5 = vnez %v21459_v16  ;;  %vm21893_vm6 = vcmp.eq.f32.partialorder %v18541_v60, %v21605_v29  ;;  %v13585_v43 = vsel %vm19527_vm4, 1.0, %v21204_v50 }
 0x2a7   : > { %vm19595_vm1 = vmor %vm21889_vm0, %vm21888_vm7  ;;  %v19609_v49 = vpop.permute.xlu1 %7768  ;;  %vm21895_vm7 = vcmp.eq.f32.partialorder %v18541_v60, %v21606_v18  ;;  %vm21896_vm0 = vcmp.lt.f32.partialorder %v18541_v60, %v21606_v18  ;;  %vm21898_vm4 = vcmp.eq.f32.partialorder %v18586_v10, %v21605_v29 }
 0x2a8   : > { %21884 = vst [vmem:[#allocation24_spill] sm:$0xff] %v19578_v34  ;;  %vm9642_vm13 = vmand %vm21893_vm6, %vm21892_vm5  ;;  %v19611_v26 = vpop.permute.xlu0 %7898  ;;  %v13586_v34 = vsel %vm19544_vm3, 1.0, %v21204_v50  ;;  %vm21899_vm6 = vcmp.lt.f32.partialorder %v18586_v10, %v21605_v29  ;;  %vm21901_vm3 = vcmp.lt.f32.partialorder %v18586_v10, %v21606_v18 }
 0x2a9   : > { %vm10154_vm14 = vmor %vm21894_vm15, %vm9642_vm13  ;;  %vm21897_vm13 = vnez %v21704_v30 }
 0x2aa   : > { %vm10155_vm10 = vmor %vm21896_vm0, %vm21895_vm7  ;;  %v13587_v0 = vsel %vm10154_vm14, 1.0, %v21204_v50  ;;  %vm21900_vm14 = vcmp.eq.f32.partialorder %v18586_v10, %v21606_v18  ;;  %v13649_v10 = vsel %vm19583_vm11, 1.0, %v21204_v50  ;;  %vm21908_vm11 = vnez %v21693_v55 }
 0x2ab   : > { %v13588_v15 = vsel %vm10155_vm10, 1.0, %v21204_v50  ;;  %v11748_v59 = vadd.f32 %v13587_v0, %v13585_v43  ;;  %vm9644_vm15 = vmand %vm21898_vm4, %vm21897_vm13  ;;  %v19642_v1 = vpop.permute.xlu1 %7902  ;;  %vm21904_vm10 = vcmp.eq.f32.partialorder %v18597_v24, %v21616_v53 }
 0x2ac   : > { %v11785_v19 = vadd.f32 %v13588_v15, %v13586_v34  ;;  %vm10156_vm7 = vmor %vm21899_vm6, %vm9644_vm15  ;;  %21902 = vst [vmem:[#allocation51_spill] sm:$0xff] %v19642_v1  ;;  %v19644_v43 = vpop.permute.xlu0 %7638  ;;  %vm21905_vm15 = vcmp.lt.f32.partialorder %v18597_v24, %v21616_v53 }
 0x2ad   : > { %vm10157_vm0 = vmor %vm21901_vm3, %vm21900_vm14  ;;  %v13589_v60 = vsel %vm10156_vm7, 1.0, %v21204_v50  ;;  %21903 = vst [vmem:[#allocation29_spill] sm:$0xff] %v19644_v43  ;;  %vm8414_vm7 = vcmp.lt.f32.partialorder %v19644_v43, %v21456_v2  ;;  %vm21906_vm14 = vcmp.eq.f32.partialorder %v18597_v24, %v21617_v37  ;;  %vm21907_vm3 = vcmp.lt.f32.partialorder %v18597_v24, %v21617_v37 }
 0x2ae   : > { %v13590_v0 = vsel %vm10157_vm0, 1.0, %v21204_v50  ;;  %v11749_v15 = vadd.f32 %v13589_v60, %v11748_v59  ;;  %vm9706_vm4 = vmand %vm21904_vm10, %vm21892_vm5  ;;  %v13575_v59 = vsel %vm8414_vm7, 1.0, %v21204_v50  ;;  %vm21909_vm5 = vcmp.eq.f32.partialorder %v18640_v48, %v21605_v29 }
 0x2af   : > { %v11786_v34 = vadd.f32 %v13590_v0, %v11785_v19  ;;  %vm10218_vm6 = vmor %vm21905_vm15, %vm9706_vm4  ;;  %v13650_v19 = vsel %vm19595_vm1, 1.0, %v21204_v50  ;;  %v11700_v57 = vadd.f32 %v13575_v59, %v11699_v51  ;;  %v19677_v24 = vpop.permute.xlu1 %7642  ;;  %vm21910_vm4 = vcmp.lt.f32.partialorder %v18640_v48, %v21605_v29 }
 0x2b0   : > { %vm10219_vm0 = vmor %vm21907_vm3, %vm21906_vm14  ;;  %v13651_v16 = vsel %vm10218_vm6, 1.0, %v21204_v50  ;;  %v19679_v43 = vpop.permute.xlu0 %7772  ;;  %vm8416_vm1 = vcmp.lt.f32.partialorder %v19677_v24, %v21456_v2  ;;  %vm21911_vm6 = vcmp.eq.f32.partialorder %v18640_v48, %v21606_v18  ;;  %vm21912_vm7 = vcmp.lt.f32.partialorder %v18640_v48, %v21606_v18 }
 0x2b1   : > { %v13652_v60 = vsel %vm10219_vm0, 1.0, %v21204_v50  ;;  %v11822_v0 = vadd.f32 %v13651_v16, %v13649_v10  ;;  %vm9646_vm10 = vmand %vm21909_vm5, %vm21908_vm11  ;;  %v13577_v63 = vsel %vm8416_vm1, 1.0, %v21204_v50  ;;  %vm21913_vm3 = vcmp.eq.f32.partialorder %v18651_v44, %v21616_v53 }
 0x2b2   : > { %v11859_v1 = vadd.f32 %v13652_v60, %v13650_v19  ;;  %vm10158_vm15 = vmor %vm21910_vm4, %vm9646_vm10  ;;  %vm8944_vm5 = vcmp.eq.f32.partialorder %v18692_v47, %v21605_v29  ;;  %v11701_v59 = vadd.f32 %v13577_v63, %v11700_v57  ;;  %vm21914_vm10 = vcmp.lt.f32.partialorder %v18651_v44, %v21616_v53 }
 0x2b3   : > { %vm10159_vm14 = vmor %vm21912_vm7, %vm21911_vm6  ;;  %v13591_v51 = vsel %vm10158_vm15, 1.0, %v21204_v50  ;;  %v19705_v48 = vpop.permute.xlu1 %7776  ;;  %vm21915_vm15 = vcmp.eq.f32.partialorder %v18651_v44, %v21617_v37  ;;  %vm21916_vm1 = vcmp.lt.f32.partialorder %v18651_v44, %v21617_v37  ;;  %vm21917_vm6 = vnez %v20894_v13 }
 0x2b4   : > { %v13592_v10 = vsel %vm10159_vm14, 1.0, %v21204_v50  ;;  %v11750_v16 = vadd.f32 %v13591_v51, %v11749_v15  ;;  %vm9708_vm0 = vmand %vm21913_vm3, %vm21897_vm13  ;;  %v19707_v60 = vpop.permute.xlu0 %7906  ;;  %vm9006_vm14 = vcmp.eq.f32.partialorder %v18703_v22, %v21616_v53  ;;  %vm21918_vm3 = vcmp.lt.f32.partialorder %v18692_v47, %v21605_v29 }
 0x2b5   : > { %v11787_v19 = vadd.f32 %v13592_v10, %v11786_v34  ;;  %vm10220_vm4 = vmor %vm21914_vm10, %vm9708_vm0  ;;  %vm21919_vm10 = vcmp.eq.f32.partialorder %v18692_v47, %v21606_v18 }
 0x2b6   : > { %vm10221_vm13 = vmor %vm21916_vm1, %vm21915_vm15  ;;  %v13653_v30 = vsel %vm10220_vm4, 1.0, %v21204_v50  ;;  %vm21920_vm4 = vcmp.lt.f32.partialorder %v18692_v47, %v21606_v18  ;;  %vm8946_vm1 = vcmp.eq.f32.partialorder %v18745_v61, %v21605_v29 }
 0x2b7   : > { %v13654_v15 = vsel %vm10221_vm13, 1.0, %v21204_v50  ;;  %v11823_v34 = vadd.f32 %v13653_v30, %v11822_v0  ;;  %vm9648_vm7 = vmand %vm8944_vm5, %vm21917_vm6  ;;  %v19731_v0 = vpop.permute.xlu1 %7910  ;;  %vm21921_vm13 = vcmp.lt.f32.partialorder %v18703_v22, %v21616_v53 }
 0x2b8   : > { %v11860_v57 = vadd.f32 %v13654_v15, %v11859_v1  ;;  %vm10160_vm0 = vmor %vm21918_vm3, %vm9648_vm7  ;;  %v19733_v51 = vpop.permute.xlu0 %7646  ;;  %vm8434_vm3 = vcmp.lt.f32.partialorder %v18745_v61, %v21605_v29 }
 0x2b9   : > { %vm10161_vm15 = vmor %vm21920_vm4, %vm21919_vm10  ;;  %v13593_v44 = vsel %vm10160_vm0, 1.0, %v21204_v50  ;;  %vm8418_vm0 = vcmp.lt.f32.partialorder %v19733_v51, %v21456_v2  ;;  %vm21922_vm10 = vcmp.eq.f32.partialorder %v18703_v22, %v21617_v37  ;;  %vm21924_vm4 = vnez %v21489_v8 }
 0x2ba   : > { %v13594_v63 = vsel %vm10161_vm15, 1.0, %v21204_v50  ;;  %v11751_v1 = vadd.f32 %v13593_v44, %v11750_v16  ;;  %vm9710_vm5 = vmand %vm9006_vm14, %vm21908_vm11  ;;  %vm21923_vm11 = vcmp.lt.f32.partialorder %v18703_v22, %v21617_v37  ;;  %v13579_v47 = vsel %vm8418_vm0, 1.0, %v21204_v50 }
 0x2bb   : > { %v11788_v10 = vadd.f32 %v13594_v63, %v11787_v19  ;;  %vm10222_vm7 = vmor %vm21921_vm13, %vm9710_vm5  ;;  %vm9008_vm5 = vcmp.eq.f32.partialorder %v18756_v31, %v21616_v53  ;;  %v11702_v30 = vadd.f32 %v13579_v47, %v11701_v59  ;;  %v19760_v15 = vpop.permute.xlu1 %7650 }
 0x2bc   : > { %vm10223_vm14 = vmor %vm21923_vm11, %vm21922_vm10  ;;  %v13655_v55 = vsel %vm10222_vm7, 1.0, %v21204_v50  ;;  %v19762_v44 = vpop.permute.xlu0 %7780  ;;  %vm8496_vm7 = vcmp.lt.f32.partialorder %v18756_v31, %v21616_v53  ;;  %vm8420_vm0 = vcmp.lt.f32.partialorder %v19760_v15, %v21456_v2  ;;  %vm21925_vm10 = vcmp.eq.f32.partialorder %v18745_v61, %v21606_v18 }
 0x2bd   : > { %v13656_v16 = vsel %vm10223_vm14, 1.0, %v21204_v50  ;;  %v11824_v19 = vadd.f32 %v13655_v55, %v11823_v34  ;;  %vm9650_vm15 = vmand %vm8946_vm1, %vm21924_vm4  ;;  %vm21926_vm1 = vcmp.lt.f32.partialorder %v18745_v61, %v21606_v18  ;;  %v13581_v34 = vsel %vm8420_vm0, 1.0, %v21204_v50 }
 0x2be   : > { %v11861_v22 = vadd.f32 %v13656_v16, %v11860_v57  ;;  %vm10162_vm13 = vmor %vm8434_vm3, %vm9650_vm15  ;;  %vm8948_vm14 = vcmp.eq.f32.partialorder %v18795_v6, %v21605_v29  ;;  %v11703_v55 = vadd.f32 %v13581_v34, %v11702_v30  ;;  %vm21928_vm0 = vcmp.lt.f32.partialorder %v18756_v31, %v21617_v37 }
 0x2bf   : > { %vm10163_vm11 = vmor %vm21926_vm1, %vm21925_vm10  ;;  %v13595_v59 = vsel %vm10162_vm13, 1.0, %v21204_v50  ;;  %vm21927_vm13 = vcmp.eq.f32.partialorder %v18756_v31, %v21617_v37  ;;  %vm8498_vm1 = vcmp.lt.f32.partialorder %v18803_v35, %v21616_v53 }
 0x2c0   : > { %v13596_v57 = vsel %vm10163_vm11, 1.0, %v21204_v50  ;;  %v11752_v63 = vadd.f32 %v13595_v59, %v11751_v1  ;;  %vm9712_vm3 = vmand %vm9008_vm5, %vm21917_vm6  ;;  %v19783_v61 = vpop.permute.xlu0 %7914  ;;  %vm9010_vm5 = vcmp.eq.f32.partialorder %v18803_v35, %v21616_v53  ;;  %vm21929_vm11 = vcmp.eq.f32.partialorder %v18795_v6, %v21606_v18 }
 0x2c1   : > { %v11789_v47 = vadd.f32 %v13596_v57, %v11788_v10  ;;  %vm10224_vm15 = vmor %vm8496_vm7, %vm9712_vm3  ;;  %vm21930_vm3 = vcmp.lt.f32.partialorder %v18795_v6, %v21606_v18 }
 0x2c2   : > { %vm10225_vm10 = vmor %vm21928_vm0, %vm21927_vm13  ;;  %v13657_v13 = vsel %vm10224_vm15, 1.0, %v21204_v50  ;;  %vm8438_vm0 = vcmp.lt.f32.partialorder %v18833_v58, %v21605_v29 }
 0x2c3   : > { %v13658_v1 = vsel %vm10225_vm10, 1.0, %v21204_v50  ;;  %v11825_v16 = vadd.f32 %v13657_v13, %v11824_v19  ;;  %vm9652_vm6 = vmand %vm8948_vm14, %vm21735_vm2  ;;  %vm8950_vm14 = vcmp.eq.f32.partialorder %v18833_v58, %v21605_v29 }
 0x2c4   : > { %v11862_v10 = vadd.f32 %v13658_v1, %v11861_v22  ;;  %vm10164_vm7 = vmor %vm8436_vm9, %vm9652_vm6  ;;  %v19806_v19 = vpop.permute.xlu0 %7654  ;;  %vm21931_vm6 = vcmp.eq.f32.partialorder %v18803_v35, %v21617_v37 }
 0x2c5   : > { %vm10165_vm15 = vmor %vm21930_vm3, %vm21929_vm11  ;;  %v13597_v31 = vsel %vm10164_vm7, 1.0, %v21204_v50  ;;  %vm8422_vm10 = vcmp.lt.f32.partialorder %v19806_v19, %v21456_v2  ;;  %vm21932_vm7 = vcmp.lt.f32.partialorder %v18803_v35, %v21617_v37 }
 0x2c6   : > { %v13598_v30 = vsel %vm10165_vm15, 1.0, %v21204_v50  ;;  %v11753_v59 = vadd.f32 %v13597_v31, %v11752_v63  ;;  %vm9714_vm9 = vmand %vm9010_vm5, %vm21924_vm4  ;;  %v13583_v6 = vsel %vm8422_vm10, 1.0, %v21204_v50  ;;  %vm21933_vm4 = vnez %v21205_v9  ;;  %v21934_v63 = vld [vmem:[#allocation17_spill] sm:$0xff]  ;;  %v21947_v9 = vld [vmem:[#allocation15_spill] sm:$0xff] }
 0x2c7   : > { %v11790_v22 = vadd.f32 %v13598_v30, %v11789_v47  ;;  %vm10226_vm13 = vmor %vm8498_vm1, %vm9714_vm9  ;;  %vm9012_vm1 = vcmp.eq.f32.partialorder %v21934_v63, %v21616_v53  ;;  %v11704_v2 = vadd.f32 %v13583_v6, %v11703_v55  ;;  %vm8500_vm15 = vcmp.lt.f32.partialorder %v21934_v63, %v21616_v53  ;;  %v21937_v55 = vld [vmem:[#allocation18_spill] sm:$0xff] }
 0x2c8   : > { %vm10227_vm11 = vmor %vm21932_vm7, %vm21931_vm6  ;;  %v13659_v8 = vsel %vm10226_vm13, 1.0, %v21204_v50  ;;  %vm21935_vm9 = vcmp.eq.f32.partialorder %v18833_v58, %v21606_v18  ;;  %vm21936_vm13 = vcmp.lt.f32.partialorder %v18833_v58, %v21606_v18  ;;  %vm8440_vm7 = vcmp.lt.f32.partialorder %v21937_v55, %v21605_v29 }
 0x2c9   : > { %v13660_v34 = vsel %vm10227_vm11, 1.0, %v21204_v50  ;;  %v11826_v57 = vadd.f32 %v13659_v8, %v11825_v16  ;;  %vm9654_vm5 = vmand %vm8950_vm14, %vm21933_vm4  ;;  %v11705_v13 = vrot.slane %v11704_v2, 4  ;;  %vm21938_vm11 = vcmp.eq.f32.partialorder %v21934_v63, %v21617_v37 }
 0x2ca   : > { %v11863_v47 = vadd.f32 %v13660_v34, %v11862_v10  ;;  %vm10166_vm3 = vmor %vm8438_vm0, %vm9654_vm5  ;;  %vm8952_vm0 = vcmp.eq.f32.partialorder %v21937_v55, %v21605_v29  ;;  %vm21939_vm5 = vcmp.lt.f32.partialorder %v21934_v63, %v21617_v37 }
 0x2cb   : > { %vm10167_vm10 = vmor %vm21936_vm13, %vm21935_vm9  ;;  %v13599_v35 = vsel %vm10166_vm3, 1.0, %v21204_v50  ;;  %v11706_v31 = vadd.f32 %v11705_v13, %v11704_v2  ;;  %v21944_v2 = vld [vmem:[#allocation14_spill] sm:$0xff] }
 0x2cc   : > { %v13600_v1 = vsel %vm10167_vm10, 1.0, %v21204_v50  ;;  %v11754_v16 = vadd.f32 %v13599_v35, %v11753_v59  ;;  %vm9716_vm14 = vmand %vm9012_vm1, %vm21735_vm2  ;;  %vm21940_vm2 = vnez %v21354_v38  ;;  %v21941_v59 = vld [vmem:[#allocation19_spill] sm:$0xff]  ;;  %vm21942_vm10 = vcmp.eq.f32.partialorder %v21937_v55, %v21606_v18 }
 0x2cd   : > { %v11791_v10 = vadd.f32 %v13600_v1, %v11790_v22  ;;  %vm10228_vm6 = vmor %vm8500_vm15, %vm9716_vm14  ;;  %vm9014_vm15 = vcmp.eq.f32.partialorder %v21941_v59, %v21616_v53  ;;  %v11707_v22 = vrot.slane %v11706_v31, 2  ;;  %vm8502_vm13 = vcmp.lt.f32.partialorder %v21941_v59, %v21616_v53 }
 0x2ce   : > { %vm10229_vm3 = vmor %vm21939_vm5, %vm21938_vm11  ;;  %v13661_v58 = vsel %vm10228_vm6, 1.0, %v21204_v50  ;;  %vm21943_vm14 = vcmp.lt.f32.partialorder %v21937_v55, %v21606_v18  ;;  %vm8442_vm5 = vcmp.lt.f32.partialorder %v21944_v2, %v21605_v29 }
 0x2cf   : > { %v13662_v56 = vsel %vm10229_vm3, 1.0, %v21204_v50  ;;  %v11827_v30 = vadd.f32 %v13661_v58, %v11826_v57  ;;  %vm9656_vm1 = vmand %vm8952_vm0, %vm21940_vm2  ;;  %v11708_v34 = vadd.f32 %v11707_v22, %v11706_v31  ;;  %vm21945_vm3 = vcmp.eq.f32.partialorder %v21941_v59, %v21617_v37 }
 0x2d0   : > { %v11864_v8 = vadd.f32 %v13662_v56, %v11863_v47  ;;  %vm10168_vm9 = vmor %vm8440_vm7, %vm9656_vm1  ;;  %vm8954_vm7 = vcmp.eq.f32.partialorder %v21944_v2, %v21605_v29  ;;  %vm21946_vm1 = vcmp.lt.f32.partialorder %v21941_v59, %v21617_v37  ;;  %v21951_v59 = vld [vmem:[#allocation21_spill] sm:$0xff] }
 0x2d1   : > { %vm10169_vm6 = vmor %vm21943_vm14, %vm21942_vm10  ;;  %v13601_v6 = vsel %vm10168_vm9, 1.0, %v21204_v50  ;;  %v11709_v35 = vrot.slane %v11708_v34, 1  ;;  %vm11936_vm10 = vcmask 1045509  }
 0x2d2   : > { %v13602_v57 = vsel %vm10169_vm6, 1.0, %v21204_v50  ;;  %v11755_v63 = vadd.f32 %v13601_v6, %v11754_v16  ;;  %vm9718_vm0 = vmand %vm9014_vm15, %vm21933_vm4  ;;  %vm9016_vm4 = vcmp.eq.f32.partialorder %v21947_v9, %v21616_v53  ;;  %vm21948_vm15 = vnez %v21348_v3 }
 0x2d3   : > { %v11792_v47 = vadd.f32 %v13602_v57, %v11791_v10  ;;  %vm10230_vm11 = vmor %vm8502_vm13, %vm9718_vm0  ;;  %v11710_v55 = vadd.f32 %v11709_v35, %v11708_v34  ;;  %vm8504_vm6 = vcmp.lt.f32.partialorder %v21947_v9, %v21616_v53  ;;  %vm21949_vm0 = vcmp.eq.f32.partialorder %v21944_v2, %v21606_v18 }
 0x2d4   : > { %vm10231_vm9 = vmor %vm21946_vm1, %vm21945_vm3  ;;  %v13663_v13 = vsel %vm10230_vm11, 1.0, %v21204_v50  ;;  %vm21950_vm11 = vcmp.lt.f32.partialorder %v21944_v2, %v21606_v18 }
 0x2d5   : > { %v13664_v1 = vsel %vm10231_vm9, 1.0, %v21204_v50  ;;  %v11828_v16 = vadd.f32 %v13663_v13, %v11827_v30  ;;  %vm9658_vm13 = vmand %vm8954_vm7, %vm21948_vm15  ;;  %v19897_v58 = vsel %vm11936_vm10, %v11710_v55, %v19063_v5  ;;  %vm8444_vm9 = vcmp.lt.f32.partialorder %v21951_v59, %v21605_v29 }
 0x2d6   : > { %v11865_v10 = vadd.f32 %v13664_v1, %v11864_v8  ;;  %vm10170_vm14 = vmor %vm8442_vm5, %vm9658_vm13  ;;  %vm8956_vm5 = vcmp.eq.f32.partialorder %v21951_v59, %v21605_v29  ;;  %vm21952_vm13 = vcmp.eq.f32.partialorder %v21947_v9, %v21617_v37 }
 0x2d7   : > { %vm10171_vm3 = vmor %vm21950_vm11, %vm21949_vm0  ;;  %v13603_v31 = vsel %vm10170_vm14, 1.0, %v21204_v50  ;;  %vm21953_vm14 = vcmp.lt.f32.partialorder %v21947_v9, %v21617_v37  ;;  %vm8506_vm11 = vcmp.lt.f32.partialorder %v18953_v23, %v21616_v53 }
 0x2d8   : > { %v13604_v56 = vsel %vm10171_vm3, 1.0, %v21204_v50  ;;  %v11756_v30 = vadd.f32 %v13603_v31, %v11755_v63  ;;  %vm9720_vm7 = vmand %vm9016_vm4, %vm21940_vm2  ;;  %vm9018_vm4 = vcmp.eq.f32.partialorder %v18953_v23, %v21616_v53  ;;  %vm21954_vm3 = vcmp.eq.f32.partialorder %v21951_v59, %v21606_v18 }
 0x2d9   : > { %v11793_v22 = vadd.f32 %v13604_v56, %v11792_v47  ;;  %vm10232_vm1 = vmor %vm8504_vm6, %vm9720_vm7  ;;  %vm21955_vm7 = vcmp.lt.f32.partialorder %v21951_v59, %v21606_v18 }
 0x2da   : > { %vm10233_vm0 = vmor %vm21953_vm14, %vm21952_vm13  ;;  %v13665_v5 = vsel %vm10232_vm1, 1.0, %v21204_v50  ;;  %vm8446_vm14 = vcmp.lt.f32.partialorder %v18986_v46, %v21605_v29 }
 0x2db   : > { %v13666_v38 = vsel %vm10233_vm0, 1.0, %v21204_v50  ;;  %v11829_v8 = vadd.f32 %v13665_v5, %v11828_v16  ;;  %vm9660_vm2 = vmand %vm8956_vm5, %vm21543_vm12  ;;  %vm21956_vm0 = vcmp.eq.f32.partialorder %v18953_v23, %v21617_v37 }
 0x2dc   : > { %v11866_v6 = vadd.f32 %v13666_v38, %v11865_v10  ;;  %vm10172_vm6 = vmor %vm8444_vm9, %vm9660_vm2  ;;  %vm8958_vm9 = vcmp.eq.f32.partialorder %v18986_v46, %v21605_v29  ;;  %vm21957_vm2 = vcmp.lt.f32.partialorder %v18953_v23, %v21617_v37 }
 0x2dd   : > { %vm10173_vm1 = vmor %vm21955_vm7, %vm21954_vm3  ;;  %v13605_v34 = vsel %vm10172_vm6, 1.0, %v21204_v50  ;;  %vm8508_vm7 = vcmp.lt.f32.partialorder %v18993_v20, %v21616_v53 }
 0x2de   : > { %v13606_v57 = vsel %vm10173_vm1, 1.0, %v21204_v50  ;;  %v11757_v63 = vadd.f32 %v13605_v34, %v11756_v30  ;;  %vm9722_vm5 = vmand %vm9018_vm4, %vm21948_vm15  ;;  %vm21958_vm15 = vnez %v21530_v4  ;;  %vm21959_vm1 = vcmp.eq.f32.partialorder %v18986_v46, %v21606_v18 }
 0x2df   : > { %v11794_v2 = vadd.f32 %v13606_v57, %v11793_v22  ;;  %vm10234_vm13 = vmor %vm8506_vm11, %vm9722_vm5  ;;  %vm9020_vm11 = vcmp.eq.f32.partialorder %v18993_v20, %v21616_v53  ;;  %vm21960_vm5 = vcmp.lt.f32.partialorder %v18986_v46, %v21606_v18  ;;  %v21973_v57 = vld [vmem:[#allocation34_spill] sm:$0xff] }
 0x2e0   : > { %vm10235_vm6 = vmor %vm21957_vm2, %vm21956_vm0  ;;  %v13667_v47 = vsel %vm10234_vm13, 1.0, %v21204_v50  ;;  %vm8448_vm2 = vcmp.lt.f32.partialorder %v19024_v52, %v21605_v29 }
 0x2e1   : > { %v13668_v3 = vsel %vm10235_vm6, 1.0, %v21204_v50  ;;  %v11830_v35 = vadd.f32 %v13667_v47, %v11829_v8  ;;  %vm9662_vm4 = vmand %vm8958_vm9, %vm21958_vm15  ;;  %vm21961_vm6 = vcmp.eq.f32.partialorder %v18993_v20, %v21617_v37  ;;  %v21970_v8 = vld [vmem:[#allocation22_spill] sm:$0xff] }
 0x2e2   : > { %v11867_v13 = vadd.f32 %v13668_v3, %v11866_v6  ;;  %vm10174_vm3 = vmor %vm8446_vm14, %vm9662_vm4  ;;  %vm8960_vm14 = vcmp.eq.f32.partialorder %v19024_v52, %v21605_v29  ;;  %vm21962_vm4 = vcmp.lt.f32.partialorder %v18993_v20, %v21617_v37 }
 0x2e3   : > { %vm10175_vm13 = vmor %vm21960_vm5, %vm21959_vm1  ;;  %v13607_v23 = vsel %vm10174_vm3, 1.0, %v21204_v50  ;;  %vm8510_vm1 = vcmp.lt.f32.partialorder %v19038_v12, %v21616_v53  ;;  %vm21963_vm5 = vcmp.eq.f32.partialorder %v19024_v52, %v21606_v18 }
 0x2e4   : > { %v13608_v9 = vsel %vm10175_vm13, 1.0, %v21204_v50  ;;  %v11758_v1 = vadd.f32 %v13607_v23, %v11757_v63  ;;  %vm9724_vm9 = vmand %vm9020_vm11, %vm21543_vm12  ;;  %vm9022_vm11 = vcmp.eq.f32.partialorder %v19038_v12, %v21616_v53  ;;  %vm21964_vm13 = vcmp.lt.f32.partialorder %v19024_v52, %v21606_v18  ;;  %v21975_v63 = vld [vmem:[#allocation28_spill] sm:$0xff] }
 0x2e5   : > { %v11795_v16 = vadd.f32 %v13608_v9, %v11794_v2  ;;  %vm10236_vm0 = vmor %vm8508_vm7, %vm9724_vm9 }
 0x2e6   : > { %vm10237_vm3 = vmor %vm21962_vm4, %vm21961_vm6  ;;  %v13669_v46 = vsel %vm10236_vm0, 1.0, %v21204_v50  ;;  %vm8962_vm0 = vcmp.eq.f32.partialorder %v19060_v33, %v21605_v29  ;;  %vm8450_vm6 = vcmp.lt.f32.partialorder %v19060_v33, %v21605_v29  ;;  %vm21965_vm4 = vcmp.eq.f32.partialorder %v19038_v12, %v21617_v37 }
 0x2e7   : > { %v13670_v54 = vsel %vm10237_vm3, 1.0, %v21204_v50  ;;  %v11831_v55 = vadd.f32 %v13669_v46, %v11830_v35  ;;  %vm9664_vm12 = vmand %vm8960_vm14, %vm21780_vm8  ;;  %vm21966_vm3 = vcmp.lt.f32.partialorder %v19038_v12, %v21617_v37  ;;  %v21978_v35 = vld [vmem:[#allocation20_spill] sm:$0xff]  ;;  %v21984_v46 = vld [vmem:[#allocation10_spill] sm:$0xff] }
 0x2e8   : > { %v11868_v10 = vadd.f32 %v13670_v54, %v11867_v13  ;;  %vm10176_vm7 = vmor %vm8448_vm2, %vm9664_vm12 }
 0x2e9   : > { %vm10177_vm9 = vmor %vm21964_vm13, %vm21963_vm5  ;;  %v13609_v20 = vsel %vm10176_vm7, 1.0, %v21204_v50  ;;  %vm9024_vm7 = vcmp.eq.f32.partialorder %v19077_v21, %v21616_v53  ;;  %vm8512_vm5 = vcmp.lt.f32.partialorder %v19077_v21, %v21616_v53  ;;  %vm21968_vm13 = vcmp.eq.f32.partialorder %v19060_v33, %v21606_v18 }
 0x2ea   : > { %v13610_v31 = vsel %vm10177_vm9, 1.0, %v21204_v50  ;;  %v11759_v56 = vadd.f32 %v13609_v20, %v11758_v1  ;;  %vm9726_vm14 = vmand %vm9022_vm11, %vm21958_vm15  ;;  %vm21967_vm15 = vnez %v21769_v25  ;;  %vm21969_vm9 = vcmp.lt.f32.partialorder %v19060_v33, %v21606_v18  ;;  %v21981_v25 = vld [vmem:[#allocation11_spill] sm:$0xff] }
 0x2eb   : > { %v11796_v30 = vadd.f32 %v13610_v31, %v11795_v16  ;;  %vm10238_vm2 = vmor %vm8510_vm1, %vm9726_vm14  ;;  %v21982_v16 = vld [vmem:[#allocation33_spill] sm:$0xff] }
 0x2ec   : > { %vm10239_vm12 = vmor %vm21966_vm3, %vm21965_vm4  ;;  %v13671_v52 = vsel %vm10238_vm2, 1.0, %v21204_v50  ;;  %vm8964_vm2 = vcmp.eq.f32.partialorder %v21970_v8, %v21605_v29  ;;  %vm8452_vm4 = vcmp.lt.f32.partialorder %v21970_v8, %v21605_v29  ;;  %vm21971_vm3 = vcmp.eq.f32.partialorder %v19077_v21, %v21617_v37 }
 0x2ed   : > { %v13672_v4 = vsel %vm10239_vm12, 1.0, %v21204_v50  ;;  %v11832_v59 = vadd.f32 %v13671_v52, %v11831_v55  ;;  %vm9666_vm11 = vmand %vm8962_vm0, %vm21967_vm15  ;;  %vm21972_vm12 = vcmp.lt.f32.partialorder %v19077_v21, %v21617_v37  ;;  %v21985_v55 = vld [vmem:[#allocation23_spill] sm:$0xff] }
 0x2ee   : > { %v11869_v22 = vadd.f32 %v13672_v4, %v11868_v10  ;;  %vm10178_vm1 = vmor %vm8450_vm6, %vm9666_vm11 }
 0x2ef   : > { %vm10179_vm14 = vmor %vm21969_vm9, %vm21968_vm13  ;;  %v13611_v12 = vsel %vm10178_vm1, 1.0, %v21204_v50  ;;  %vm9026_vm1 = vcmp.eq.f32.partialorder %v21975_v63, %v21616_v53  ;;  %vm8514_vm13 = vcmp.lt.f32.partialorder %v21975_v63, %v21616_v53  ;;  %vm21976_vm9 = vcmp.eq.f32.partialorder %v21970_v8, %v21606_v18 }
 0x2f0   : > { %v13612_v5 = vsel %vm10179_vm14, 1.0, %v21204_v50  ;;  %v11760_v38 = vadd.f32 %v13611_v12, %v11759_v56  ;;  %vm9728_vm0 = vmand %vm9024_vm7, %vm21780_vm8  ;;  %vm21974_vm8 = vnez %v21973_v57  ;;  %vm21977_vm14 = vcmp.lt.f32.partialorder %v21970_v8, %v21606_v18  ;;  %v21991_v12 = vld [vmem:[#allocation12_spill] sm:$0xff] }
 0x2f1   : > { %v11797_v6 = vadd.f32 %v13612_v5, %v11796_v30  ;;  %vm10240_vm6 = vmor %vm8512_vm5, %vm9728_vm0  ;;  %v21988_v30 = vld [vmem:[#allocation8_spill] sm:$0xff] }
 0x2f2   : > { %vm10241_vm11 = vmor %vm21972_vm12, %vm21971_vm3  ;;  %v13673_v33 = vsel %vm10240_vm6, 1.0, %v21204_v50  ;;  %vm8966_vm6 = vcmp.eq.f32.partialorder %v21978_v35, %v21605_v29  ;;  %vm8454_vm3 = vcmp.lt.f32.partialorder %v21978_v35, %v21605_v29  ;;  %vm21979_vm12 = vcmp.eq.f32.partialorder %v21975_v63, %v21617_v37  ;;  %v21992_v8 = vld [vmem:[#allocation36_spill] sm:$0xff] }
 0x2f3   : > { %v13674_v11 = vsel %vm10241_vm11, 1.0, %v21204_v50  ;;  %v11833_v34 = vadd.f32 %v13673_v33, %v11832_v59  ;;  %vm9668_vm7 = vmand %vm8964_vm2, %vm21974_vm8  ;;  %vm21980_vm11 = vcmp.lt.f32.partialorder %v21975_v63, %v21617_v37 }
 0x2f4   : > { %v11870_v2 = vadd.f32 %v13674_v11, %v11869_v22  ;;  %vm10180_vm5 = vmor %vm8452_vm4, %vm9668_vm7 }
 0x2f5   : > { %vm10181_vm0 = vmor %vm21977_vm14, %vm21976_vm9  ;;  %v13613_v21 = vsel %vm10180_vm5, 1.0, %v21204_v50  ;;  %vm8516_vm14 = vcmp.lt.f32.partialorder %v21984_v46, %v21616_v53 }
 0x2f6   : > { %v13614_v47 = vsel %vm10181_vm0, 1.0, %v21204_v50  ;;  %v11761_v3 = vadd.f32 %v13613_v21, %v11760_v38  ;;  %vm9730_vm2 = vmand %vm9026_vm1, %vm21967_vm15  ;;  %vm8456_vm15 = vcmp.lt.f32.partialorder %v21981_v25, %v21605_v29  ;;  %vm21983_vm1 = vnez %v21982_v16 }
 0x2f7   : > { %v11798_v13 = vadd.f32 %v13614_v47, %v11797_v6  ;;  %vm10242_vm4 = vmor %vm8514_vm13, %vm9730_vm2  ;;  %vm9028_vm13 = vcmp.eq.f32.partialorder %v21984_v46, %v21616_v53  ;;  %vm8458_vm0 = vcmp.lt.f32.partialorder %v21985_v55, %v21605_v29  ;;  %vm21986_vm2 = vcmp.eq.f32.partialorder %v21978_v35, %v21606_v18  ;;  %v21997_v47 = vld [vmem:[#allocation32_spill] sm:$0xff] }
 0x2f8   : > { %vm10243_vm7 = vmor %vm21980_vm11, %vm21979_vm12  ;;  %v13675_v23 = vsel %vm10242_vm4, 1.0, %v21204_v50  ;;  %vm21987_vm4 = vcmp.lt.f32.partialorder %v21978_v35, %v21606_v18  ;;  %v13617_v20 = vsel %vm8456_vm15, 1.0, %v21204_v50  ;;  %v13619_v4 = vsel %vm8458_vm0, 1.0, %v21204_v50 }
 0x2f9   : > { %v13676_v9 = vsel %vm10243_vm7, 1.0, %v21204_v50  ;;  %v11834_v1 = vadd.f32 %v13675_v23, %v11833_v34  ;;  %vm9670_vm5 = vmand %vm8966_vm6, %vm21983_vm1  ;;  %vm21989_vm7 = vcmp.eq.f32.partialorder %v21984_v46, %v21617_v37  ;;  %v21996_v34 = vld [vmem:[#allocation31_spill] sm:$0xff] }
 0x2fa   : > { %v11871_v54 = vadd.f32 %v13676_v9, %v11870_v2  ;;  %vm10182_vm9 = vmor %vm8454_vm3, %vm9670_vm5  ;;  %vm8460_vm3 = vcmp.lt.f32.partialorder %v21988_v30, %v21605_v29  ;;  %vm21990_vm5 = vcmp.lt.f32.partialorder %v21984_v46, %v21617_v37  ;;  %v22001_v9 = vld [vmem:[#allocation35_spill] sm:$0xff] }
 0x2fb   : > { %vm10183_vm12 = vmor %vm21987_vm4, %vm21986_vm2  ;;  %v13615_v10 = vsel %vm10182_vm9, 1.0, %v21204_v50  ;;  %vm21993_vm9 = vnez %v21992_v8  ;;  %vm8518_vm2 = vcmp.lt.f32.partialorder %v21991_v12, %v21616_v53  ;;  %v13621_v6 = vsel %vm8460_vm3, 1.0, %v21204_v50 }
 0x2fc   : > { %v13616_v31 = vsel %vm10183_vm12, 1.0, %v21204_v50  ;;  %vm9732_vm6 = vmand %vm9028_vm13, %vm21974_vm8  ;;  %v11762_v56 = vadd.f32 %v13615_v10, %v11761_v3  ;;  %vm9030_vm8 = vcmp.eq.f32.partialorder %v21991_v12, %v21616_v53  ;;  %vm8462_vm13 = vcmp.lt.f32.partialorder %v19314_v36, %v21605_v29 }
 0x2fd   : > { %vm10244_vm11 = vmor %vm8516_vm14, %vm9732_vm6  ;;  %v11799_v52 = vadd.f32 %v13616_v31, %v11798_v13  ;;  %vm21994_vm14 = vcmp.eq.f32.partialorder %v21981_v25, %v21606_v18  ;;  %vm21995_vm4 = vcmp.lt.f32.partialorder %v21981_v25, %v21606_v18  ;;  %vm8520_vm6 = vcmp.lt.f32.partialorder %v21996_v34, %v21616_v53  ;;  %v22000_v13 = vld [vmem:[#allocation9_spill] sm:$0xff] }
 0x2fe   : > { %vm10245_vm15 = vmor %vm21990_vm5, %vm21989_vm7  ;;  %v13677_v59 = vsel %vm10244_vm11, 1.0, %v21204_v50  ;;  %v11763_v22 = vadd.f32 %v13617_v20, %v11762_v56  ;;  %vm8464_vm11 = vcmp.lt.f32.partialorder %v19355_v28, %v21605_v29  ;;  %v13623_v63 = vsel %vm8462_vm13, 1.0, %v21204_v50 }
 0x2ff   : > { %v13678_v5 = vsel %vm10245_vm15, 1.0, %v21204_v50  ;;  %v11835_v38 = vadd.f32 %v13677_v59, %v11834_v1  ;;  %vm9673_vm0 = vmand %vm21994_vm14, %vm21993_vm9  ;;  %vm8522_vm5 = vcmp.lt.f32.partialorder %v21997_v47, %v21616_v53  ;;  %vm8466_vm15 = vcmp.lt.f32.partialorder %v19399_v7, %v21605_v29 }
 0x300   : > { %v11872_v33 = vadd.f32 %v13678_v5, %v11871_v54  ;;  %vm10185_vm12 = vmor %vm21995_vm4, %vm9673_vm0  ;;  %v11764_v11 = vadd.f32 %v13619_v4, %v11763_v22  ;;  %vm21998_vm14 = vcmp.eq.f32.partialorder %v21991_v12, %v21617_v37  ;;  %vm21999_vm0 = vcmp.lt.f32.partialorder %v21991_v12, %v21617_v37  ;;  %v22007_v22 = vld [vmem:[#allocation38_spill] sm:$0xff] }
 0x301   : > { %v13618_v57 = vsel %vm10185_vm12, 1.0, %v21204_v50  ;;  %vm9734_vm7 = vmand %vm9030_vm8, %vm21983_vm1  ;;  %v13681_v35 = vsel %vm8520_vm6, 1.0, %v21204_v50  ;;  %vm8524_vm1 = vcmp.lt.f32.partialorder %v22000_v13, %v21616_v53  ;;  %v13625_v23 = vsel %vm8464_vm11, 1.0, %v21204_v50 }
 0x302   : > { %v11800_v2 = vadd.f32 %v13618_v57, %v11799_v52  ;;  %vm10246_vm3 = vmor %vm8518_vm2, %vm9734_vm7  ;;  %v11765_v21 = vadd.f32 %v13621_v6, %v11764_v11  ;;  %vm22002_vm8 = vnez %v22001_v9  ;;  %vm22003_vm13 = vcmp.eq.f32.partialorder %v21985_v55, %v21606_v18 }
 0x303   : > { %vm10247_vm4 = vmor %vm21999_vm0, %vm21998_vm14  ;;  %v13679_v3 = vsel %vm10246_vm3, 1.0, %v21204_v50  ;;  %vm8468_vm12 = vcmp.lt.f32.partialorder %v19443_v39, %v21605_v29  ;;  %vm22004_vm6 = vcmp.lt.f32.partialorder %v21985_v55, %v21606_v18  ;;  %v13683_v54 = vsel %vm8522_vm5, 1.0, %v21204_v50 }
 0x304   : > { %v13680_v25 = vsel %vm10247_vm4, 1.0, %v21204_v50  ;;  %vm9675_vm2 = vmand %vm22003_vm13, %vm22002_vm8  ;;  %v11836_v1 = vadd.f32 %v13679_v3, %v11835_v38  ;;  %v11766_v16 = vadd.f32 %v13623_v63, %v11765_v21  ;;  %vm8526_vm11 = vcmp.lt.f32.partialorder %v19357_v14, %v21616_v53  ;;  %v22013_v21 = vld [vmem:[#allocation37_spill] sm:$0xff] }
 0x305   : > { %vm10187_vm7 = vmor %vm22004_vm6, %vm9675_vm2  ;;  %v11873_v46 = vadd.f32 %v13680_v25, %v11872_v33  ;;  %v13627_v10 = vsel %vm8466_vm15, 1.0, %v21204_v50  ;;  %vm22005_vm3 = vcmp.eq.f32.partialorder %v21996_v34, %v21617_v37  ;;  %vm8470_vm0 = vcmp.lt.f32.partialorder %v19487_v41, %v21605_v29 }
 0x306   : > { %v13620_v20 = vsel %vm10187_vm7, 1.0, %v21204_v50  ;;  %vm9737_vm14 = vmand %vm22005_vm3, %vm21993_vm9  ;;  %v11837_v31 = vadd.f32 %v13681_v35, %v11836_v1  ;;  %v11767_v56 = vadd.f32 %v13625_v23, %v11766_v16  ;;  %vm22006_vm5 = vcmp.lt.f32.partialorder %v21996_v34, %v21617_v37 }
 0x307   : > { %v11801_v55 = vadd.f32 %v13620_v20, %v11800_v2  ;;  %vm10249_vm4 = vmor %vm22006_vm5, %vm9737_vm14  ;;  %v13685_v52 = vsel %vm8524_vm1, 1.0, %v21204_v50  ;;  %vm8528_vm15 = vcmp.lt.f32.partialorder %v19401_v62, %v21616_v53  ;;  %v13629_v4 = vsel %vm8468_vm12, 1.0, %v21204_v50 }
 0x308   : > { %v13682_v59 = vsel %vm10249_vm4, 1.0, %v21204_v50  ;;  %vm22008_vm9 = vnez %v22007_v22  ;;  %vm22009_vm13 = vcmp.eq.f32.partialorder %v21988_v30, %v21606_v18  ;;  %v11838_v12 = vadd.f32 %v13683_v54, %v11837_v31  ;;  %v22019_v31 = vld [vmem:[#allocation40_spill] sm:$0xff] }
 0x309   : > { %vm9677_vm2 = vmand %vm22009_vm13, %vm22008_vm9  ;;  %v11768_v5 = vadd.f32 %v13627_v10, %v11767_v56  ;;  %vm8472_vm6 = vcmp.lt.f32.partialorder %v19531_v17, %v21605_v29  ;;  %v11874_v38 = vadd.f32 %v13682_v59, %v11873_v46  ;;  %vm22010_vm1 = vcmp.lt.f32.partialorder %v21988_v30, %v21606_v18  ;;  %v20229_v10 = vpop.permute.xlu1 %7784 }
 0x30a   : > { %vm10189_vm7 = vmor %vm22010_vm1, %vm9677_vm2  ;;  %v13687_v8 = vsel %vm8526_vm11, 1.0, %v21204_v50  ;;  %vm8530_vm12 = vcmp.lt.f32.partialorder %v19445_v42, %v21616_v53  ;;  %v13631_v6 = vsel %vm8470_vm0, 1.0, %v21204_v50  ;;  %vm22011_vm3 = vcmp.eq.f32.partialorder %v21997_v47, %v21617_v37 }
 0x30b   : > { %v13622_v33 = vsel %vm10189_vm7, 1.0, %v21204_v50  ;;  %vm9739_vm14 = vmand %vm22011_vm3, %vm22002_vm8  ;;  %v11839_v30 = vadd.f32 %v13685_v52, %v11838_v12  ;;  %v11769_v11 = vadd.f32 %v13629_v4, %v11768_v5  ;;  %vm8474_vm5 = vcmp.lt.f32.partialorder %v19574_v40, %v21605_v29 }
 0x30c   : > { %v11802_v34 = vadd.f32 %v13622_v33, %v11801_v55  ;;  %vm22012_vm11 = vcmp.lt.f32.partialorder %v21997_v47, %v21617_v37  ;;  %v13689_v57 = vsel %vm8528_vm15, 1.0, %v21204_v50  ;;  %vm8532_vm0 = vcmp.lt.f32.partialorder %v19489_v45, %v21616_v53 }
 0x30d   : > { %vm10251_vm4 = vmor %vm22012_vm11, %vm9739_vm14  ;;  %v13633_v63 = vsel %vm8472_vm6, 1.0, %v21204_v50  ;;  %vm22014_vm8 = vnez %v22013_v21  ;;  %vm22015_vm13 = vcmp.eq.f32.partialorder %v19314_v36, %v21606_v18  ;;  %v11840_v47 = vadd.f32 %v13687_v8, %v11839_v30  ;;  %v22026_v30 = vld [vmem:[#allocation39_spill] sm:$0xff] }
 0x30e   : > { %v13684_v2 = vsel %vm10251_vm4, 1.0, %v21204_v50  ;;  %vm9679_vm2 = vmand %vm22015_vm13, %vm22014_vm8  ;;  %v11770_v3 = vadd.f32 %v13631_v6, %v11769_v11  ;;  %vm8476_vm1 = vcmp.lt.f32.partialorder %v19609_v49, %v21605_v29  ;;  %vm22016_vm15 = vcmp.lt.f32.partialorder %v19314_v36, %v21606_v18  ;;  %v20270_v6 = vpop.permute.xlu0 %7788 }
 0x30f   : > { %v11875_v35 = vadd.f32 %v13684_v2, %v11874_v38  ;;  %vm10191_vm7 = vmor %vm22016_vm15, %vm9679_vm2  ;;  %v13691_v23 = vsel %vm8530_vm12, 1.0, %v21204_v50  ;;  %vm8534_vm6 = vcmp.lt.f32.partialorder %v19533_v32, %v21616_v53  ;;  %v13635_v25 = vsel %vm8474_vm5, 1.0, %v21204_v50  ;;  %v22025_v38 = vld [vmem:[#allocation51_spill] sm:$0xff]  ;;  %v20293_v2 = vpop.permute.xlu1 %7918 }
 0x310   : > { %v13624_v9 = vsel %vm10191_vm7, 1.0, %v21204_v50  ;;  %vm22017_vm3 = vcmp.eq.f32.partialorder %v22000_v13, %v21617_v37  ;;  %v11841_v36 = vadd.f32 %v13689_v57, %v11840_v47  ;;  %v11771_v1 = vadd.f32 %v13633_v63, %v11770_v3 }
 0x311   : > { %vm9741_vm14 = vmand %vm22017_vm3, %vm22008_vm9  ;;  %vm8478_vm11 = vcmp.lt.f32.partialorder %v19679_v43, %v21605_v29  ;;  %v11803_v16 = vadd.f32 %v13624_v9, %v11802_v34  ;;  %vm22018_vm12 = vcmp.lt.f32.partialorder %v22000_v13, %v21617_v37  ;;  %v13693_v46 = vsel %vm8532_vm0, 1.0, %v21204_v50  ;;  %v22032_v9 = vld [vmem:[#allocation42_spill] sm:$0xff] }
 0x312   : > { %vm10253_vm4 = vmor %vm22018_vm12, %vm9741_vm14  ;;  %vm8536_vm5 = vcmp.lt.f32.partialorder %v19576_v27, %v21616_v53  ;;  %v13637_v54 = vsel %vm8476_vm1, 1.0, %v21204_v50  ;;  %vm22020_vm9 = vnez %v22019_v31  ;;  %vm22021_vm13 = vcmp.eq.f32.partialorder %v19355_v28, %v21606_v18 }
 0x313   : > { %v13686_v20 = vsel %vm10253_vm4, 1.0, %v21204_v50  ;;  %vm9681_vm2 = vmand %vm22021_vm13, %vm22020_vm9  ;;  %v11842_v13 = vadd.f32 %v13691_v23, %v11841_v36  ;;  %v11772_v56 = vadd.f32 %v13635_v25, %v11771_v1  ;;  %vm8480_vm0 = vcmp.lt.f32.partialorder %v19705_v48, %v21605_v29 }
 0x314   : > { %v11876_v55 = vadd.f32 %v13686_v20, %v11875_v35  ;;  %vm22022_vm15 = vcmp.lt.f32.partialorder %v19355_v28, %v21606_v18  ;;  %v13695_v52 = vsel %vm8534_vm6, 1.0, %v21204_v50  ;;  %vm8538_vm7 = vcmp.lt.f32.partialorder %v19611_v26, %v21616_v53 }
 0x315   : > { %vm10193_vm1 = vmor %vm22022_vm15, %vm9681_vm2  ;;  %v13639_v4 = vsel %vm8478_vm11, 1.0, %v21204_v50  ;;  %vm22023_vm3 = vcmp.eq.f32.partialorder %v19357_v14, %v21617_v37  ;;  %v11843_v28 = vadd.f32 %v13693_v46, %v11842_v13  ;;  %v11773_v22 = vadd.f32 %v13637_v54, %v11772_v56  ;;  %v20339_v13 = vpop.permute.xlu1 %7922 }
 0x316   : > { %v13626_v59 = vsel %vm10193_vm1, 1.0, %v21204_v50  ;;  %vm9743_vm14 = vmand %vm22023_vm3, %vm22014_vm8  ;;  %vm8482_vm6 = vcmp.lt.f32.partialorder %v19762_v44, %v21605_v29  ;;  %vm22024_vm12 = vcmp.lt.f32.partialorder %v19357_v14, %v21617_v37  ;;  %v13697_v5 = vsel %vm8536_vm5, 1.0, %v21204_v50 }
 0x317   : > { %v11804_v12 = vadd.f32 %v13626_v59, %v11803_v16  ;;  %vm10255_vm4 = vmor %vm22024_vm12, %vm9743_vm14  ;;  %vm8540_vm11 = vcmp.lt.f32.partialorder %v22025_v38, %v21616_v53  ;;  %v13641_v8 = vsel %vm8480_vm0, 1.0, %v21204_v50  ;;  %vm22027_vm8 = vnez %v22026_v30 }
 0x318   : > { %v13688_v33 = vsel %vm10255_vm4, 1.0, %v21204_v50  ;;  %vm22028_vm13 = vcmp.eq.f32.partialorder %v19399_v7, %v21606_v18  ;;  %v11844_v14 = vadd.f32 %v13695_v52, %v11843_v28  ;;  %v11774_v11 = vadd.f32 %v13639_v4, %v11773_v22 }
 0x319   : > { %vm9683_vm2 = vmand %vm22028_vm13, %vm22027_vm8  ;;  %vm8484_vm5 = vcmp.lt.f32.partialorder %v20229_v10, %v21605_v29  ;;  %v11877_v34 = vadd.f32 %v13688_v33, %v11876_v55  ;;  %vm22029_vm15 = vcmp.lt.f32.partialorder %v19399_v7, %v21606_v18  ;;  %v13699_v57 = vsel %vm8538_vm7, 1.0, %v21204_v50  ;;  %v22038_v55 = vld [vmem:[#allocation41_spill] sm:$0xff]  ;;  %v22044_v33 = vld [vmem:[#allocation44_spill] sm:$0xff] }
 0x31a   : > { %vm10195_vm0 = vmor %vm22029_vm15, %vm9683_vm2  ;;  %vm8542_vm1 = vcmp.lt.f32.partialorder %v19707_v60, %v21616_v53  ;;  %v13643_v63 = vsel %vm8482_vm6, 1.0, %v21204_v50  ;;  %vm22030_vm3 = vcmp.eq.f32.partialorder %v19401_v62, %v21617_v37  ;;  %v11845_v7 = vadd.f32 %v13697_v5, %v11844_v14 }
 0x31b   : > { %v13628_v21 = vsel %vm10195_vm0, 1.0, %v21204_v50  ;;  %vm9745_vm14 = vmand %vm22030_vm3, %vm22020_vm9  ;;  %v11775_v47 = vadd.f32 %v13641_v8, %v11774_v11  ;;  %vm8486_vm7 = vcmp.lt.f32.partialorder %v20270_v6, %v21605_v29  ;;  %vm22031_vm12 = vcmp.lt.f32.partialorder %v19401_v62, %v21617_v37 }
 0x31c   : > { %v11805_v3 = vadd.f32 %v13628_v21, %v11804_v12  ;;  %vm10257_vm6 = vmor %vm22031_vm12, %vm9745_vm14  ;;  %v13701_v35 = vsel %vm8540_vm11, 1.0, %v21204_v50  ;;  %v13645_v23 = vsel %vm8484_vm5, 1.0, %v21204_v50  ;;  %vm22033_vm9 = vnez %v22032_v9  ;;  %v22050_v21 = vld [vmem:[#allocation43_spill] sm:$0xff]  ;;  %v22054_v9 = vld [vmem:[#allocation46_spill] sm:$0xff] }
 0x31d   : > { %v13690_v25 = vsel %vm10257_vm6, 1.0, %v21204_v50  ;;  %vm22034_vm4 = vcmp.eq.f32.partialorder %v19443_v39, %v21606_v18  ;;  %v11846_v29 = vadd.f32 %v13699_v57, %v11845_v7  ;;  %vm8544_vm2 = vcmp.lt.f32.partialorder %v19731_v0, %v21616_v53 }
 0x31e   : > { %vm9685_vm13 = vmand %vm22034_vm4, %vm22033_vm9  ;;  %v11776_v62 = vadd.f32 %v13643_v63, %v11775_v47  ;;  %v11878_v36 = vadd.f32 %v13690_v25, %v11877_v34  ;;  %vm22035_vm15 = vcmp.lt.f32.partialorder %v19443_v39, %v21606_v18  ;;  %v13703_v1 = vsel %vm8542_vm1, 1.0, %v21204_v50 }
 0x31f   : > { %vm10197_vm11 = vmor %vm22035_vm15, %vm9685_vm13  ;;  %v13647_v16 = vsel %vm8486_vm7, 1.0, %v21204_v50  ;;  %vm22036_vm5 = vcmp.eq.f32.partialorder %v19445_v42, %v21617_v37  ;;  %v11847_v54 = vadd.f32 %v13701_v35, %v11846_v29  ;;  %vm8546_vm3 = vcmp.lt.f32.partialorder %v19783_v61, %v21616_v53 }
 0x320   : > { %v13630_v46 = vsel %vm10197_vm11, 1.0, %v21204_v50  ;;  %vm9747_vm0 = vmand %vm22036_vm5, %vm22027_vm8  ;;  %v11777_v20 = vadd.f32 %v13645_v23, %v11776_v62  ;;  %vm22037_vm14 = vcmp.lt.f32.partialorder %v19445_v42, %v21617_v37  ;;  %v13705_v31 = vsel %vm8544_vm2, 1.0, %v21204_v50 }
 0x321   : > { %v11806_v39 = vadd.f32 %v13630_v46, %v11805_v3  ;;  %vm10259_vm1 = vmor %vm22037_vm14, %vm9747_vm0  ;;  %vm22039_vm7 = vnez %v22038_v55  ;;  %vm22040_vm8 = vcmp.eq.f32.partialorder %v19487_v41, %v21606_v18  ;;  %v11848_v52 = vadd.f32 %v13703_v1, %v11847_v54  ;;  %v22057_v46 = vld [vmem:[#allocation29_spill] sm:$0xff] }
 0x322   : > { %v13692_v56 = vsel %vm10259_vm1, 1.0, %v21204_v50  ;;  %vm9687_vm12 = vmand %vm22040_vm8, %vm22039_vm7  ;;  %vm8548_vm6 = vcmp.lt.f32.partialorder %v20293_v2, %v21616_v53  ;;  %v11778_v4 = vadd.f32 %v13647_v16, %v11777_v20  ;;  %vm22041_vm4 = vcmp.lt.f32.partialorder %v19487_v41, %v21606_v18  ;;  %v22056_v16 = vld [vmem:[#allocation13_spill] sm:$0xff] }
 0x323   : > { %v11879_v59 = vadd.f32 %v13692_v56, %v11878_v36  ;;  %vm10199_vm13 = vmor %vm22041_vm4, %vm9687_vm12  ;;  %v13707_v42 = vsel %vm8546_vm3, 1.0, %v21204_v50  ;;  %vm22042_vm2 = vcmp.eq.f32.partialorder %v19489_v45, %v21617_v37  ;;  %v11849_v22 = vadd.f32 %v13705_v31, %v11848_v52  ;;  %v22060_v52 = vld [vmem:[#allocation48_spill] sm:$0xff] }
 0x324   : > { %v13632_v28 = vsel %vm10199_vm13, 1.0, %v21204_v50  ;;  %vm9749_vm15 = vmand %vm22042_vm2, %vm22033_vm9  ;;  %vm8550_vm11 = vcmp.lt.f32.partialorder %v20339_v13, %v21616_v53  ;;  %v11779_v12 = vrot.slane %v11778_v4, 4  ;;  %vm22043_vm5 = vcmp.lt.f32.partialorder %v19489_v45, %v21617_v37 }
 0x325   : > { %v11807_v5 = vadd.f32 %v13632_v28, %v11806_v39  ;;  %vm10261_vm0 = vmor %vm22043_vm5, %vm9749_vm15  ;;  %v13709_v41 = vsel %vm8548_vm6, 1.0, %v21204_v50  ;;  %vm22045_vm3 = vnez %v22044_v33  ;;  %vm22046_vm14 = vcmp.eq.f32.partialorder %v19531_v17, %v21606_v18 }
 0x326   : > { %v13694_v8 = vsel %vm10261_vm0, 1.0, %v21204_v50  ;;  %vm9689_vm9 = vmand %vm22046_vm14, %vm22045_vm3  ;;  %v11850_v30 = vadd.f32 %v13707_v42, %v11849_v22  ;;  %v11780_v14 = vadd.f32 %v11779_v12, %v11778_v4  ;;  %vm22047_vm1 = vcmp.lt.f32.partialorder %v19531_v17, %v21606_v18 }
 0x327   : > { %v11880_v11 = vadd.f32 %v13694_v8, %v11879_v59  ;;  %vm10201_vm8 = vmor %vm22047_vm1, %vm9689_vm9  ;;  %vm8987_vm12 = vcmp.eq.f32.partialorder %v19574_v40, %v21606_v18  ;;  %v13711_v53 = vsel %vm8550_vm11, 1.0, %v21204_v50  ;;  %vm22048_vm6 = vcmp.eq.f32.partialorder %v19533_v32, %v21617_v37  ;;  %v22062_v59 = vld [vmem:[#allocation24_spill] sm:$0xff]  ;;  %v22063_v8 = vld [vmem:[#allocation47_spill] sm:$0xff] }
 0x328   : > { %v13634_v45 = vsel %vm10201_vm8, 1.0, %v21204_v50  ;;  %vm9751_vm4 = vmand %vm22048_vm6, %vm22039_vm7  ;;  %v11851_v34 = vadd.f32 %v13709_v41, %v11850_v30  ;;  %v11781_v57 = vrot.slane %v11780_v14, 2  ;;  %vm22049_vm13 = vcmp.lt.f32.partialorder %v19533_v32, %v21617_v37  ;;  %v22065_v30 = vld [vmem:[#allocation50_spill] sm:$0xff] }
 0x329   : > { %v11808_v63 = vadd.f32 %v13634_v45, %v11807_v5  ;;  %vm10263_vm2 = vmor %vm22049_vm13, %vm9751_vm4  ;;  %vm9049_vm15 = vcmp.eq.f32.partialorder %v19576_v27, %v21617_v37  ;;  %vm22051_vm11 = vnez %v22050_v21  ;;  %vm22052_vm7 = vcmp.lt.f32.partialorder %v19574_v40, %v21606_v18 }
 0x32a   : > { %v13696_v17 = vsel %vm10263_vm2, 1.0, %v21204_v50  ;;  %vm9691_vm5 = vmand %vm8987_vm12, %vm22051_vm11  ;;  %v11852_v7 = vadd.f32 %v13711_v53, %v11851_v34  ;;  %v11782_v47 = vadd.f32 %v11781_v57, %v11780_v14  ;;  %vm8989_vm14 = vcmp.eq.f32.partialorder %v19609_v49, %v21606_v18  ;;  %v22067_v57 = vld [vmem:[#allocation49_spill] sm:$0xff] }
 0x32b   : > { %v11881_v3 = vadd.f32 %v13696_v17, %v11880_v11  ;;  %vm10203_vm0 = vmor %vm22052_vm7, %vm9691_vm5  ;;  %vm8477_vm1 = vcmp.lt.f32.partialorder %v19609_v49, %v21606_v18  ;;  %vm22053_vm8 = vcmp.lt.f32.partialorder %v19576_v27, %v21617_v37  ;;  %vm9051_vm6 = vcmp.eq.f32.partialorder %v19611_v26, %v21617_v37 }
 0x32c   : > { %v13636_v32 = vsel %vm10203_vm0, 1.0, %v21204_v50  ;;  %vm9753_vm9 = vmand %vm9049_vm15, %vm22045_vm3  ;;  %v11853_v35 = vrot.slane %v11852_v7, 4  ;;  %v11783_v23 = vrot.slane %v11782_v47, 1  ;;  %vm11938_vm4 = vcmask 1046534  }
 0x32d   : > { %v11809_v25 = vadd.f32 %v13636_v32, %v11808_v63  ;;  %vm10265_vm12 = vmor %vm22053_vm8, %vm9753_vm9  ;;  %vm22055_vm13 = vnez %v22054_v9  ;;  %vm8539_vm3 = vcmp.lt.f32.partialorder %v19611_v26, %v21617_v37  ;;  %vm9053_vm5 = vcmp.eq.f32.partialorder %v22025_v38, %v21617_v37 }
 0x32e   : > { %v13698_v40 = vsel %vm10265_vm12, 1.0, %v21204_v50  ;;  %vm9693_vm2 = vmand %vm8989_vm14, %vm22055_vm13  ;;  %v11854_v49 = vadd.f32 %v11853_v35, %v11852_v7  ;;  %v11784_v29 = vadd.f32 %v11783_v23, %v11782_v47  ;;  %vm8541_vm0 = vcmp.lt.f32.partialorder %v22025_v38, %v21617_v37  ;;  %v22058_v38 = vld [vmem:[#allocation45_spill] sm:$0xff] }
 0x32f   : > { %v11882_v62 = vadd.f32 %v13698_v40, %v11881_v3  ;;  %vm10205_vm15 = vmor %vm8477_vm1, %vm9693_vm2  ;;  %vm8927_vm9 = vcmp.eq.f32.partialorder %v22057_v46, %v22056_v16  ;;  %vm8929_vm12 = vcmp.eq.f32.partialorder %v19677_v24, %v22056_v16 }
 0x330   : > { %v13638_v27 = vsel %vm10205_vm15, 1.0, %v21204_v50  ;;  %vm9755_vm7 = vmand %vm9051_vm6, %vm22051_vm11  ;;  %v11855_v36 = vrot.slane %v11854_v49, 2  ;;  %v11939_v1 = vsel %vm11938_vm4, %v11784_v29, %v19897_v58  ;;  %vm8415_vm11 = vcmp.lt.f32.partialorder %v22057_v46, %v22056_v16 }
 0x331   : > { %v11810_v26 = vadd.f32 %v13638_v27, %v11809_v25  ;;  %vm10267_vm14 = vmor %vm8539_vm3, %vm9755_vm7  ;;  %vm22059_vm6 = vnez %v22058_v38  ;;  %vm8417_vm3 = vcmp.lt.f32.partialorder %v19677_v24, %v22056_v16  ;;  %vm8991_vm15 = vcmp.eq.f32.partialorder %v19679_v43, %v21606_v18 }
 0x332   : > { %v13700_v54 = vsel %vm10267_vm14, 1.0, %v21204_v50  ;;  %vm9757_vm1 = vmand %vm9053_vm5, %vm22055_vm13  ;;  %v11856_v20 = vadd.f32 %v11855_v36, %v11854_v49  ;;  %vm11940_vm5 = vcmask 1047559   ;;  %vm22061_vm7 = vnez %v22060_v52 }
 0x333   : > { %v11883_v39 = vadd.f32 %v13700_v54, %v11882_v62  ;;  %vm10269_vm8 = vmor %vm8541_vm0, %vm9757_vm1  ;;  %vm8479_vm14 = vcmp.lt.f32.partialorder %v19679_v43, %v21606_v18  ;;  %vm8993_vm1 = vcmp.eq.f32.partialorder %v19705_v48, %v21606_v18 }
 0x334   : > { %v13702_v58 = vsel %vm10269_vm8, 1.0, %v21204_v50  ;;  %vm9631_vm2 = vmand %vm8927_vm9, %vm22059_vm6  ;;  %v11857_v31 = vrot.slane %v11856_v20, 1  ;;  %vm8481_vm8 = vcmp.lt.f32.partialorder %v19705_v48, %v21606_v18 }
 0x335   : > { %v11884_v56 = vadd.f32 %v13702_v58, %v11883_v39  ;;  %vm10143_vm13 = vmor %vm8415_vm11, %vm9631_vm2  ;;  %vm9055_vm2 = vcmp.eq.f32.partialorder %v19707_v60, %v21617_v37 }
 0x336   : > { %v13576_v55 = vsel %vm10143_vm13, 1.0, %v21204_v50  ;;  %vm9633_vm0 = vmand %vm8929_vm12, %vm22061_vm7  ;;  %v11858_v4 = vadd.f32 %v11857_v31, %v11856_v20  ;;  %vm8543_vm13 = vcmp.lt.f32.partialorder %v19707_v60, %v21617_v37 }
 0x337   : > { %v11737_v42 = vadd.f32 %v13576_v55, %v22062_v59  ;;  %vm10145_vm9 = vmor %vm8417_vm3, %vm9633_vm0  ;;  %vm9057_vm0 = vcmp.eq.f32.partialorder %v19731_v0, %v21617_v37 }
 0x338   : > { %v13578_v24 = vsel %vm10145_vm9, 1.0, %v21204_v50  ;;  %vm9695_vm11 = vmand %vm8991_vm15, %vm22059_vm6  ;;  %v11941_v28 = vsel %vm11940_vm5, %v11858_v4, %v11939_v1  ;;  %vm8545_vm9 = vcmp.lt.f32.partialorder %v19731_v0, %v21617_v37  ;;  %v22069_v1 = vld [vmem:[#allocation27_spill] sm:$0xff] }
 0x339   : > { %v11738_v22 = vadd.f32 %v13578_v24, %v11737_v42  ;;  %vm10207_vm12 = vmor %vm8479_vm14, %vm9695_vm11  ;;  %11951 = vst [vmem:[%s20454_s18] sm:$0xff] %v11941_v28 }
 0x33a   : > { %v13640_v43 = vsel %vm10207_vm12, 1.0, %v21204_v50  ;;  %vm9697_vm3 = vmand %vm8993_vm1, %vm22061_vm7  ;;  %vm8931_vm1 = vcmp.eq.f32.partialorder %v19733_v51, %v22056_v16  ;;  %vm8419_vm12 = vcmp.lt.f32.partialorder %v19733_v51, %v22056_v16 }
 0x33b   : > { %v11811_v48 = vadd.f32 %v13640_v43, %v11810_v26  ;;  %vm10209_vm15 = vmor %vm8481_vm8, %vm9697_vm3 }
 0x33c   : > { %v13642_v12 = vsel %vm10209_vm15, 1.0, %v21204_v50  ;;  %vm9759_vm14 = vmand %vm9055_vm2, %vm22059_vm6  ;;  %vm8933_vm6 = vcmp.eq.f32.partialorder %v19760_v15, %v22056_v16  ;;  %vm22064_vm2 = vnez %v22063_v8  ;;  %vm8421_vm15 = vcmp.lt.f32.partialorder %v19760_v15, %v22056_v16 }
 0x33d   : > { %v11812_v5 = vadd.f32 %v13642_v12, %v11811_v48  ;;  %vm10271_vm11 = vmor %vm8543_vm13, %vm9759_vm14 }
 0x33e   : > { %v13704_v60 = vsel %vm10271_vm11, 1.0, %v21204_v50  ;;  %vm9761_vm8 = vmand %vm9057_vm0, %vm22061_vm7  ;;  %vm8995_vm7 = vcmp.eq.f32.partialorder %v19762_v44, %v21606_v18  ;;  %vm22066_vm0 = vnez %v22065_v30  ;;  %vm8483_vm11 = vcmp.lt.f32.partialorder %v19762_v44, %v21606_v18 }
 0x33f   : > { %v11885_v41 = vadd.f32 %v13704_v60, %v11884_v56  ;;  %vm10273_vm3 = vmor %vm8545_vm9, %vm9761_vm8 }
 0x340   : > { %v13706_v0 = vsel %vm10273_vm3, 1.0, %v21204_v50  ;;  %vm9635_vm13 = vmand %vm8931_vm1, %vm22064_vm2  ;;  %vm8997_vm1 = vcmp.eq.f32.partialorder %v20229_v10, %v21606_v18  ;;  %vm8485_vm3 = vcmp.lt.f32.partialorder %v20229_v10, %v21606_v18 }
 0x341   : > { %v11886_v33 = vadd.f32 %v13706_v0, %v11885_v41  ;;  %vm10147_vm14 = vmor %vm8419_vm12, %vm9635_vm13 }
 0x342   : > { %v13580_v51 = vsel %vm10147_vm14, 1.0, %v21204_v50  ;;  %vm9637_vm9 = vmand %vm8933_vm6, %vm22066_vm0  ;;  %vm9059_vm6 = vcmp.eq.f32.partialorder %v19783_v61, %v21617_v37  ;;  %vm8547_vm14 = vcmp.lt.f32.partialorder %v19783_v61, %v21617_v37 }
 0x343   : > { %v11739_v14 = vadd.f32 %v13580_v51, %v11738_v22  ;;  %vm10149_vm8 = vmor %vm8421_vm15, %vm9637_vm9 }
 0x344   : > { %v13582_v15 = vsel %vm10149_vm8, 1.0, %v21204_v50  ;;  %vm9699_vm12 = vmand %vm8995_vm7, %vm22064_vm2  ;;  %vm9061_vm7 = vcmp.eq.f32.partialorder %v20293_v2, %v21617_v37  ;;  %vm8549_vm8 = vcmp.lt.f32.partialorder %v20293_v2, %v21617_v37 }
 0x345   : > { %v11740_v11 = vadd.f32 %v13582_v15, %v11739_v14  ;;  %vm10211_vm13 = vmor %vm8483_vm11, %vm9699_vm12 }
 0x346   : > { %v13644_v44 = vsel %vm10211_vm13, 1.0, %v21204_v50  ;;  %vm9701_vm15 = vmand %vm8997_vm1, %vm22066_vm0  ;;  %vm8935_vm1 = vcmp.eq.f32.partialorder %v19806_v19, %v22056_v16  ;;  %vm8423_vm13 = vcmp.lt.f32.partialorder %v19806_v19, %v22056_v16 }
 0x347   : > { %v11813_v53 = vadd.f32 %v13644_v44, %v11812_v5  ;;  %vm10213_vm9 = vmor %vm8485_vm3, %vm9701_vm15 }
 0x348   : > { %v13646_v10 = vsel %vm10213_vm9, 1.0, %v21204_v50  ;;  %vm9763_vm11 = vmand %vm9059_vm6, %vm22064_vm2  ;;  %vm9063_vm2 = vcmp.eq.f32.partialorder %v20339_v13, %v21617_v37  ;;  %vm22068_vm6 = vnez %v22067_v57  ;;  %vm8551_vm9 = vcmp.lt.f32.partialorder %v20339_v13, %v21617_v37 }
 0x349   : > { %v11814_v45 = vadd.f32 %v13646_v10, %v11813_v53  ;;  %vm10275_vm12 = vmor %vm8547_vm14, %vm9763_vm11 }
 0x34a   : > { %v13708_v61 = vsel %vm10275_vm12, 1.0, %v21204_v50  ;;  %vm9765_vm3 = vmand %vm9061_vm7, %vm22066_vm0  ;;  %vm8999_vm0 = vcmp.eq.f32.partialorder %v20270_v6, %v21606_v18 }
 0x34b   : > { %v11887_v34 = vadd.f32 %v13708_v61, %v11886_v33  ;;  %vm10277_vm15 = vmor %vm8549_vm8, %vm9765_vm3  ;;  %vm8487_vm8 = vcmp.lt.f32.partialorder %v20270_v6, %v21606_v18 }
 0x34c   : > { %v13710_v2 = vsel %vm10277_vm15, 1.0, %v21204_v50  ;;  %vm9639_vm14 = vmand %vm8935_vm1, %vm22068_vm6 }
 0x34d   : > { %v11888_v63 = vadd.f32 %v13710_v2, %v11887_v34  ;;  %vm10151_vm11 = vmor %vm8423_vm13, %vm9639_vm14 }
 0x34e   : > { %v13584_v19 = vsel %vm10151_vm11, 1.0, %v21204_v50  ;;  %vm9767_vm7 = vmand %vm9063_vm2, %vm22068_vm6 }
 0x34f   : > { %v11741_v17 = vadd.f32 %v13584_v19, %v11740_v11  ;;  %vm10279_vm12 = vmor %vm8551_vm9, %vm9767_vm7 }
 0x350   : > { %v13712_v21 = vsel %vm10279_vm12, 1.0, %v21204_v50  ;;  %vm9703_vm1 = vmand %vm8999_vm0, %vm22068_vm6 }
 0x351   : > { %v11742_v37 = vrot.slane %v11741_v17, 4  ;;  %v11889_v13 = vadd.f32 %v13712_v21, %v11888_v63  ;;  %vm10215_vm3 = vmor %vm8487_vm8, %vm9703_vm1 }
 0x352   : > { %v13648_v7 = vsel %vm10215_vm3, 1.0, %v21204_v50 }
 0x353   : > { %v11743_v47 = vadd.f32 %v11742_v37, %v11741_v17  ;;  %v11890_v3 = vrot.slane %v11889_v13, 4  ;;  %v11815_v32 = vadd.f32 %v13648_v7, %v11814_v45 }
 0x355   : > { %v11744_v35 = vrot.slane %v11743_v47, 2  ;;  %v11891_v23 = vadd.f32 %v11890_v3, %v11889_v13  ;;  %v11816_v18 = vrot.slane %v11815_v32, 4 }
 0x357   : > { %v11745_v6 = vadd.f32 %v11744_v35, %v11743_v47  ;;  %v11892_v25 = vrot.slane %v11891_v23, 2  ;;  %v11817_v40 = vadd.f32 %v11816_v18, %v11815_v32 }
 0x359   : > { %v11746_v9 = vrot.slane %v11745_v6, 1  ;;  %v11893_v49 = vadd.f32 %v11892_v25, %v11891_v23  ;;  %v11818_v29 = vrot.slane %v11817_v40, 2 }
 0x35b   : > { %v11747_v62 = vadd.f32 %v11746_v9, %v11745_v6  ;;  %v11894_v27 = vrot.slane %v11893_v49, 1  ;;  %v11819_v50 = vadd.f32 %v11818_v29, %v11817_v40 }
 0x35d   : > { %v11820_v36 = vrot.slane %v11819_v50, 1  ;;  %v11946_v26 = vsel %vm11936_vm10, %v11747_v62, %v22069_v1  ;;  %v11895_v16 = vadd.f32 %v11894_v27, %v11893_v49 }
 0x35f   : > { %v11821_v46 = vadd.f32 %v11820_v36, %v11819_v50 }
 0x361   : > { %v11947_v54 = vsel %vm11938_vm4, %v11821_v46, %v11946_v26 }
 0x362   : > { %v11948_v20 = vsel %vm11940_vm5, %v11895_v16, %v11947_v54 }
 0x363   : > { %11952 = vst [vmem:[%s20454_s18 + $0x8] sm:$0xff] %v11948_v20 }
 0x364   : > { %13835 = shalt.err (!%p13832_p6)
}
 0x365   : > { %s13836_s15 = scalar_lea.hbm %s20544_s3, 256  ;;  %s13840_s22 = scalar_lea.hbm %s20596_s1, 512 }
 0x366   : > { %p13837_p4 = scmp.ne.s32.totalorder %s20544_s3, %s13836_s15  ;;  %p13841_p1 = scmp.lt.u32.totalorder %s20544_s3, %s20596_s1 }
 0x367   : > { %p13842_p2 = scmp.lt.u32.totalorder %s13840_s22, %s13836_s15  ;;  %p13844_p8 = scmp.lt.u32.totalorder %s13836_s15, %s20544_s3 }
 0x368   : > { %p13838_p10 = pnand %p13837_p4, %p22070_p9 }
 0x369   : > { %p13843_p5 = por %p13842_p2, %p13841_p1 }
 0x36a   : > { %p13839_p12 = pneg %p13838_p10 }
 0x36b   : > { %p13845_p11 = por %p13844_p8, %p13843_p5 }
 0x36d   : > { %p13846_p0 = pnand %p13845_p11, %p13839_p12 }
 0x36f   : > { %13849 = shalt.err (!%p13846_p0)
}
 0x370   : > { %13724 = dma.vmem_to_hbm [thread:$0]  (%p22070_p9), %s20546_s29, 256, %s20544_s3, %s11954_s4  }
 0x371 PF: > { %s11982_s25 = sand.u32 1, %s13884_s6   ;;  %p22071_p7 = scmp.ne.s32.totalorder %s20850_s21, 0 }
 0x372   : > { %p22072_p13 = scmp.ge.s32.totalorder %s13904_s11, 2  ;;  %s11983_s26 = scalar_lea.sflag [#allocation4], %s11982_s25 }
 0x374   : > { %p13731_p3 = pnand %p22072_p13, %p22071_p7 }
 0x376   : > { %13879 = dma.done.wait (!%p13731_p3), %s11983_s26, 256  }
 0x377   : > { %13881 = vsyncadd (!%p13731_p3), %s11983_s26, 4294967040  ;;  %s17_s11 = sadd.s32 1, %s13904_s11   ;;  %s22073_s6 = smov %s13888_s7 }
 0x378   : > { %p14_p6 = scmp.ge.s32.totalorder %s17_s11, 4   ;;  %s22074_s7 = smov %s13892_s8 }
 0x379   : > { %s22075_s8 = smov %s13976_s20  ;;  %s22076_s9 = smov %s13900_s10 }
 0x37a   : > { %s22077_s10 = smov %s22079_s14  ;;  %16 = sbr.rel (!%p14_p6) target bundleno = 6 (0x6), region = 108 }
 0x381   :  { %11988 = vsyncpa [#allocation3], 1 }
 0x382   :  { %11990 = vsyncpa [#allocation3 + $0x1], 1 }
 0x383   :  { %11991 = vsyncpa [#allocation4], 1 }
 0x384   :  { %11993 = vsyncpa [#allocation4 + $0x1], 1 }

</bundles_post_ra>
